<compile_context>
chip_gen: v7x
topology: tpu7x:2x2x1
jax: 0.10.0
libtpu: 0.0.40
codegen_flags: <defaults>
</compile_context>

<pallas_src>
import math
from functools import partial

import jax
import jax.numpy as jnp
from jax import lax
from jax.experimental import pallas as pl
from jax.experimental.pallas import tpu as pltpu

# ---------------- small deterministic config ----------------
PATCH = 4
IN_CHANS = 3
EMBED_DIM = 32
DEPTH = 12            # taps at seq = 2 (no out), 5 (2x up), 8 (id), 11 (2x down)
NUM_HEADS = 4
MLP_RATIO = 4.0
LN_EPS = 1e-5
IMG_H = IMG_W = 16
BATCH = 2
NUM_PATCHES_224 = (224 // PATCH) * (224 // PATCH)   # hard-coded 224 grid, as in torch __init__


# ---------------- fused Pallas kernel (whole transformer stack) ----------------
def _vit_stack_kernel(patches_ref, patch_w_ref, patch_b_ref, pos_ref, cls_ref,
                      ln1_w_ref, ln1_b_ref, qkv_w_ref, qkv_b_ref,
                      proj_w_ref, proj_b_ref, ln2_w_ref, ln2_b_ref,
                      fc1_w_ref, fc1_b_ref, fc2_w_ref, fc2_b_ref,
                      out5_ref, out8_ref, out11_ref,
                      x_scr,
                      *, num_heads, head_dim, num_patches, seq_real):
    d = pl.program_id(0)
    B, S_pad, D = x_scr.shape
    Np = num_patches

    # ---- step 0: fused patch-embed projection + pos-embed + cls token ----
    # In-kernel token layout: rows [0:Np] = patch tokens, row Np = cls,
    # rows [Np+1:S_pad] = zero padding (kept out of attention via key mask).
    @pl.when(d == 0)
    def _():
        pt = patches_ref[...]                                       # (B, Np, C*p*p)
        tok = jnp.dot(pt.reshape(B * Np, pt.shape[-1]), patch_w_ref[...],
                      preferred_element_type=jnp.float32)
        tok = tok.reshape(B, Np, D) + patch_b_ref[...] + pos_ref[...]
        x_scr[...] = jnp.zeros_like(x_scr)                          # finite padded rows
        x_scr[:, 0:Np, :] = tok
        x_scr[:, Np:Np + 1, :] = jnp.broadcast_to(cls_ref[...], (B, 1, D))

    x = x_scr[...].reshape(B * S_pad, D)

    def layer_norm(t, w_ref, b_ref):
        mu = jnp.mean(t, axis=-1, keepdims=True)
        var = jnp.mean((t - mu) ** 2, axis=-1, keepdims=True)       # biased, as nn.LayerNorm
        return (t - mu) * lax.rsqrt(var + LN_EPS) * w_ref[...] + b_ref[...]

    # ---- multi-head self-attention (Dropout/DropPath are identity in eval) ----
    xn = layer_norm(x, ln1_w_ref, ln1_b_ref)
    qkv = jnp.dot(xn, qkv_w_ref[...], preferred_element_type=jnp.float32) + qkv_b_ref[...]
    qkv = qkv.reshape(B, S_pad, 3 * D)

    col = lax.broadcasted_iota(jnp.int32, (1, 1, S_pad), 2)
    key_bias = jnp.where(col < seq_real, 0.0, -1e30).astype(jnp.float32)

    scale = head_dim ** (-0.5)
    ctx = []
    for h in range(num_heads):                                      # static unroll
        lo = h * head_dim
        qh = qkv[:, :, lo:lo + head_dim]
        kh = qkv[:, :, D + lo:D + lo + head_dim]
        vh = qkv[:, :, 2 * D + lo:2 * D + lo + head_dim]
        s = jnp.einsum('bqd,bkd->bqk', qh, kh,
                       preferred_element_type=jnp.float32) * scale + key_bias
        s = s - jnp.max(s, axis=-1, keepdims=True)
        e = jnp.exp(s)
        p = e * pl.reciprocal(jnp.sum(e, axis=-1, keepdims=True), approx=True)
        ctx.append(jnp.einsum('bqk,bkd->bqd', p, vh,
                              preferred_element_type=jnp.float32))
    ctx = jnp.concatenate(ctx, axis=-1).reshape(B * S_pad, D)       # one proj matmul
    attn = jnp.dot(ctx, proj_w_ref[...], preferred_element_type=jnp.float32) + proj_b_ref[...]
    x = x + attn

    # ---- MLP (exact erf GELU, matching nn.GELU default) ----
    xn2 = layer_norm(x, ln2_w_ref, ln2_b_ref)
    h1 = jnp.dot(xn2, fc1_w_ref[...], preferred_element_type=jnp.float32) + fc1_b_ref[...]
    h1 = 0.5 * h1 * (1.0 + lax.erf(h1 * (1.0 / math.sqrt(2.0))))
    h2 = jnp.dot(h1, fc2_w_ref[...], preferred_element_type=jnp.float32) + fc2_b_ref[...]
    x_new = (x + h2).reshape(B, S_pad, D)
    x_scr[...] = x_new

    # ---- lateral taps: emit the patch-token rows (== x[:, 1:, :] in torch) ----
    @pl.when(d == 5)
    def _():
        out5_ref[...] = x_new[:, 0:Np, :]

    @pl.when(d == 8)
    def _():
        out8_ref[...] = x_new[:, 0:Np, :]

    @pl.when(d == 11)
    def _():
        out11_ref[...] = x_new[:, 0:Np, :]

    # cls token is reset to its ORIGINAL (cls + pos) value at every tap point,
    # exactly as the PyTorch loop re-concatenates the pre-loop `cls_tokens`.
    @pl.when(d % 3 == 2)
    def _():
        x_scr[:, Np:Np + 1, :] = jnp.broadcast_to(cls_ref[...], (B, 1, D))


def _const_spec(a):
    n = a.ndim
    return pl.BlockSpec(a.shape, lambda d, _n=n: (0,) * _n)


def _depth_spec(a):
    n = a.ndim
    return pl.BlockSpec((None,) + a.shape[1:], lambda d, _n=n: (d,) + (0,) * (_n - 1))


_STACKED = ('ln1_w', 'ln1_b', 'qkv_w', 'qkv_b', 'proj_w', 'proj_b',
            'ln2_w', 'ln2_b', 'fc1_w', 'fc1_b', 'fc2_w', 'fc2_b')


def vit_stack(patches, rp):
    """One pallas_call over all DEPTH blocks; returns the 3 lateral token taps."""
    B, Np, _ = patches.shape
    D = rp['patch_w'].shape[1]
    depth = rp['qkv_w'].shape[0]
    S = Np + 1                      # patch tokens + cls
    S_pad = ((S + 7) // 8) * 8      # sublane-aligned in-kernel sequence length

    consts = [patches, rp['patch_w'], rp['patch_b'], rp['pos_patch'], rp['cls_tok']]
    stacked = [rp[name] for name in _STACKED]

    kernel = partial(_vit_stack_kernel, num_heads=NUM_HEADS,
                     head_dim=D // NUM_HEADS, num_patches=Np, seq_real=S)
    out_sds = jax.ShapeDtypeStruct((B, Np, D), jnp.float32)
    out_spec = pl.BlockSpec((B, Np, D), lambda d: (0, 0, 0))
    # NOTE: on v7x one could instead use grid=(B, depth) with
    # dimension_semantics=("parallel", "arbitrary") to shard batch over both
    # TensorCores; here batch (B=2) is folded into the body, which is the
    # better trade on single-TC v5e/v6e.
    return pl.pallas_call(
        kernel,
        grid=(depth,),
        in_specs=[_const_spec(a) for a in consts] + [_depth_spec(a) for a in stacked],
        out_specs=(out_spec, out_spec, out_spec),
        out_shape=(out_sds, out_sds, out_sds),
        scratch_shapes=[pltpu.VMEM((B, S_pad, D), jnp.float32)],
        compiler_params=pltpu.CompilerParams(dimension_semantics=("arbitrary",)),
    )(*consts, *stacked)


# ---------------- plain-JAX glue ----------------
def torch_bilinear_resize(x, out_h, out_w):
    """Matches F.interpolate(mode='bilinear', align_corners=False, antialias=False).
    x: (N, C, H, W) float32."""
    N, C, H, W = x.shape

    def src_index(out_size, in_size):
        scale = in_size / out_size
        i = jnp.arange(out_size, dtype=jnp.float32)
        src = (i + 0.5) * scale - 0.5
        src = jnp.maximum(src, 0.0)
        i0 = jnp.minimum(jnp.floor(src).astype(jnp.int32), in_size - 1)
        i1 = jnp.minimum(i0 + 1, in_size - 1)
        w1 = src - i0.astype(jnp.float32)
        return i0, i1, 1.0 - w1, w1

    y0, y1, wy0, wy1 = src_index(out_h, H)
    x0, x1, wx0, wx1 = src_index(out_w, W)
    top = (x[:, :, y0, :] * wy0[None, None, :, None]
           + x[:, :, y1, :] * wy1[None, None, :, None])
    return (top[:, :, :, x0] * wx0[None, None, None, :]
            + top[:, :, :, x1] * wx1[None, None, None, :])


def interpolate_pos_embed(pos_embed, new_h, new_w):
    # pos_embed: (1, num_patches+1, D); spatial part lives on a square grid.
    D = pos_embed.shape[-1]
    cls_pos = pos_embed[:, :1, :]
    patch_pos = pos_embed[:, 1:, :]
    orig = int(round(math.sqrt(patch_pos.shape[1])))
    if (orig, orig) != (new_h, new_w):
        grid = patch_pos.reshape(1, orig, orig, D).transpose(0, 3, 1, 2)   # NCHW
        # TODO(synk): the reference interpolate_pos_embed may use bicubic; bilinear used here.
        grid = torch_bilinear_resize(grid, new_h, new_w)
        patch_pos = grid.transpose(0, 2, 3, 1).reshape(1, new_h * new_w, D)
    return jnp.concatenate([cls_pos, patch_pos], axis=1)


def prepare_params(params, H, W):
    """One-time prep (outside jit): interpolate pos-embed for this resolution and
    stack the per-block weights along a leading DEPTH axis for the fused kernel."""
    gh, gw = H // PATCH, W // PATCH
    pos = interpolate_pos_embed(params['pos_embed'], gh, gw)        # (1, gh*gw+1, D)
    rp = {
        'patch_w': params['patch_w'],
        'patch_b': params['patch_b'],
        'pos_patch': pos[:, 1:, :],                                 # (1, gh*gw, D)
        'cls_tok': params['cls_token'] + pos[:, :1, :],             # (1, 1, D)
    }
    for name in _STACKED:
        rp[name] = jnp.stack([blk[name] for blk in params['blocks']], axis=0)
    return rp


def vit_forward(x_img, rp):
    N, C, H, W = x_img.shape
    p = PATCH
    gh, gw = H // p, W // p

    # PatchEmbed im2col: strided conv == patch extraction + matmul (matmul fused in-kernel).
    patches = (x_img.reshape(N, C, gh, p, gw, p)
               .transpose(0, 2, 4, 1, 3, 5)
               .reshape(N, gh * gw, C * p * p))

    # TODO(synk): torch.utils.checkpoint path (use_checkpoint) is a no-op for forward values.
    tok5, tok8, tok11 = vit_stack(patches, rp)

    def to_map(t):                                                  # (N, gh*gw, D) -> NCHW
        return t.reshape(N, gh, gw, t.shape[-1]).transpose(0, 3, 1, 2)

    return (torch_bilinear_resize(to_map(tok5), gh * 2, gw * 2),    # seq=5:  2x upsample
            to_map(tok8),                                           # seq=8:  identity
            torch_bilinear_resize(to_map(tok11), gh // 2, gw // 2))  # seq=11: 2x downsample


# ---------------- deterministic parameter init ----------------
def init_params(key):
    D = EMBED_DIM
    hidden = int(D * MLP_RATIO)
    Cp2 = IN_CHANS * PATCH * PATCH
    keys = jax.random.split(key, 3 + DEPTH)

    def xavier(k, fan_in, fan_out):
        bound = math.sqrt(6.0 / (fan_in + fan_out))
        return jax.random.uniform(k, (fan_in, fan_out), jnp.float32, -bound, bound)

    params = {
        # Conv2d(C, D, k=p, s=p) weight (D, C, p, p) stored flattened+transposed: (C*p*p, D)
        'patch_w': xavier(keys[0], Cp2, D),
        'patch_b': jnp.zeros((1, D), jnp.float32),
        'cls_token': 0.02 * jax.random.normal(keys[1], (1, 1, D), jnp.float32),
        'pos_embed': 0.02 * jax.random.normal(keys[2], (1, NUM_PATCHES_224 + 1, D), jnp.float32),
        'blocks': [],
    }
    for i in range(DEPTH):
        bk = jax.random.split(keys[3 + i], 4)
        params['blocks'].append({
            'ln1_w': jnp.ones((1, D), jnp.float32),
            'ln1_b': jnp.zeros((1, D), jnp.float32),
            'qkv_w': xavier(bk[0], D, 3 * D),          # nn.Linear weight stored as (in, out)
            'qkv_b': jnp.zeros((1, 3 * D), jnp.float32),
            'proj_w': xavier(bk[1], D, D),
            'proj_b': jnp.zeros((1, D), jnp.float32),
            'ln2_w': jnp.ones((1, D), jnp.float32),
            'ln2_b': jnp.zeros((1, D), jnp.float32),
            'fc1_w': xavier(bk[2], D, hidden),
            'fc1_b': jnp.zeros((1, hidden), jnp.float32),
            'fc2_w': xavier(bk[3], hidden, D),
            'fc2_b': jnp.zeros((1, D), jnp.float32),
        })
    return params


if __name__ == "__main__":
    key = jax.random.PRNGKey(0)
    pkey, xkey = jax.random.split(key)
    params = init_params(pkey)
    x = jax.random.normal(xkey, (BATCH, IN_CHANS, IMG_H, IMG_W), jnp.float32)

    rp = prepare_params(params, IMG_H, IMG_W)   # once per resolution, outside jit
    fwd = jax.jit(vit_forward)
    outs = jax.block_until_ready(fwd(x, rp))

    gh, gw = IMG_H // PATCH, IMG_W // PATCH
    assert outs[0].shape == (BATCH, EMBED_DIM, gh * 2, gw * 2)
    assert outs[1].shape == (BATCH, EMBED_DIM, gh, gw)
    assert outs[2].shape == (BATCH, EMBED_DIM, gh // 2, gw // 2)
    assert all(bool(jnp.all(jnp.isfinite(o))) for o in outs)
    print("KERNEL_OK")
</pallas_src>

<mosaic_0001>
module attributes {stable_mosaic.version = 11 : i64} {
  func.func @_vit_stack_kernel(%arg0: i32, %arg1: memref<2x16x48xf32, #tpu.memory_space<vmem>>, %arg2: memref<48x32xf32, #tpu.memory_space<vmem>>, %arg3: memref<1x32xf32, #tpu.memory_space<vmem>>, %arg4: memref<1x16x32xf32, #tpu.memory_space<vmem>>, %arg5: memref<1x1x32xf32, #tpu.memory_space<vmem>>, %arg6: memref<1x1x32xf32, #tpu.memory_space<vmem>>, %arg7: memref<1x1x32xf32, #tpu.memory_space<vmem>>, %arg8: memref<1x32x96xf32, #tpu.memory_space<vmem>>, %arg9: memref<1x1x96xf32, #tpu.memory_space<vmem>>, %arg10: memref<1x32x32xf32, #tpu.memory_space<vmem>>, %arg11: memref<1x1x32xf32, #tpu.memory_space<vmem>>, %arg12: memref<1x1x32xf32, #tpu.memory_space<vmem>>, %arg13: memref<1x1x32xf32, #tpu.memory_space<vmem>>, %arg14: memref<1x32x128xf32, #tpu.memory_space<vmem>>, %arg15: memref<1x1x128xf32, #tpu.memory_space<vmem>>, %arg16: memref<1x128x32xf32, #tpu.memory_space<vmem>>, %arg17: memref<1x1x32xf32, #tpu.memory_space<vmem>>, %arg18: memref<2x16x32xf32, #tpu.memory_space<vmem>>, %arg19: memref<2x16x32xf32, #tpu.memory_space<vmem>>, %arg20: memref<2x16x32xf32, #tpu.memory_space<vmem>>, %arg21: memref<2x24x32xf32, #tpu.memory_space<vmem>>) attributes {dimension_semantics = [#tpu.dimension_semantics<arbitrary>], iteration_bounds = array<i64: 12>, scalar_prefetch = 0 : i64, scratch_operands = 1 : i64, tpu.core_type = #tpu.core_type<tc>, window_params = [{pipeline_mode = #tpu.pipeline_mode<synchronous>, transform_indices = @transform_0, window_bounds = array<i64: 2, 16, 48>}, {pipeline_mode = #tpu.pipeline_mode<synchronous>, transform_indices = @transform_1, window_bounds = array<i64: 48, 32>}, {pipeline_mode = #tpu.pipeline_mode<synchronous>, transform_indices = @transform_2, window_bounds = array<i64: 1, 32>}, {pipeline_mode = #tpu.pipeline_mode<synchronous>, transform_indices = @transform_3, window_bounds = array<i64: 1, 16, 32>}, {pipeline_mode = #tpu.pipeline_mode<synchronous>, transform_indices = @transform_4, window_bounds = array<i64: 1, 1, 32>}, {transform_indices = @transform_5, window_bounds = array<i64: 1, 1, 32>}, {transform_indices = @transform_6, window_bounds = array<i64: 1, 1, 32>}, {transform_indices = @transform_7, window_bounds = array<i64: 1, 32, 96>}, {transform_indices = @transform_8, window_bounds = array<i64: 1, 1, 96>}, {transform_indices = @transform_9, window_bounds = array<i64: 1, 32, 32>}, {transform_indices = @transform_10, window_bounds = array<i64: 1, 1, 32>}, {transform_indices = @transform_11, window_bounds = array<i64: 1, 1, 32>}, {transform_indices = @transform_12, window_bounds = array<i64: 1, 1, 32>}, {transform_indices = @transform_13, window_bounds = array<i64: 1, 32, 128>}, {transform_indices = @transform_14, window_bounds = array<i64: 1, 1, 128>}, {transform_indices = @transform_15, window_bounds = array<i64: 1, 128, 32>}, {transform_indices = @transform_16, window_bounds = array<i64: 1, 1, 32>}, {pipeline_mode = #tpu.pipeline_mode<synchronous>, transform_indices = @transform_17, window_bounds = array<i64: 2, 16, 32>}, {pipeline_mode = #tpu.pipeline_mode<synchronous>, transform_indices = @transform_18, window_bounds = array<i64: 2, 16, 32>}, {pipeline_mode = #tpu.pipeline_mode<synchronous>, transform_indices = @transform_19, window_bounds = array<i64: 2, 16, 32>}]} {
    %c0_i32 = arith.constant 0 : i32
    %0 = arith.cmpi eq, %arg0, %c0_i32 : i32
    %1 = arith.extui %0 : i1 to i32
    %c0_i32_0 = arith.constant 0 : i32
    %2 = arith.cmpi ne, %1, %c0_i32_0 : i32
    scf.if %2 {
      %c0_88 = arith.constant 0 : index
      %c0_89 = arith.constant 0 : index
      %c0_90 = arith.constant 0 : index
      %204 = vector.load %arg1[%c0_88, %c0_89, %c0_90] : memref<2x16x48xf32, #tpu.memory_space<vmem>>, vector<2x16x48xf32>
      %205 = vector.shape_cast %204 : vector<2x16x48xf32> to vector<32x48xf32>
      %c0_91 = arith.constant 0 : index
      %c0_92 = arith.constant 0 : index
      %206 = vector.load %arg2[%c0_91, %c0_92] : memref<48x32xf32, #tpu.memory_space<vmem>>, vector<48x32xf32>
      %cst_93 = arith.constant dense<0.000000e+00> : vector<32x32xf32>
      %207 = tpu.matmul %205, %206, %cst_93 {dimension_numbers = #tpu.dot_dimension_numbers<[1], [0], [0], [1], [0, 0, 1, 1], [], []>} : vector<32x48xf32>, vector<48x32xf32>, vector<32x32xf32> -> vector<32x32xf32>
      %208 = vector.shape_cast %207 : vector<32x32xf32> to vector<2x16x32xf32>
      %c0_94 = arith.constant 0 : index
      %c0_95 = arith.constant 0 : index
      %209 = vector.load %arg3[%c0_94, %c0_95] : memref<1x32xf32, #tpu.memory_space<vmem>>, vector<1x32xf32>
      %210 = vector.shape_cast %209 : vector<1x32xf32> to vector<1x1x32xf32>
      %211 = vector.broadcast %210 : vector<1x1x32xf32> to vector<2x16x32xf32>
      %212 = arith.addf %208, %211 : vector<2x16x32xf32>
      %c0_96 = arith.constant 0 : index
      %c0_97 = arith.constant 0 : index
      %c0_98 = arith.constant 0 : index
      %213 = vector.load %arg4[%c0_96, %c0_97, %c0_98] : memref<1x16x32xf32, #tpu.memory_space<vmem>>, vector<1x16x32xf32>
      %214 = vector.broadcast %213 : vector<1x16x32xf32> to vector<2x16x32xf32>
      %215 = arith.addf %212, %214 : vector<2x16x32xf32>
      %cst_99 = arith.constant 0.000000e+00 : f32
      %216 = vector.broadcast %cst_99 : f32 to vector<2x24x32xf32>
      %c0_100 = arith.constant 0 : index
      %c0_101 = arith.constant 0 : index
      %c0_102 = arith.constant 0 : index
      %217 = vector.load %arg21[%c0_100, %c0_101, %c0_102] : memref<2x24x32xf32, #tpu.memory_space<vmem>>, vector<2x24x32xf32>
      tpu.vector_store %arg21[%c0_100, %c0_101, %c0_102], %216 {strides = array<i32>} : memref<2x24x32xf32, #tpu.memory_space<vmem>>, vector<2x24x32xf32>,
      %c0_103 = arith.constant 0 : index
      %c0_104 = arith.constant 0 : index
      %c0_105 = arith.constant 0 : index
      %218 = vector.load %arg21[%c0_103, %c0_104, %c0_105] : memref<2x24x32xf32, #tpu.memory_space<vmem>>, vector<2x16x32xf32>
      tpu.vector_store %arg21[%c0_103, %c0_104, %c0_105], %215 {strides = array<i32>} : memref<2x24x32xf32, #tpu.memory_space<vmem>>, vector<2x16x32xf32>,
      %c0_106 = arith.constant 0 : index
      %c0_107 = arith.constant 0 : index
      %c0_108 = arith.constant 0 : index
      %219 = vector.load %arg5[%c0_106, %c0_107, %c0_108] : memref<1x1x32xf32, #tpu.memory_space<vmem>>, vector<1x1x32xf32>
      %220 = vector.shape_cast %219 : vector<1x1x32xf32> to vector<1x1x32xf32>
      %221 = vector.broadcast %220 : vector<1x1x32xf32> to vector<2x1x32xf32>
      %c0_109 = arith.constant 0 : index
      %c16 = arith.constant 16 : index
      %c0_110 = arith.constant 0 : index
      %222 = vector.load %arg21[%c0_109, %c16, %c0_110] : memref<2x24x32xf32, #tpu.memory_space<vmem>>, vector<2x1x32xf32>
      tpu.vector_store %arg21[%c0_109, %c16, %c0_110], %221 {strides = array<i32>} : memref<2x24x32xf32, #tpu.memory_space<vmem>>, vector<2x1x32xf32>,
    } else {
    }
    %c0 = arith.constant 0 : index
    %c0_1 = arith.constant 0 : index
    %c0_2 = arith.constant 0 : index
    %3 = vector.load %arg21[%c0, %c0_1, %c0_2] : memref<2x24x32xf32, #tpu.memory_space<vmem>>, vector<2x24x32xf32>
    %4 = vector.shape_cast %3 : vector<2x24x32xf32> to vector<48x32xf32>
    %cst = arith.constant dense<0.000000e+00> : vector<48xf32>
    %5 = vector.multi_reduction <add>, %4, %cst [1] : vector<48x32xf32> to vector<48xf32>
    %6 = vector.shape_cast %5 : vector<48xf32> to vector<48x1xf32>
    %cst_3 = arith.constant 3.200000e+01 : f32
    %7 = vector.broadcast %cst_3 : f32 to vector<48x1xf32>
    %8 = arith.divf %6, %7 : vector<48x1xf32>
    %9 = vector.broadcast %8 : vector<48x1xf32> to vector<48x32xf32>
    %10 = arith.subf %4, %9 : vector<48x32xf32>
    %11 = arith.mulf %10, %10 : vector<48x32xf32>
    %cst_4 = arith.constant dense<0.000000e+00> : vector<48xf32>
    %12 = vector.multi_reduction <add>, %11, %cst_4 [1] : vector<48x32xf32> to vector<48xf32>
    %13 = vector.shape_cast %12 : vector<48xf32> to vector<48x1xf32>
    %cst_5 = arith.constant 3.200000e+01 : f32
    %14 = vector.broadcast %cst_5 : f32 to vector<48x1xf32>
    %15 = arith.divf %13, %14 : vector<48x1xf32>
    %16 = vector.broadcast %8 : vector<48x1xf32> to vector<48x32xf32>
    %17 = arith.subf %4, %16 : vector<48x32xf32>
    %cst_6 = arith.constant 9.99999974E-6 : f32
    %18 = vector.broadcast %cst_6 : f32 to vector<48x1xf32>
    %19 = arith.addf %15, %18 : vector<48x1xf32>
    %20 = math.rsqrt %19 : vector<48x1xf32>
    %21 = vector.broadcast %20 : vector<48x1xf32> to vector<48x32xf32>
    %22 = arith.mulf %17, %21 : vector<48x32xf32>
    %c0_7 = arith.constant 0 : index
    %c0_8 = arith.constant 0 : index
    %c0_9 = arith.constant 0 : index
    %23 = vector.load %arg6[%c0_7, %c0_8, %c0_9] : memref<1x1x32xf32, #tpu.memory_space<vmem>>, vector<1x1x32xf32>
    %24 = vector.shape_cast %23 : vector<1x1x32xf32> to vector<1x32xf32>
    %25 = vector.broadcast %24 : vector<1x32xf32> to vector<48x32xf32>
    %26 = arith.mulf %22, %25 : vector<48x32xf32>
    %c0_10 = arith.constant 0 : index
    %c0_11 = arith.constant 0 : index
    %c0_12 = arith.constant 0 : index
    %27 = vector.load %arg7[%c0_10, %c0_11, %c0_12] : memref<1x1x32xf32, #tpu.memory_space<vmem>>, vector<1x1x32xf32>
    %28 = vector.shape_cast %27 : vector<1x1x32xf32> to vector<1x32xf32>
    %29 = vector.broadcast %28 : vector<1x32xf32> to vector<48x32xf32>
    %30 = arith.addf %26, %29 : vector<48x32xf32>
    %c0_13 = arith.constant 0 : index
    %c0_14 = arith.constant 0 : index
    %c0_15 = arith.constant 0 : index
    %31 = vector.load %arg8[%c0_13, %c0_14, %c0_15] : memref<1x32x96xf32, #tpu.memory_space<vmem>>, vector<1x32x96xf32>
    %32 = vector.shape_cast %31 : vector<1x32x96xf32> to vector<32x96xf32>
    %cst_16 = arith.constant dense<0.000000e+00> : vector<48x96xf32>
    %33 = tpu.matmul %30, %32, %cst_16 {dimension_numbers = #tpu.dot_dimension_numbers<[1], [0], [0], [1], [0, 0, 1, 1], [], []>} : vector<48x32xf32>, vector<32x96xf32>, vector<48x96xf32> -> vector<48x96xf32>
    %c0_17 = arith.constant 0 : index
    %c0_18 = arith.constant 0 : index
    %c0_19 = arith.constant 0 : index
    %34 = vector.load %arg9[%c0_17, %c0_18, %c0_19] : memref<1x1x96xf32, #tpu.memory_space<vmem>>, vector<1x1x96xf32>
    %35 = vector.shape_cast %34 : vector<1x1x96xf32> to vector<1x96xf32>
    %36 = vector.broadcast %35 : vector<1x96xf32> to vector<48x96xf32>
    %37 = arith.addf %33, %36 : vector<48x96xf32>
    %38 = vector.shape_cast %37 : vector<48x96xf32> to vector<2x24x96xf32>
    %39 = tpu.iota {dimensions = array<i32: 2>} : vector<1x1x24xi32>
    %c17_i32 = arith.constant 17 : i32
    %40 = vector.broadcast %c17_i32 : i32 to vector<1x1x24xi32>
    %41 = arith.cmpi slt, %39, %40 : vector<1x1x24xi32>
    %cst_20 = arith.constant 0.000000e+00 : f32
    %cst_21 = arith.constant -1.000000e+30 : f32
    %42 = vector.broadcast %cst_20 : f32 to vector<1x1x24xf32>
    %43 = vector.broadcast %cst_21 : f32 to vector<1x1x24xf32>
    %44 = arith.select %41, %42, %43 : vector<1x1x24xi1>, vector<1x1x24xf32>
    %45 = vector.extract_strided_slice %38 {offsets = [0, 0, 0], sizes = [2, 24, 8], strides = [1, 1, 1]} : vector<2x24x96xf32> to vector<2x24x8xf32>
    %46 = vector.extract_strided_slice %38 {offsets = [0, 0, 32], sizes = [2, 24, 8], strides = [1, 1, 1]} : vector<2x24x96xf32> to vector<2x24x8xf32>
    %47 = vector.extract_strided_slice %38 {offsets = [0, 0, 64], sizes = [2, 24, 8], strides = [1, 1, 1]} : vector<2x24x96xf32> to vector<2x24x8xf32>
    "tpu.trace_start"() <{level = 10 : i32, message = "bqd,bkd->bqk"}> : () -> ()
    %cst_22 = arith.constant dense<0.000000e+00> : vector<2x24x24xf32>
    %48 = tpu.matmul %45, %46, %cst_22 {dimension_numbers = #tpu.dot_dimension_numbers<[2], [2], [1], [1], [0, 0, 0, 1, 1, 1], [0], [0]>} : vector<2x24x8xf32>, vector<2x24x8xf32>, vector<2x24x24xf32> -> vector<2x24x24xf32>
    "tpu.trace_stop"() : () -> ()
    %cst_23 = arith.constant 0.353553385 : f32
    %49 = vector.broadcast %cst_23 : f32 to vector<2x24x24xf32>
    %50 = arith.mulf %48, %49 : vector<2x24x24xf32>
    %51 = vector.broadcast %44 : vector<1x1x24xf32> to vector<2x24x24xf32>
    %52 = arith.addf %50, %51 : vector<2x24x24xf32>
    %cst_24 = arith.constant dense<0xFF800000> : vector<2x24xf32>
    %53 = vector.multi_reduction <maximumf>, %52, %cst_24 [2] : vector<2x24x24xf32> to vector<2x24xf32>
    %54 = vector.shape_cast %53 : vector<2x24xf32> to vector<2x24x1xf32>
    %55 = vector.broadcast %54 : vector<2x24x1xf32> to vector<2x24x24xf32>
    %56 = arith.subf %52, %55 : vector<2x24x24xf32>
    %57 = math.exp %56 : vector<2x24x24xf32>
    %cst_25 = arith.constant dense<0.000000e+00> : vector<2x24xf32>
    %58 = vector.multi_reduction <add>, %57, %cst_25 [2] : vector<2x24x24xf32> to vector<2x24xf32>
    %59 = vector.shape_cast %58 : vector<2x24xf32> to vector<2x24x1xf32>
    %60 = tpu.reciprocal %59 {approx = true} : vector<2x24x1xf32> -> vector<2x24x1xf32>
    %61 = vector.broadcast %60 : vector<2x24x1xf32> to vector<2x24x24xf32>
    %62 = arith.mulf %57, %61 : vector<2x24x24xf32>
    "tpu.trace_start"() <{level = 10 : i32, message = "bqk,bkd->bqd"}> : () -> ()
    %cst_26 = arith.constant dense<0.000000e+00> : vector<2x24x8xf32>
    %63 = tpu.matmul %62, %47, %cst_26 {dimension_numbers = #tpu.dot_dimension_numbers<[2], [1], [1], [2], [0, 0, 0, 1, 1, 2], [0], [0]>} : vector<2x24x24xf32>, vector<2x24x8xf32>, vector<2x24x8xf32> -> vector<2x24x8xf32>
    "tpu.trace_stop"() : () -> ()
    %64 = vector.extract_strided_slice %38 {offsets = [0, 0, 8], sizes = [2, 24, 8], strides = [1, 1, 1]} : vector<2x24x96xf32> to vector<2x24x8xf32>
    %65 = vector.extract_strided_slice %38 {offsets = [0, 0, 40], sizes = [2, 24, 8], strides = [1, 1, 1]} : vector<2x24x96xf32> to vector<2x24x8xf32>
    %66 = vector.extract_strided_slice %38 {offsets = [0, 0, 72], sizes = [2, 24, 8], strides = [1, 1, 1]} : vector<2x24x96xf32> to vector<2x24x8xf32>
    "tpu.trace_start"() <{level = 10 : i32, message = "bqd,bkd->bqk"}> : () -> ()
    %cst_27 = arith.constant dense<0.000000e+00> : vector<2x24x24xf32>
    %67 = tpu.matmul %64, %65, %cst_27 {dimension_numbers = #tpu.dot_dimension_numbers<[2], [2], [1], [1], [0, 0, 0, 1, 1, 1], [0], [0]>} : vector<2x24x8xf32>, vector<2x24x8xf32>, vector<2x24x24xf32> -> vector<2x24x24xf32>
    "tpu.trace_stop"() : () -> ()
    %cst_28 = arith.constant 0.353553385 : f32
    %68 = vector.broadcast %cst_28 : f32 to vector<2x24x24xf32>
    %69 = arith.mulf %67, %68 : vector<2x24x24xf32>
    %70 = vector.broadcast %44 : vector<1x1x24xf32> to vector<2x24x24xf32>
    %71 = arith.addf %69, %70 : vector<2x24x24xf32>
    %cst_29 = arith.constant dense<0xFF800000> : vector<2x24xf32>
    %72 = vector.multi_reduction <maximumf>, %71, %cst_29 [2] : vector<2x24x24xf32> to vector<2x24xf32>
    %73 = vector.shape_cast %72 : vector<2x24xf32> to vector<2x24x1xf32>
    %74 = vector.broadcast %73 : vector<2x24x1xf32> to vector<2x24x24xf32>
    %75 = arith.subf %71, %74 : vector<2x24x24xf32>
    %76 = math.exp %75 : vector<2x24x24xf32>
    %cst_30 = arith.constant dense<0.000000e+00> : vector<2x24xf32>
    %77 = vector.multi_reduction <add>, %76, %cst_30 [2] : vector<2x24x24xf32> to vector<2x24xf32>
    %78 = vector.shape_cast %77 : vector<2x24xf32> to vector<2x24x1xf32>
    %79 = tpu.reciprocal %78 {approx = true} : vector<2x24x1xf32> -> vector<2x24x1xf32>
    %80 = vector.broadcast %79 : vector<2x24x1xf32> to vector<2x24x24xf32>
    %81 = arith.mulf %76, %80 : vector<2x24x24xf32>
    "tpu.trace_start"() <{level = 10 : i32, message = "bqk,bkd->bqd"}> : () -> ()
    %cst_31 = arith.constant dense<0.000000e+00> : vector<2x24x8xf32>
    %82 = tpu.matmul %81, %66, %cst_31 {dimension_numbers = #tpu.dot_dimension_numbers<[2], [1], [1], [2], [0, 0, 0, 1, 1, 2], [0], [0]>} : vector<2x24x24xf32>, vector<2x24x8xf32>, vector<2x24x8xf32> -> vector<2x24x8xf32>
    "tpu.trace_stop"() : () -> ()
    %83 = vector.extract_strided_slice %38 {offsets = [0, 0, 16], sizes = [2, 24, 8], strides = [1, 1, 1]} : vector<2x24x96xf32> to vector<2x24x8xf32>
    %84 = vector.extract_strided_slice %38 {offsets = [0, 0, 48], sizes = [2, 24, 8], strides = [1, 1, 1]} : vector<2x24x96xf32> to vector<2x24x8xf32>
    %85 = vector.extract_strided_slice %38 {offsets = [0, 0, 80], sizes = [2, 24, 8], strides = [1, 1, 1]} : vector<2x24x96xf32> to vector<2x24x8xf32>
    "tpu.trace_start"() <{level = 10 : i32, message = "bqd,bkd->bqk"}> : () -> ()
    %cst_32 = arith.constant dense<0.000000e+00> : vector<2x24x24xf32>
    %86 = tpu.matmul %83, %84, %cst_32 {dimension_numbers = #tpu.dot_dimension_numbers<[2], [2], [1], [1], [0, 0, 0, 1, 1, 1], [0], [0]>} : vector<2x24x8xf32>, vector<2x24x8xf32>, vector<2x24x24xf32> -> vector<2x24x24xf32>
    "tpu.trace_stop"() : () -> ()
    %cst_33 = arith.constant 0.353553385 : f32
    %87 = vector.broadcast %cst_33 : f32 to vector<2x24x24xf32>
    %88 = arith.mulf %86, %87 : vector<2x24x24xf32>
    %89 = vector.broadcast %44 : vector<1x1x24xf32> to vector<2x24x24xf32>
    %90 = arith.addf %88, %89 : vector<2x24x24xf32>
    %cst_34 = arith.constant dense<0xFF800000> : vector<2x24xf32>
    %91 = vector.multi_reduction <maximumf>, %90, %cst_34 [2] : vector<2x24x24xf32> to vector<2x24xf32>
    %92 = vector.shape_cast %91 : vector<2x24xf32> to vector<2x24x1xf32>
    %93 = vector.broadcast %92 : vector<2x24x1xf32> to vector<2x24x24xf32>
    %94 = arith.subf %90, %93 : vector<2x24x24xf32>
    %95 = math.exp %94 : vector<2x24x24xf32>
    %cst_35 = arith.constant dense<0.000000e+00> : vector<2x24xf32>
    %96 = vector.multi_reduction <add>, %95, %cst_35 [2] : vector<2x24x24xf32> to vector<2x24xf32>
    %97 = vector.shape_cast %96 : vector<2x24xf32> to vector<2x24x1xf32>
    %98 = tpu.reciprocal %97 {approx = true} : vector<2x24x1xf32> -> vector<2x24x1xf32>
    %99 = vector.broadcast %98 : vector<2x24x1xf32> to vector<2x24x24xf32>
    %100 = arith.mulf %95, %99 : vector<2x24x24xf32>
    "tpu.trace_start"() <{level = 10 : i32, message = "bqk,bkd->bqd"}> : () -> ()
    %cst_36 = arith.constant dense<0.000000e+00> : vector<2x24x8xf32>
    %101 = tpu.matmul %100, %85, %cst_36 {dimension_numbers = #tpu.dot_dimension_numbers<[2], [1], [1], [2], [0, 0, 0, 1, 1, 2], [0], [0]>} : vector<2x24x24xf32>, vector<2x24x8xf32>, vector<2x24x8xf32> -> vector<2x24x8xf32>
    "tpu.trace_stop"() : () -> ()
    %102 = vector.extract_strided_slice %38 {offsets = [0, 0, 24], sizes = [2, 24, 8], strides = [1, 1, 1]} : vector<2x24x96xf32> to vector<2x24x8xf32>
    %103 = vector.extract_strided_slice %38 {offsets = [0, 0, 56], sizes = [2, 24, 8], strides = [1, 1, 1]} : vector<2x24x96xf32> to vector<2x24x8xf32>
    %104 = vector.extract_strided_slice %38 {offsets = [0, 0, 88], sizes = [2, 24, 8], strides = [1, 1, 1]} : vector<2x24x96xf32> to vector<2x24x8xf32>
    "tpu.trace_start"() <{level = 10 : i32, message = "bqd,bkd->bqk"}> : () -> ()
    %cst_37 = arith.constant dense<0.000000e+00> : vector<2x24x24xf32>
    %105 = tpu.matmul %102, %103, %cst_37 {dimension_numbers = #tpu.dot_dimension_numbers<[2], [2], [1], [1], [0, 0, 0, 1, 1, 1], [0], [0]>} : vector<2x24x8xf32>, vector<2x24x8xf32>, vector<2x24x24xf32> -> vector<2x24x24xf32>
    "tpu.trace_stop"() : () -> ()
    %cst_38 = arith.constant 0.353553385 : f32
    %106 = vector.broadcast %cst_38 : f32 to vector<2x24x24xf32>
    %107 = arith.mulf %105, %106 : vector<2x24x24xf32>
    %108 = vector.broadcast %44 : vector<1x1x24xf32> to vector<2x24x24xf32>
    %109 = arith.addf %107, %108 : vector<2x24x24xf32>
    %cst_39 = arith.constant dense<0xFF800000> : vector<2x24xf32>
    %110 = vector.multi_reduction <maximumf>, %109, %cst_39 [2] : vector<2x24x24xf32> to vector<2x24xf32>
    %111 = vector.shape_cast %110 : vector<2x24xf32> to vector<2x24x1xf32>
    %112 = vector.broadcast %111 : vector<2x24x1xf32> to vector<2x24x24xf32>
    %113 = arith.subf %109, %112 : vector<2x24x24xf32>
    %114 = math.exp %113 : vector<2x24x24xf32>
    %cst_40 = arith.constant dense<0.000000e+00> : vector<2x24xf32>
    %115 = vector.multi_reduction <add>, %114, %cst_40 [2] : vector<2x24x24xf32> to vector<2x24xf32>
    %116 = vector.shape_cast %115 : vector<2x24xf32> to vector<2x24x1xf32>
    %117 = tpu.reciprocal %116 {approx = true} : vector<2x24x1xf32> -> vector<2x24x1xf32>
    %118 = vector.broadcast %117 : vector<2x24x1xf32> to vector<2x24x24xf32>
    %119 = arith.mulf %114, %118 : vector<2x24x24xf32>
    "tpu.trace_start"() <{level = 10 : i32, message = "bqk,bkd->bqd"}> : () -> ()
    %cst_41 = arith.constant dense<0.000000e+00> : vector<2x24x8xf32>
    %120 = tpu.matmul %119, %104, %cst_41 {dimension_numbers = #tpu.dot_dimension_numbers<[2], [1], [1], [2], [0, 0, 0, 1, 1, 2], [0], [0]>} : vector<2x24x24xf32>, vector<2x24x8xf32>, vector<2x24x8xf32> -> vector<2x24x8xf32>
    "tpu.trace_stop"() : () -> ()
    %121 = tpu.concatenate %63, %82, %101, %120 in 2 : vector<2x24x8xf32>, vector<2x24x8xf32>, vector<2x24x8xf32>, vector<2x24x8xf32> -> vector<2x24x32xf32>
    %122 = vector.shape_cast %121 : vector<2x24x32xf32> to vector<48x32xf32>
    %c0_42 = arith.constant 0 : index
    %c0_43 = arith.constant 0 : index
    %c0_44 = arith.constant 0 : index
    %123 = vector.load %arg10[%c0_42, %c0_43, %c0_44] : memref<1x32x32xf32, #tpu.memory_space<vmem>>, vector<1x32x32xf32>
    %124 = vector.shape_cast %123 : vector<1x32x32xf32> to vector<32x32xf32>
    %cst_45 = arith.constant dense<0.000000e+00> : vector<48x32xf32>
    %125 = tpu.matmul %122, %124, %cst_45 {dimension_numbers = #tpu.dot_dimension_numbers<[1], [0], [0], [1], [0, 0, 1, 1], [], []>} : vector<48x32xf32>, vector<32x32xf32>, vector<48x32xf32> -> vector<48x32xf32>
    %c0_46 = arith.constant 0 : index
    %c0_47 = arith.constant 0 : index
    %c0_48 = arith.constant 0 : index
    %126 = vector.load %arg11[%c0_46, %c0_47, %c0_48] : memref<1x1x32xf32, #tpu.memory_space<vmem>>, vector<1x1x32xf32>
    %127 = vector.shape_cast %126 : vector<1x1x32xf32> to vector<1x32xf32>
    %128 = vector.broadcast %127 : vector<1x32xf32> to vector<48x32xf32>
    %129 = arith.addf %125, %128 : vector<48x32xf32>
    %130 = arith.addf %4, %129 : vector<48x32xf32>
    %cst_49 = arith.constant dense<0.000000e+00> : vector<48xf32>
    %131 = vector.multi_reduction <add>, %130, %cst_49 [1] : vector<48x32xf32> to vector<48xf32>
    %132 = vector.shape_cast %131 : vector<48xf32> to vector<48x1xf32>
    %cst_50 = arith.constant 3.200000e+01 : f32
    %133 = vector.broadcast %cst_50 : f32 to vector<48x1xf32>
    %134 = arith.divf %132, %133 : vector<48x1xf32>
    %135 = vector.broadcast %134 : vector<48x1xf32> to vector<48x32xf32>
    %136 = arith.subf %130, %135 : vector<48x32xf32>
    %137 = arith.mulf %136, %136 : vector<48x32xf32>
    %cst_51 = arith.constant dense<0.000000e+00> : vector<48xf32>
    %138 = vector.multi_reduction <add>, %137, %cst_51 [1] : vector<48x32xf32> to vector<48xf32>
    %139 = vector.shape_cast %138 : vector<48xf32> to vector<48x1xf32>
    %cst_52 = arith.constant 3.200000e+01 : f32
    %140 = vector.broadcast %cst_52 : f32 to vector<48x1xf32>
    %141 = arith.divf %139, %140 : vector<48x1xf32>
    %142 = vector.broadcast %134 : vector<48x1xf32> to vector<48x32xf32>
    %143 = arith.subf %130, %142 : vector<48x32xf32>
    %cst_53 = arith.constant 9.99999974E-6 : f32
    %144 = vector.broadcast %cst_53 : f32 to vector<48x1xf32>
    %145 = arith.addf %141, %144 : vector<48x1xf32>
    %146 = math.rsqrt %145 : vector<48x1xf32>
    %147 = vector.broadcast %146 : vector<48x1xf32> to vector<48x32xf32>
    %148 = arith.mulf %143, %147 : vector<48x32xf32>
    %c0_54 = arith.constant 0 : index
    %c0_55 = arith.constant 0 : index
    %c0_56 = arith.constant 0 : index
    %149 = vector.load %arg12[%c0_54, %c0_55, %c0_56] : memref<1x1x32xf32, #tpu.memory_space<vmem>>, vector<1x1x32xf32>
    %150 = vector.shape_cast %149 : vector<1x1x32xf32> to vector<1x32xf32>
    %151 = vector.broadcast %150 : vector<1x32xf32> to vector<48x32xf32>
    %152 = arith.mulf %148, %151 : vector<48x32xf32>
    %c0_57 = arith.constant 0 : index
    %c0_58 = arith.constant 0 : index
    %c0_59 = arith.constant 0 : index
    %153 = vector.load %arg13[%c0_57, %c0_58, %c0_59] : memref<1x1x32xf32, #tpu.memory_space<vmem>>, vector<1x1x32xf32>
    %154 = vector.shape_cast %153 : vector<1x1x32xf32> to vector<1x32xf32>
    %155 = vector.broadcast %154 : vector<1x32xf32> to vector<48x32xf32>
    %156 = arith.addf %152, %155 : vector<48x32xf32>
    %c0_60 = arith.constant 0 : index
    %c0_61 = arith.constant 0 : index
    %c0_62 = arith.constant 0 : index
    %157 = vector.load %arg14[%c0_60, %c0_61, %c0_62] : memref<1x32x128xf32, #tpu.memory_space<vmem>>, vector<1x32x128xf32>
    %158 = vector.shape_cast %157 : vector<1x32x128xf32> to vector<32x128xf32>
    %cst_63 = arith.constant dense<0.000000e+00> : vector<48x128xf32>
    %159 = tpu.matmul %156, %158, %cst_63 {dimension_numbers = #tpu.dot_dimension_numbers<[1], [0], [0], [1], [0, 0, 1, 1], [], []>} : vector<48x32xf32>, vector<32x128xf32>, vector<48x128xf32> -> vector<48x128xf32>
    %c0_64 = arith.constant 0 : index
    %c0_65 = arith.constant 0 : index
    %c0_66 = arith.constant 0 : index
    %160 = vector.load %arg15[%c0_64, %c0_65, %c0_66] : memref<1x1x128xf32, #tpu.memory_space<vmem>>, vector<1x1x128xf32>
    %161 = vector.shape_cast %160 : vector<1x1x128xf32> to vector<1x128xf32>
    %162 = vector.broadcast %161 : vector<1x128xf32> to vector<48x128xf32>
    %163 = arith.addf %159, %162 : vector<48x128xf32>
    %cst_67 = arith.constant 5.000000e-01 : f32
    %164 = vector.broadcast %cst_67 : f32 to vector<48x128xf32>
    %165 = arith.mulf %164, %163 : vector<48x128xf32>
    %cst_68 = arith.constant 0.707106769 : f32
    %166 = vector.broadcast %cst_68 : f32 to vector<48x128xf32>
    %167 = arith.mulf %163, %166 : vector<48x128xf32>
    %168 = math.erf %167 : vector<48x128xf32>
    %cst_69 = arith.constant 1.000000e+00 : f32
    %169 = vector.broadcast %cst_69 : f32 to vector<48x128xf32>
    %170 = arith.addf %169, %168 : vector<48x128xf32>
    %171 = arith.mulf %165, %170 : vector<48x128xf32>
    %c0_70 = arith.constant 0 : index
    %c0_71 = arith.constant 0 : index
    %c0_72 = arith.constant 0 : index
    %172 = vector.load %arg16[%c0_70, %c0_71, %c0_72] : memref<1x128x32xf32, #tpu.memory_space<vmem>>, vector<1x128x32xf32>
    %173 = vector.shape_cast %172 : vector<1x128x32xf32> to vector<128x32xf32>
    %cst_73 = arith.constant dense<0.000000e+00> : vector<48x32xf32>
    %174 = tpu.matmul %171, %173, %cst_73 {dimension_numbers = #tpu.dot_dimension_numbers<[1], [0], [0], [1], [0, 0, 1, 1], [], []>} : vector<48x128xf32>, vector<128x32xf32>, vector<48x32xf32> -> vector<48x32xf32>
    %c0_74 = arith.constant 0 : index
    %c0_75 = arith.constant 0 : index
    %c0_76 = arith.constant 0 : index
    %175 = vector.load %arg17[%c0_74, %c0_75, %c0_76] : memref<1x1x32xf32, #tpu.memory_space<vmem>>, vector<1x1x32xf32>
    %176 = vector.shape_cast %175 : vector<1x1x32xf32> to vector<1x32xf32>
    %177 = vector.broadcast %176 : vector<1x32xf32> to vector<48x32xf32>
    %178 = arith.addf %174, %177 : vector<48x32xf32>
    %179 = arith.addf %130, %178 : vector<48x32xf32>
    %180 = vector.shape_cast %179 : vector<48x32xf32> to vector<2x24x32xf32>
    %c0_77 = arith.constant 0 : index
    %c0_78 = arith.constant 0 : index
    %c0_79 = arith.constant 0 : index
    %181 = vector.load %arg21[%c0_77, %c0_78, %c0_79] : memref<2x24x32xf32, #tpu.memory_space<vmem>>, vector<2x24x32xf32>
    tpu.vector_store %arg21[%c0_77, %c0_78, %c0_79], %180 {strides = array<i32>} : memref<2x24x32xf32, #tpu.memory_space<vmem>>, vector<2x24x32xf32>,
    %c5_i32 = arith.constant 5 : i32
    %182 = arith.cmpi eq, %arg0, %c5_i32 : i32
    %183 = arith.extui %182 : i1 to i32
    %c0_i32_80 = arith.constant 0 : i32
    %184 = arith.cmpi ne, %183, %c0_i32_80 : i32
    scf.if %184 {
      %204 = vector.extract_strided_slice %180 {offsets = [0, 0, 0], sizes = [2, 16, 32], strides = [1, 1, 1]} : vector<2x24x32xf32> to vector<2x16x32xf32>
      %c0_88 = arith.constant 0 : index
      %c0_89 = arith.constant 0 : index
      %c0_90 = arith.constant 0 : index
      %205 = vector.load %arg18[%c0_88, %c0_89, %c0_90] : memref<2x16x32xf32, #tpu.memory_space<vmem>>, vector<2x16x32xf32>
      tpu.vector_store %arg18[%c0_88, %c0_89, %c0_90], %204 {strides = array<i32>} : memref<2x16x32xf32, #tpu.memory_space<vmem>>, vector<2x16x32xf32>,
    } else {
    }
    %c8_i32 = arith.constant 8 : i32
    %185 = arith.cmpi eq, %arg0, %c8_i32 : i32
    %186 = arith.extui %185 : i1 to i32
    %c0_i32_81 = arith.constant 0 : i32
    %187 = arith.cmpi ne, %186, %c0_i32_81 : i32
    scf.if %187 {
      %204 = vector.extract_strided_slice %180 {offsets = [0, 0, 0], sizes = [2, 16, 32], strides = [1, 1, 1]} : vector<2x24x32xf32> to vector<2x16x32xf32>
      %c0_88 = arith.constant 0 : index
      %c0_89 = arith.constant 0 : index
      %c0_90 = arith.constant 0 : index
      %205 = vector.load %arg19[%c0_88, %c0_89, %c0_90] : memref<2x16x32xf32, #tpu.memory_space<vmem>>, vector<2x16x32xf32>
      tpu.vector_store %arg19[%c0_88, %c0_89, %c0_90], %204 {strides = array<i32>} : memref<2x16x32xf32, #tpu.memory_space<vmem>>, vector<2x16x32xf32>,
    } else {
    }
    %c11_i32 = arith.constant 11 : i32
    %188 = arith.cmpi eq, %arg0, %c11_i32 : i32
    %189 = arith.extui %188 : i1 to i32
    %c0_i32_82 = arith.constant 0 : i32
    %190 = arith.cmpi ne, %189, %c0_i32_82 : i32
    scf.if %190 {
      %204 = vector.extract_strided_slice %180 {offsets = [0, 0, 0], sizes = [2, 16, 32], strides = [1, 1, 1]} : vector<2x24x32xf32> to vector<2x16x32xf32>
      %c0_88 = arith.constant 0 : index
      %c0_89 = arith.constant 0 : index
      %c0_90 = arith.constant 0 : index
      %205 = vector.load %arg20[%c0_88, %c0_89, %c0_90] : memref<2x16x32xf32, #tpu.memory_space<vmem>>, vector<2x16x32xf32>
      tpu.vector_store %arg20[%c0_88, %c0_89, %c0_90], %204 {strides = array<i32>} : memref<2x16x32xf32, #tpu.memory_space<vmem>>, vector<2x16x32xf32>,
    } else {
    }
    %c3_i32 = arith.constant 3 : i32
    %c0_i32_83 = arith.constant 0 : i32
    %191 = arith.cmpi eq, %c3_i32, %c0_i32_83 : i32
    %c1_i32 = arith.constant 1 : i32
    %192 = arith.select %191, %c1_i32, %c3_i32 : i32
    %193 = arith.remsi %arg0, %192 : i32
    %c0_i32_84 = arith.constant 0 : i32
    %194 = arith.cmpi ne, %193, %c0_i32_84 : i32
    %c0_i32_85 = arith.constant 0 : i32
    %195 = arith.cmpi slt, %193, %c0_i32_85 : i32
    %c0_i32_86 = arith.constant 0 : i32
    %196 = arith.cmpi slt, %192, %c0_i32_86 : i32
    %197 = arith.xori %195, %196 : i1
    %198 = arith.andi %197, %194 : i1
    %199 = arith.addi %193, %192 : i32
    %200 = arith.select %198, %199, %193 : i32
    %c2_i32 = arith.constant 2 : i32
    %201 = arith.cmpi eq, %200, %c2_i32 : i32
    %202 = arith.extui %201 : i1 to i32
    %c0_i32_87 = arith.constant 0 : i32
    %203 = arith.cmpi ne, %202, %c0_i32_87 : i32
    scf.if %203 {
      %c0_88 = arith.constant 0 : index
      %c0_89 = arith.constant 0 : index
      %c0_90 = arith.constant 0 : index
      %204 = vector.load %arg5[%c0_88, %c0_89, %c0_90] : memref<1x1x32xf32, #tpu.memory_space<vmem>>, vector<1x1x32xf32>
      %205 = vector.shape_cast %204 : vector<1x1x32xf32> to vector<1x1x32xf32>
      %206 = vector.broadcast %205 : vector<1x1x32xf32> to vector<2x1x32xf32>
      %c0_91 = arith.constant 0 : index
      %c16 = arith.constant 16 : index
      %c0_92 = arith.constant 0 : index
      %207 = vector.load %arg21[%c0_91, %c16, %c0_92] : memref<2x24x32xf32, #tpu.memory_space<vmem>>, vector<2x1x32xf32>
      tpu.vector_store %arg21[%c0_91, %c16, %c0_92], %206 {strides = array<i32>} : memref<2x24x32xf32, #tpu.memory_space<vmem>>, vector<2x1x32xf32>,
    } else {
    }
    return
  }
  func.func @transform_0(%arg0: i32) -> (i32, i32, i32) {
    %c0_i32 = arith.constant 0 : i32
    %c0_i32_0 = arith.constant 0 : i32
    %c0_i32_1 = arith.constant 0 : i32
    %c0_i32_2 = arith.constant 0 : i32
    return %c0_i32, %c0_i32_0, %c0_i32_1 : i32, i32, i32
  }
  func.func @transform_1(%arg0: i32) -> (i32, i32) {
    %c0_i32 = arith.constant 0 : i32
    %c0_i32_0 = arith.constant 0 : i32
    %c0_i32_1 = arith.constant 0 : i32
    return %c0_i32, %c0_i32_0 : i32, i32
  }
  func.func @transform_2(%arg0: i32) -> (i32, i32) {
    %c0_i32 = arith.constant 0 : i32
    %c0_i32_0 = arith.constant 0 : i32
    %c0_i32_1 = arith.constant 0 : i32
    return %c0_i32, %c0_i32_0 : i32, i32
  }
  func.func @transform_3(%arg0: i32) -> (i32, i32, i32) {
    %c0_i32 = arith.constant 0 : i32
    %c0_i32_0 = arith.constant 0 : i32
    %c0_i32_1 = arith.constant 0 : i32
    %c0_i32_2 = arith.constant 0 : i32
    return %c0_i32, %c0_i32_0, %c0_i32_1 : i32, i32, i32
  }
  func.func @transform_4(%arg0: i32) -> (i32, i32, i32) {
    %c0_i32 = arith.constant 0 : i32
    %c0_i32_0 = arith.constant 0 : i32
    %c0_i32_1 = arith.constant 0 : i32
    %c0_i32_2 = arith.constant 0 : i32
    return %c0_i32, %c0_i32_0, %c0_i32_1 : i32, i32, i32
  }
  func.func @transform_5(%arg0: i32) -> (i32, i32, i32) {
    %c0_i32 = arith.constant 0 : i32
    %c0_i32_0 = arith.constant 0 : i32
    %c0_i32_1 = arith.constant 0 : i32
    return %arg0, %c0_i32, %c0_i32_0 : i32, i32, i32
  }
  func.func @transform_6(%arg0: i32) -> (i32, i32, i32) {
    %c0_i32 = arith.constant 0 : i32
    %c0_i32_0 = arith.constant 0 : i32
    %c0_i32_1 = arith.constant 0 : i32
    return %arg0, %c0_i32, %c0_i32_0 : i32, i32, i32
  }
  func.func @transform_7(%arg0: i32) -> (i32, i32, i32) {
    %c0_i32 = arith.constant 0 : i32
    %c0_i32_0 = arith.constant 0 : i32
    %c0_i32_1 = arith.constant 0 : i32
    return %arg0, %c0_i32, %c0_i32_0 : i32, i32, i32
  }
  func.func @transform_8(%arg0: i32) -> (i32, i32, i32) {
    %c0_i32 = arith.constant 0 : i32
    %c0_i32_0 = arith.constant 0 : i32
    %c0_i32_1 = arith.constant 0 : i32
    return %arg0, %c0_i32, %c0_i32_0 : i32, i32, i32
  }
  func.func @transform_9(%arg0: i32) -> (i32, i32, i32) {
    %c0_i32 = arith.constant 0 : i32
    %c0_i32_0 = arith.constant 0 : i32
    %c0_i32_1 = arith.constant 0 : i32
    return %arg0, %c0_i32, %c0_i32_0 : i32, i32, i32
  }
  func.func @transform_10(%arg0: i32) -> (i32, i32, i32) {
    %c0_i32 = arith.constant 0 : i32
    %c0_i32_0 = arith.constant 0 : i32
    %c0_i32_1 = arith.constant 0 : i32
    return %arg0, %c0_i32, %c0_i32_0 : i32, i32, i32
  }
  func.func @transform_11(%arg0: i32) -> (i32, i32, i32) {
    %c0_i32 = arith.constant 0 : i32
    %c0_i32_0 = arith.constant 0 : i32
    %c0_i32_1 = arith.constant 0 : i32
    return %arg0, %c0_i32, %c0_i32_0 : i32, i32, i32
  }
  func.func @transform_12(%arg0: i32) -> (i32, i32, i32) {
    %c0_i32 = arith.constant 0 : i32
    %c0_i32_0 = arith.constant 0 : i32
    %c0_i32_1 = arith.constant 0 : i32
    return %arg0, %c0_i32, %c0_i32_0 : i32, i32, i32
  }
  func.func @transform_13(%arg0: i32) -> (i32, i32, i32) {
    %c0_i32 = arith.constant 0 : i32
    %c0_i32_0 = arith.constant 0 : i32
    %c0_i32_1 = arith.constant 0 : i32
    return %arg0, %c0_i32, %c0_i32_0 : i32, i32, i32
  }
  func.func @transform_14(%arg0: i32) -> (i32, i32, i32) {
    %c0_i32 = arith.constant 0 : i32
    %c0_i32_0 = arith.constant 0 : i32
    %c0_i32_1 = arith.constant 0 : i32
    return %arg0, %c0_i32, %c0_i32_0 : i32, i32, i32
  }
  func.func @transform_15(%arg0: i32) -> (i32, i32, i32) {
    %c0_i32 = arith.constant 0 : i32
    %c0_i32_0 = arith.constant 0 : i32
    %c0_i32_1 = arith.constant 0 : i32
    return %arg0, %c0_i32, %c0_i32_0 : i32, i32, i32
  }
  func.func @transform_16(%arg0: i32) -> (i32, i32, i32) {
    %c0_i32 = arith.constant 0 : i32
    %c0_i32_0 = arith.constant 0 : i32
    %c0_i32_1 = arith.constant 0 : i32
    return %arg0, %c0_i32, %c0_i32_0 : i32, i32, i32
  }
  func.func @transform_17(%arg0: i32) -> (i32, i32, i32) {
    %c0_i32 = arith.constant 0 : i32
    %c0_i32_0 = arith.constant 0 : i32
    %c0_i32_1 = arith.constant 0 : i32
    %c0_i32_2 = arith.constant 0 : i32
    return %c0_i32, %c0_i32_0, %c0_i32_1 : i32, i32, i32
  }
  func.func @transform_18(%arg0: i32) -> (i32, i32, i32) {
    %c0_i32 = arith.constant 0 : i32
    %c0_i32_0 = arith.constant 0 : i32
    %c0_i32_1 = arith.constant 0 : i32
    %c0_i32_2 = arith.constant 0 : i32
    return %c0_i32, %c0_i32_0, %c0_i32_1 : i32, i32, i32
  }
  func.func @transform_19(%arg0: i32) -> (i32, i32, i32) {
    %c0_i32 = arith.constant 0 : i32
    %c0_i32_0 = arith.constant 0 : i32
    %c0_i32_1 = arith.constant 0 : i32
    %c0_i32_2 = arith.constant 0 : i32
    return %c0_i32, %c0_i32_0, %c0_i32_1 : i32, i32, i32
  }
}

</mosaic_0001>

<bundles_post_ra>
// kernel: vit_forward.1
= control target key start
LH: loop header
LB: loop body
LE: loop exit
PB: predicated region body
PF: predicated region fallthrough
CT: control target
= control target key end

     0   :  { %s5989_s0 = inlined_call_operand.vmem [shape: f32[2,16,48], index: 0, kind: input, shape index: {}]   ;;  %s5990_s1 = inlined_call_operand.vmem [shape: f32[48,32], index: 1, kind: input, shape index: {}]   ;;  %s5991_s2 = inlined_call_operand.vmem [shape: f32[1,32], index: 2, kind: input, shape index: {}]   ;;  %s5992_s3 = inlined_call_operand.vmem [shape: f32[1,16,32], index: 3, kind: input, shape index: {}]   ;;  %s5993_s4 = inlined_call_operand.vmem [shape: f32[1,1,32], index: 4, kind: input, shape index: {}]   ;;  %s5994_s5 = inlined_call_operand.vmem [shape: f32[12,1,32], index: 5, kind: input, shape index: {}]   ;;  %s5995_s6 = inlined_call_operand.vmem [shape: f32[12,1,32], index: 6, kind: input, shape index: {}]   ;;  %s5996_s7 = inlined_call_operand.vmem [shape: f32[12,32,96], index: 7, kind: input, shape index: {}]   ;;  %s5997_s8 = inlined_call_operand.vmem [shape: f32[12,1,96], index: 8, kind: input, shape index: {}]   ;;  %s5998_s9 = inlined_call_operand.vmem [shape: f32[12,32,32], index: 9, kind: input, shape index: {}]   ;;  %s5999_s10 = inlined_call_operand.vmem [shape: f32[12,1,32], index: 10, kind: input, shape index: {}]   ;;  %s6000_s11 = inlined_call_operand.vmem [shape: f32[12,1,32], index: 11, kind: input, shape index: {}]   ;;  %s6001_s12 = inlined_call_operand.vmem [shape: f32[12,1,32], index: 12, kind: input, shape index: {}]   ;;  %s6002_s13 = inlined_call_operand.vmem [shape: f32[12,32,128], index: 13, kind: input, shape index: {}]   ;;  %s6003_s14 = inlined_call_operand.vmem [shape: f32[12,1,128], index: 14, kind: input, shape index: {}]   ;;  %s6004_s15 = inlined_call_operand.vmem [shape: f32[12,128,32], index: 15, kind: input, shape index: {}]   ;;  %s6005_s16 = inlined_call_operand.vmem [shape: f32[12,1,32], index: 16, kind: input, shape index: {}]   ;;  %s6006_s17 = inlined_call_operand.vmem [shape: f32[2,16,32], index: 17, kind: output, shape index: {0}]   ;;  %s6007_s18 = inlined_call_operand.hbm [shape: f32[2,16,32], index: 18, kind: output, shape index: {1}]   ;;  %s6008_s19 = inlined_call_operand.vmem [shape: f32[2,16,32], index: 19, kind: output, shape index: {2}]  }
   0x1   :  { %6017 = sst [smem:[#allocation8_spill]] %s5989_s0 }
   0x2   :  { %6018 = sst [smem:[#allocation9_spill]] %s5990_s1 }
   0x3   :  { %6019 = sst [smem:[#allocation10_spill]] %s5991_s2 }
   0x4   :  { %6020 = sst [smem:[#allocation11_spill]] %s5992_s3 }
   0x5   :  { %6021 = sst [smem:[#allocation12_spill]] %s5996_s7 }
   0x6   :  { %6022 = sst [smem:[#allocation13_spill]] %s5998_s9 }
   0x7   :  { %6023 = sst [smem:[#allocation14_spill]] %s6006_s17 }
   0x8   :  { %6024 = sst [smem:[#allocation15_spill]] %s6007_s18 }
   0x9   :  { %6025 = sst [smem:[#allocation16_spill]] %s6008_s19 }
   0xa   :  { %25 = vsyncpa [#allocation4], 0  ;;  %s5070_s0 = smov 0  }
   0xb LB: > { %6026 = sst [smem:[#allocation6_spill]] %s4947_s0  ;;  %s5076_s30 = sadd.s32 4294967295, %s4947_s0   ;;  %s4947_s0 = sphi %s5070_s0, %s31_s0  }
   0xc   : > { %p3889_p0 = scmp.ge.s32.totalorder %s4947_s0, 1  ;;  %p622_p1 = scmp.lt.s32.totalorder %s4947_s0, 13 }
   0xe   : > { %p623_p2 = pnand %p3889_p0, %p622_p1 }
  0x10   : > { %626 = sbr.rel (%p623_p2) target bundleno = 4639 (0x121f), region = 88 }
  0x17   : > { %p712_p3 = scmp.lt.s32.totalorder %s5076_s30, 11  ;;  %s6027_s7 = sld [smem:[#allocation12_spill]] }
  0x18   : > { %s6028_s9 = sld [smem:[#allocation13_spill]]  ;;  %p3898_p4 = scmp.ne.s32.totalorder %s5076_s30, 0 }
  0x19   : > { %s5082_s20 = scalar_select %p712_p3, %s5076_s30, 11 }
  0x1a   : > { %759 = sbr.rel (%p3898_p4) target bundleno = 265 (0x109), region = 92  ;;  %s6030_s28 = sld [smem:[#allocation9_spill]] (!%p3898_p4)  ;;  %vm770_vm0 = vcmask (!%p3898_p4), 392192   ;;  %vm885_vm1 = vcmask (!%p3898_p4), 261120   ;;  %v4949_v13 = vmov (!%p3898_p4), 0.0   ;;  %vm897_vm2 = vcmask (!%p3898_p4), 253952  }
  0x1b   : > { %s4013_s25 = sshll.u32 %s5082_s20, 5  ;;  %s736_s17 = scalar_lea.vmem %s6000_s11, %s5082_s20  ;;  %887 = vst.msk [vmem:[#allocation2 + $0x8] sm:$0xff] (!%p3898_p4), %vm885_vm1, %v4949_v13  ;;  %888 = vst.msk [vmem:[#allocation2 + $0x10] sm:$0xff] (!%p3898_p4), %vm885_vm1, %v4949_v13  ;;  %v896_v14 = vld [vmem:[%s5993_s4] sm:$0x1] (!%p3898_p4) }
  0x1c   : > { %s739_s27 = scalar_lea.vmem %s6001_s12, %s5082_s20  ;;  %s755_s3 = scalar_lea.vmem %s6005_s16, %s5082_s20  ;;  %891 = vst.msk [vmem:[#allocation2 + $0x28] sm:$0xff] (!%p3898_p4), %vm885_vm1, %v4949_v13  ;;  %886 = vst.msk [vmem:[#allocation2] sm:$0xff] (!%p3898_p4), %vm885_vm1, %v4949_v13 }
  0x1d   : > { %s5100_s21 = scalar_lea.vmem %s6027_s7, %s4013_s25  ;;  %s5122_s7 = scalar_lea.vmem %s6002_s13, %s4013_s25  ;;  %889 = vst.msk [vmem:[#allocation2 + $0x18] sm:$0xff] (!%p3898_p4), %vm885_vm1, %v4949_v13  ;;  %890 = vst.msk [vmem:[#allocation2 + $0x20] sm:$0xff] (!%p3898_p4), %vm885_vm1, %v4949_v13 }
  0x1e   : > { %s5105_s18 = scalar_lea.vmem %s6028_s9, %s4013_s25  ;;  %s6031_s9 = sld [smem:[#allocation8_spill]] (!%p3898_p4)  ;;  %898 = vst.msk [vmem:[#allocation2 + $0x10] sm:$0x1] (!%p3898_p4), %vm897_vm2, %v896_v14  ;;  %899 = vst.msk [vmem:[#allocation2 + $0x28] sm:$0x1] (!%p3898_p4), %vm897_vm2, %v896_v14 }
  0x1f   : > { %6029 = sst [smem:[#allocation7_spill]] %s5105_s18  ;;  %s4016_s18 = sshll.u32 %s5082_s20, 7 }
  0x20   : > { %s5132_s2 = scalar_lea.vmem %s6004_s15, %s4016_s18  ;;  %v764_v0 = vld [vmem:[%s6030_s28] sm:$0xff] (!%p3898_p4)  ;;  %v765_v1 = vld [vmem:[%s6030_s28 + $0x8] sm:$0xff] (!%p3898_p4)  ;;  %v766_v2 = vld [vmem:[%s6030_s28 + $0x10] sm:$0xff] (!%p3898_p4)  ;;  %s6032_s0 = sld [smem:[#allocation10_spill]] (!%p3898_p4) }
  0x21   : > { %v4525_v3 = vpack.c.bf16 %v765_v1, %v764_v0  ;;  %v767_v4 = vld [vmem:[%s6030_s28 + $0x18] sm:$0xff]  ;;  %v768_v6 = vld [vmem:[%s6030_s28 + $0x20] sm:$0xff]  ;;  %v769_v7 = vld [vmem:[%s6030_s28 + $0x28] sm:$0xff]  ;;  %s6033_s19 = sld [smem:[#allocation11_spill]] }
  0x22   : > { %v4529_v5 = vpack.c.bf16 %v767_v4, %v766_v2  ;;  %v4533_v10 = vpack.c.bf16 %v769_v7, %v768_v6 }
  0x23   : > { %4526 = vmatprep.subr.bf16.mxu0 %v4525_v3  ;;  %4649 = vmatprep.subr.bf16.mxu1 %v4525_v3 }
  0x24   : > { %v760_v8 = vld [vmem:[%s6031_s9] sm:$0xff]  ;;  %v762_v9 = vld [vmem:[%s6031_s9 + $0x10] sm:$0xff]  ;;  %4528 = vmatpush3.bf16.msra.mxu0 %v4525_v3  ;;  %4652 = vmatpush3.bf16.msra.mxu1 %v4525_v3  ;;  %v761_v11 = vld [vmem:[%s6031_s9 + $0x8] sm:$0xff] }
  0x25   : > { %4530 = vmatprep.subr.bf16.mxu0 %v4529_v5  ;;  %4650 = vmatprep.subr.bf16.mxu1 %v4529_v5  ;;  %v763_v12 = vld [vmem:[%s6031_s9 + $0x18] sm:$0xff] }
  0x26   : > { %4187 = vmatprep.mubr.msk.f32.mxu0 %vm770_vm0, %v760_v8  ;;  %4190 = vmatprep.mubr.msk.f32.mxu1 %vm770_vm0, %v762_v9  ;;  %v3903_v15 = vld [vmem:[%s6032_s0] ss:$0 sm:$0xff] }
  0x27   : > { %v880_v17 = vld [vmem:[%s6033_s19 + $0x8] sm:$0xff]  ;;  %v879_v22 = vld [vmem:[%s6033_s19] sm:$0xff] }
  0x28   : > { %4532 = vmatpush3.bf16.msra.mxu0 %v4529_v5  ;;  %4653 = vmatpush3.bf16.msra.mxu1 %v4529_v5 }
  0x29   : > { %4534 = vmatprep.subr.bf16.mxu0 %v4533_v10  ;;  %4651 = vmatprep.subr.bf16.mxu1 %v4533_v10 }
  0x2c   : > { %4536 = vmatpush3.bf16.msra.mxu0 %v4533_v10  ;;  %4654 = vmatpush3.bf16.msra.mxu1 %v4533_v10 }
  0x2f   : > { %4188 = vmatmul.mubr.msk.f32.vlgmr.msra.gmra.mrb[0].mxu0 %vm770_vm0, %v761_v11  ;;  %4191 = vmatmul.mubr.msk.f32.vlgmr.msra.gmra.mrb[0].mxu1 %vm770_vm0, %v763_v12 }
 0x102   : > { %v4189_v16 = vpop.f32.mrb[0].mxu0  ;;  %v4192_v18 = vpop.f32.mrb[0].mxu1 }
 0x103   : > { %v876_v19 = vadd.f32 %v4189_v16, %v3903_v15  ;;  %v878_v20 = vadd.f32 %v4192_v18, %v3903_v15  ;;  %v849_v21 = vpop.f32.mrb[1].mxu0  ;;  %v859_v23 = vpop.f32.mrb[1].mxu1 }
 0x104   : > { %v875_v24 = vadd.f32 %v3903_v15, %v849_v21  ;;  %v877_v25 = vadd.f32 %v3903_v15, %v859_v23 }
 0x105   : > { %v882_v26 = vadd.f32 %v880_v17, %v876_v19  ;;  %v884_v27 = vadd.f32 %v880_v17, %v878_v20 }
 0x106   : > { %v881_v28 = vadd.f32 %v879_v22, %v875_v24  ;;  %v883_v29 = vadd.f32 %v879_v22, %v877_v25 }
 0x107   : > { %893 = vst.msk [vmem:[#allocation2 + $0x8] sm:$0xff] %vm885_vm1, %v882_v26  ;;  %895 = vst.msk [vmem:[#allocation2 + $0x20] sm:$0xff] %vm885_vm1, %v884_v27 }
 0x108   : > { %892 = vst.msk [vmem:[#allocation2] sm:$0xff] %vm885_vm1, %v881_v28  ;;  %894 = vst.msk [vmem:[#allocation2 + $0x18] sm:$0xff] %vm885_vm1, %v883_v29 }
 0x109 PF: > { %vm906_vm3 = vcmask 261120   ;;  %v1012_v8 = vld [vmem:[%s5100_s21] sm:$0xff]  ;;  %v1013_v9 = vld [vmem:[%s5100_s21 + $0x8] sm:$0xff]  ;;  %v1014_v11 = vld [vmem:[%s5100_s21 + $0x10] sm:$0xff]  ;;  %s6034_s26 = scalar_lea.vmem %s5994_s5, %s5082_s20  ;;  %s6035_s0 = scalar_lea.vmem %s5995_s6, %s5082_s20  ;;  %vm4952_vm4 = vmmov 0   ;;  %vm1149_vm5 = vcmask 64512  }
 0x10a   : > { %v4537_v10 = vpack.c.bf16 %v1013_v9, %v1012_v8  ;;  %v1015_v12 = vld [vmem:[%s5100_s21 + $0x18] sm:$0xff]  ;;  %s6036_s22 = scalar_lea.vmem %s5997_s8, %s5082_s20  ;;  %s4951_s24 = smov 96   ;;  %vm5298_vm6 = vmpackc.low %vm1149_vm5, %vm1149_vm5  ;;  %vm1355_vm8 = vcmask 195584   ;;  %vm3142_vm9 = vcmask 130048  }
 0x10b   : > { %v4541_v13 = vpack.c.bf16 %v1015_v12, %v1014_v11  ;;  %s4954_s21 = smov 64   ;;  %s4956_s23 = smov 88  }
 0x10c   : > { %4538 = vmatprep.subr.bf16.mxu0 %v4537_v10  ;;  %s4958_s25 = smov 56   ;;  %s4959_s29 = smov 80  }
 0x10d   : > { %v902_v31 = vld [vmem:[#allocation2 + $0x10] sm:$0xff]  ;;  %v905_v39 = vld [vmem:[#allocation2 + $0x28] sm:$0xff]  ;;  %4540 = vmatpush3.bf16.msra.mxu0 %v4537_v10  ;;  %s4961_s1 = smov 48   ;;  %s4962_s18 = smov 72  }
 0x10e   : > { %v901_v32 = vld [vmem:[#allocation2 + $0x8] sm:$0xff]  ;;  %v913_v34 = vsel %vm906_vm3, %v902_v31, 0.0  ;;  %v904_v38 = vld [vmem:[#allocation2 + $0x20] sm:$0xff]  ;;  %v922_v41 = vsel %vm906_vm3, %v905_v39, 0.0  ;;  %4542 = vmatprep.subr.bf16.mxu0 %v4541_v13  ;;  %p4002_p5 = scmp.ne.s32.totalorder %s5076_s30, 5 }
 0x10f   : > { %v900_v30 = vld [vmem:[#allocation2] sm:$0xff]  ;;  %v903_v35 = vld [vmem:[#allocation2 + $0x18] sm:$0xff]  ;;  %914 = vadd.xlane.f32.xlu1 %v913_v34  ;;  %v910_v36 = vsel %vm906_vm3, %v901_v32, 0.0  ;;  %v919_v40 = vsel %vm906_vm3, %v904_v38, 0.0 }
 0x110   : > { %v907_v33 = vsel %vm906_vm3, %v900_v30, 0.0  ;;  %v916_v37 = vsel %vm906_vm3, %v903_v35, 0.0 }
 0x111   : > { %908 = vadd.xlane.f32.xlu0 %v907_v33  ;;  %4544 = vmatpush3.bf16.msra.mxu0 %v4541_v13  ;;  %v3904_v33 = vld [vmem:[%s6034_s26] ss:$0 sm:$0xff]  ;;  %s4957_s26 = smov 120  }
 0x113   : > { %917 = vadd.xlane.f32.xlu1 %v916_v37 }
 0x115   : > { %911 = vadd.xlane.f32.xlu0 %v910_v36 }
 0x117   : > { %923 = vadd.xlane.f32.xlu1 %v922_v41 }
 0x119   : > { %920 = vadd.xlane.f32.xlu0 %v919_v40 }
 0x19c   : > { %v915_v43 = vpop.xlane.xlu1 %914 }
 0x19d   : > { %v928_v45 = vmul.f32 0.03125, %v915_v43 }
 0x19e   : > { %v909_v42 = vpop.xlane.xlu0 %908 }
 0x19f   : > { %v926_v44 = vmul.f32 0.03125, %v909_v42  ;;  %v5203_v47 = vsub.f32 %v902_v31, %v928_v45 }
 0x1a0   : > { %v918_v49 = vpop.xlane.xlu1 %917 }
 0x1a1   : > { %v5201_v46 = vsub.f32 %v900_v30, %v926_v44  ;;  %v929_v51 = vmul.f32 0.03125, %v918_v49  ;;  %v940_v53 = vmul.f32 %v5203_v47, %v5203_v47 }
 0x1a2   : > { %v912_v48 = vpop.xlane.xlu0 %911 }
 0x1a3   : > { %v927_v50 = vmul.f32 0.03125, %v912_v48  ;;  %v938_v52 = vmul.f32 %v5201_v46, %v5201_v46  ;;  %v5211_v55 = vsub.f32 %v903_v35, %v929_v51  ;;  %v950_v59 = vsel %vm906_vm3, %v940_v53, 0.0  ;;  %v3905_v35 = vld [vmem:[%s6035_s0] ss:$0 sm:$0xff]  ;;  %s4960_s0 = smov 112  }
 0x1a4   : > { %v924_v58 = vpop.xlane.xlu1 %923 }
 0x1a5   : > { %v5209_v54 = vsub.f32 %v901_v32, %v927_v50  ;;  %v944_v56 = vsel %vm906_vm3, %v938_v52, 0.0  ;;  %v931_v61 = vmul.f32 0.03125, %v924_v58  ;;  %v941_v63 = vmul.f32 %v5211_v55, %v5211_v55 }
 0x1a6   : > { %945 = vadd.xlane.f32.xlu0 %v944_v56  ;;  %v921_v57 = vpop.xlane.xlu0 %920  ;;  %v4950_v58 = vmov 0.0|0.0  }
 0x1a7   : > { %v930_v60 = vmul.f32 0.03125, %v921_v57  ;;  %v939_v62 = vmul.f32 %v5209_v54, %v5209_v54  ;;  %v5221_v1 = vsub.f32 %v905_v39, %v931_v61  ;;  %v953_v3 = vsel %vm906_vm3, %v941_v63, 0.0  ;;  %4545 = vmatprep.subr.bf16.mxu0 %v4950_v58  ;;  %4553 = vmatprep.subr.bf16.mxu1 %v4950_v58 }
 0x1a9   : > { %v5219_v0 = vsub.f32 %v904_v38, %v930_v60  ;;  %v947_v2 = vsel %vm906_vm3, %v939_v62, 0.0  ;;  %v943_v5 = vmul.f32 %v5221_v1, %v5221_v1 }
 0x1aa   : > { %951 = vadd.xlane.f32.xlu0 %v950_v59  ;;  %948 = vadd.xlane.f32.xlu1 %v947_v2  ;;  %v3906_v59 = vld [vmem:[%s6036_s22] ss:$0 sm:$0xff]  ;;  %s4963_s22 = smov 104  }
 0x1ab   : > { %v942_v4 = vmul.f32 %v5219_v0, %v5219_v0  ;;  %v959_v7 = vsel %vm906_vm3, %v943_v5, 0.0 }
 0x1ad   : > { %v956_v6 = vsel %vm906_vm3, %v942_v4, 0.0  ;;  %v4953_v4 = vmov 0.0  }
 0x1ae   : > { %954 = vadd.xlane.f32.xlu1 %v953_v3  ;;  %957 = vadd.xlane.f32.xlu0 %v956_v6 }
 0x1af   : > { %4246 = vmatprep.mubr.msk.f32.mxu1 %vm4952_vm4, %v4953_v4 }
 0x1b2   : > { %960 = vadd.xlane.f32.xlu1 %v959_v7 }
 0x233   : > { %v946_v14 = vpop.xlane.xlu0 %945 }
 0x234   : > { %v962_v15 = vmul.f32 0.03125, %v946_v14 }
 0x236   : > { %v968_v16 = vadd.f32 1e-05, %v962_v15 }
 0x237   : > { %v949_v17 = vpop.xlane.xlu1 %948  ;;  %v952_v18 = vpop.xlane.xlu0 %951 }
 0x238   : > { %4771 = vrsqrt.f32 %v968_v16  ;;  %v963_v19 = vmul.f32 0.03125, %v949_v17  ;;  %v964_v20 = vmul.f32 0.03125, %v952_v18 }
 0x23a   : > { %v969_v21 = vadd.f32 1e-05, %v963_v19  ;;  %v970_v22 = vadd.f32 1e-05, %v964_v20 }
 0x23b   : > { %v955_v23 = vpop.xlane.xlu1 %954  ;;  %v958_v24 = vpop.xlane.xlu0 %957 }
 0x23c   : > { %4773 = vrsqrt.f32 %v969_v21  ;;  %v965_v25 = vmul.f32 0.03125, %v955_v23  ;;  %v966_v26 = vmul.f32 0.03125, %v958_v24 }
 0x23d   : > { %4775 = vrsqrt.f32 %v970_v22 }
 0x23e   : > { %v971_v27 = vadd.f32 1e-05, %v965_v25  ;;  %v972_v28 = vadd.f32 1e-05, %v966_v26 }
 0x23f   : > { %v961_v29 = vpop.xlane.xlu1 %960 }
 0x240   : > { %4777 = vrsqrt.f32 %v971_v27  ;;  %v967_v30 = vmul.f32 0.03125, %v961_v29 }
 0x241   : > { %4779 = vrsqrt.f32 %v972_v28 }
 0x242   : > { %v4772_v31 = vpop.eup %4771  ;;  %v973_v32 = vadd.f32 1e-05, %v967_v30 }
 0x243   : > { %v980_v34 = vmul.f32 %v4772_v31, %v5201_v46 }
 0x244   : > { %4781 = vrsqrt.f32 %v973_v32  ;;  %v1136_v32 = vlaneseq }
 0x245   : > { %v993_v36 = vmul.f32 %v3904_v33, %v980_v34 }
 0x246   : > { %v4774_v37 = vpop.eup %4773 }
 0x247   : > { %v4776_v38 = vpop.eup %4775  ;;  %v1006_v39 = vadd.f32 %v3905_v35, %v993_v36  ;;  %v981_v40 = vmul.f32 %v4774_v37, %v5209_v54 }
 0x248   : > { %v982_v41 = vmul.f32 %v4776_v38, %v5203_v47 }
 0x249   : > { %4201 = vmatprep.mubr.msk.f32.mxu0 %vm906_vm3, %v1006_v39  ;;  %v994_v42 = vmul.f32 %v3904_v33, %v981_v40 }
 0x24a   : > { %v4778_v43 = vpop.eup %4777  ;;  %v995_v44 = vmul.f32 %v3904_v33, %v982_v41 }
 0x24b   : > { %v4780_v45 = vpop.eup %4779  ;;  %v1007_v46 = vadd.f32 %v3905_v35, %v994_v42  ;;  %v983_v48 = vmul.f32 %v4778_v43, %v5211_v55 }
 0x24c   : > { %v1008_v49 = vadd.f32 %v3905_v35, %v995_v44  ;;  %v984_v50 = vmul.f32 %v4780_v45, %v5219_v0 }
 0x24d   : > { %4202 = vmatmul.mubr.msk.f32.vlgmr.msra.gmra.mrb[0].mxu0 %vm906_vm3, %v1007_v46  ;;  %v996_v51 = vmul.f32 %v3904_v33, %v983_v48 }
 0x24e   : > { %v4782_v52 = vpop.eup %4781  ;;  %4204 = vmatprep.mubr.msk.f32.mxu0 %vm906_vm3, %v1008_v49  ;;  %v997_v47 = vmul.f32 %v3904_v33, %v984_v50 }
 0x24f   : > { %v1009_v53 = vadd.f32 %v3905_v35, %v996_v51  ;;  %v985_v54 = vmul.f32 %v4782_v52, %v5221_v1 }
 0x250   : > { %v1010_v56 = vadd.f32 %v3905_v35, %v997_v47 }
 0x251   : > { %4205 = vmatmul.mubr.msk.f32.gmra.mrb[2].mxu0 %vm906_vm3, %v1009_v53  ;;  %v998_v57 = vmul.f32 %v3904_v33, %v985_v54  ;;  %v1137_v33 = vand.u32 127, %v1136_v32 }
 0x252   : > { %4207 = vmatprep.mubr.msk.f32.mxu0 %vm906_vm3, %v1010_v56 }
 0x253   : > { %v1011_v55 = vadd.f32 %v3905_v35, %v998_v57  ;;  %vm1138_vm7 = vcmp.lt.s32.totalorder %v1137_v33, 17  ;;  %v4955_v35 = vmov -1e+30  }
 0x254   : > { %v5340_v36 = vsel %vm1138_vm7, 0.0, %v4955_v35 }
 0x255   : > { %4208 = vmatmul.mubr.msk.f32.gmra.mrb[4].mxu0 %vm906_vm3, %v1011_v55 }
 0x256   : > { %4216 = vmatprep.mubr.msk.f32.mxu0 %vm4952_vm4, %v4953_v4 }
 0x320   : > { %v4203_v60 = vpop.f32.mrb[0].mxu0 }
 0x321   : > { %v5264_v61 = vadd.f32 %v4203_v60, %v3906_v59  ;;  %v1107_v62 = vpop.f32.mrb[1].mxu0 }
 0x322   : > { %v5266_v63 = vadd.f32 %v3906_v59, %v1107_v62 }
 0x324   : > { %v4206_v0 = vpop.f32.mrb[2].mxu0  ;;  %v5270_v1 = vpack.i.bf16 %v5264_v61, %v5266_v63 }
 0x325   : > { %v1117_v2 = vpop.f32.mrb[3].mxu0  ;;  %v5280_v7 = vadd.f32 %v4206_v0, %v3906_v59 }
 0x326   : > { %v5272_v3 = vadd.f32 %v3906_v59, %v1117_v2  ;;  %4692 = vrot.lane.b32.xlu0 %v5270_v1, %s4951_s24 }
 0x328   : > { %1147 = vrot.lane.b32.xlu1 %v5272_v3, %s4951_s24  ;;  %v4209_v5 = vpop.f32.mrb[4].mxu0 }
 0x329   : > { %v1127_v6 = vpop.f32.mrb[5].mxu0  ;;  %v5290_v10 = vadd.f32 %v4209_v5, %v3906_v59 }
 0x32a   : > { %v5282_v8 = vadd.f32 %v3906_v59, %v1127_v6  ;;  %4702 = vrot.lane.b32.xlu0 %v5270_v1, %s4954_s21 }
 0x32c   : > { %v5287_v9 = vpack.i.bf16 %v5282_v8, %v5280_v7 }
 0x32e   : > { %4697 = vrot.lane.b32.xlu1 %v5287_v9, %s4951_s24 }
 0x332   : > { %1249 = vrot.lane.b32.xlu1 %v5290_v10, %s4951_s24  ;;  %s4964_s24 = smov 40  }
 0x336   : > { %1426 = vrot.lane.b32.xlu1 %v5272_v3, %s4954_s21 }
 0x33a   : > { %1524 = vrot.lane.b32.xlu1 %v5290_v10, %s4954_s21 }
 0x33e   : > { %4707 = vrot.lane.b32.xlu1 %v5287_v9, %s4954_s21  ;;  %s4965_s21 = smov 8  }
 0x398   : > { %v4693_v11 = vpop.permute.xlu0 %4692 }
 0x399   : > { %v4695_v12 = vunpack.i.h.bf16 %v4693_v11  ;;  %v4694_v13 = vunpack.i.l.bf16 %v4693_v11 }
 0x39a   : > { %v1148_v16 = vpop.permute.xlu1 %1147 }
 0x39b   : > { %v4546_v15 = vpack.c.bf16 %v4695_v12, %v4694_v13 }
 0x39c   : > { %v4703_v17 = vpop.permute.xlu0 %4702 }
 0x39d   : > { %4548 = vmatpush3.bf16.xpose.msk.msra.mxu0 %vm5298_vm6, %v4546_v15  ;;  %v4705_v18 = vunpack.i.h.bf16 %v4703_v17  ;;  %v4704_v19 = vunpack.i.l.bf16 %v4703_v17 }
 0x39e   : > { %4214 = vmatprep.subr.mxu0 %v4953_v4 }
 0x39f   : > { %v4554_v20 = vpack.c.bf16 %v4705_v18, %v4704_v19 }
 0x3a0   : > { %v4698_v21 = vpop.permute.xlu1 %4697 }
 0x3a1   : > { %4555 = vmatpush3.bf16.msra.mxu1 %v4554_v20  ;;  %v4700_v22 = vunpack.i.h.bf16 %v4698_v21  ;;  %v4699_v23 = vunpack.i.l.bf16 %v4698_v21 }
 0x3a2   : > { %4244 = vmatprep.subr.mxu1 %v4953_v4 }
 0x3a3   : > { %v4550_v25 = vpack.c.bf16 %v4700_v22, %v4699_v23 }
 0x3a4   : > { %v1250_v24 = vpop.permute.xlu1 %1249 }
 0x3a5   : > { %4215 = vmatpush3.xpose.msk.msra.mxu0 %vm1149_vm5, %v1148_v16 }
 0x3a6   : > { %4549 = vmatprep.subr.bf16.mxu0 %v4950_v58 }
 0x3a8   : > { %v1427_v26 = vpop.permute.xlu1 %1426  ;;  %4217 = vmatmul.mubr.msk.f32.vlgmr.msra.gmra.mrb[6].mxu0 %vm1149_vm5, %v5266_v63 }
 0x3a9   : > { %4552 = vmatpush3.bf16.xpose.msk.msra.mxu0 %vm5298_vm6, %v4550_v25  ;;  %4245 = vmatpush3.msra.mxu1 %v1427_v26 }
 0x3aa   : > { %4219 = vmatprep.mubr.msk.f32.mxu0 %vm4952_vm4, %v4953_v4  ;;  %4229 = vmatprep.subr.mxu0 %v4953_v4 }
 0x3ab   : > { %4559 = vmatprep.subr.bf16.mxu1 %v4950_v58 }
 0x3ac   : > { %v1525_v27 = vpop.permute.xlu1 %1524  ;;  %4220 = vmatmul.mubr.msk.f32.gmra.mrb[8].mxu0 %vm1149_vm5, %v5264_v61 }
 0x3ad   : > { %4222 = vmatprep.mubr.msk.f32.mxu0 %vm4952_vm4, %v4953_v4 }
 0x3b0   : > { %v4708_v28 = vpop.permute.xlu1 %4707  ;;  %4223 = vmatmul.mubr.msk.f32.gmra.mrb[10].mxu0 %vm1149_vm5, %v5272_v3 }
 0x3b1   : > { %v4710_v29 = vunpack.i.h.bf16 %v4708_v28  ;;  %v4709_v30 = vunpack.i.l.bf16 %v4708_v28  ;;  %4230 = vmatpush3.xpose.msk.msra.mxu0 %vm1149_vm5, %v1250_v24  ;;  %4231 = vmatprep.mubr.msk.f32.mxu0 %vm4952_vm4, %v4953_v4 }
 0x3b2   : > { %4556 = vmatprep.subr.bf16.mxu0 %v4950_v58 }
 0x3b3   : > { %v4557_v31 = vpack.c.bf16 %v4710_v29, %v4709_v30 }
 0x3b4   : > { %4232 = vmatmul.mubr.msk.f32.vlgmr.msra.gmra.mrb[12].mxu0 %vm1149_vm5, %v5280_v7 }
 0x3b5   : > { %4558 = vmatpush3.bf16.msra.mxu0 %v4557_v31  ;;  %4234 = vmatprep.mubr.msk.f32.mxu0 %vm4952_vm4, %v4953_v4 }
 0x3b6   : > { %4259 = vmatprep.subr.mxu0 %v4953_v4 }
 0x3b8   : > { %4235 = vmatmul.mubr.msk.f32.gmra.mrb[14].mxu0 %vm1149_vm5, %v5282_v8 }
 0x3b9   : > { %4260 = vmatpush3.msra.mxu0 %v1525_v27  ;;  %4237 = vmatprep.mubr.msk.f32.mxu0 %vm4952_vm4, %v4953_v4 }
 0x3ba   : > { %4563 = vmatprep.subr.bf16.mxu0 %v4950_v58 }
 0x3bc   : > { %4238 = vmatmul.mubr.msk.f32.gmra.mrb[16].mxu0 %vm1149_vm5, %v5290_v10 }
 0x3bd   : > { %4261 = vmatprep.mubr.msk.f32.mxu0 %vm4952_vm4, %v4953_v4 }
 0x47b   : > { %v1228_v34 = vpop.f32.mrb[6].mxu0 }
 0x47c   : > { %v1343_v37 = vmul.f32 0.35355338, %v1228_v34  ;;  %v4218_v38 = vpop.f32.mrb[7].mxu0 }
 0x47e   : > { %v1349_v39 = vadd.f32 %v1343_v37, %v5340_v36 }
 0x47f   : > { %v1233_v40 = vpop.f32.mrb[8].mxu0 }
 0x480   : > { %v1344_v41 = vmul.f32 0.35355338, %v1233_v40  ;;  %v4221_v42 = vpop.f32.mrb[9].mxu0  ;;  %v1356_v43 = vsel %vm1355_vm8, %v1349_v39, -inf }
 0x481   : > { %1357 = vmax.xlane.f32.xlu0 %v1356_v43 }
 0x482   : > { %v1350_v44 = vadd.f32 %v1344_v41, %v5340_v36 }
 0x483   : > { %v1238_v45 = vpop.f32.mrb[10].mxu0 }
 0x484   : > { %v1345_v46 = vmul.f32 0.35355338, %v1238_v45  ;;  %v4224_v48 = vpop.f32.mrb[11].mxu0  ;;  %v1359_v49 = vsel %vm1355_vm8, %v1350_v44, -inf }
 0x485   : > { %1360 = vmax.xlane.f32.xlu1 %v1359_v49 }
 0x486   : > { %v1351_v50 = vadd.f32 %v1345_v46, %v5340_v36 }
 0x487   : > { %v1329_v51 = vpop.f32.mrb[12].mxu0 }
 0x488   : > { %v1346_v52 = vmul.f32 0.35355338, %v1329_v51  ;;  %v4233_v47 = vpop.f32.mrb[13].mxu0  ;;  %v1362_v53 = vsel %vm1355_vm8, %v1351_v50, -inf }
 0x489   : > { %1363 = vmax.xlane.f32.xlu0 %v1362_v53 }
 0x48a   : > { %v1352_v54 = vadd.f32 %v1346_v52, %v5340_v36 }
 0x48b   : > { %v1334_v56 = vpop.f32.mrb[14].mxu0 }
 0x48c   : > { %v1347_v57 = vmul.f32 0.35355338, %v1334_v56  ;;  %v4236_v55 = vpop.f32.mrb[15].mxu0  ;;  %v1365_v59 = vsel %vm1355_vm8, %v1352_v54, -inf }
 0x48d   : > { %1366 = vmax.xlane.f32.xlu0 %v1365_v59 }
 0x48e   : > { %v1353_v60 = vadd.f32 %v1347_v57, %v5340_v36 }
 0x48f   : > { %v1339_v62 = vpop.f32.mrb[16].mxu0 }
 0x490   : > { %v4239_v0 = vpop.f32.mrb[17].mxu0  ;;  %v1368_v2 = vsel %vm1355_vm8, %v1353_v60, -inf  ;;  %v1348_v5 = vmul.f32 0.35355338, %v1339_v62 }
 0x491   : > { %1369 = vmax.xlane.f32.xlu0 %v1368_v2 }
 0x492   : > { %v1354_v6 = vadd.f32 %v1348_v5, %v5340_v36 }
 0x494   : > { %v1371_v11 = vsel %vm1355_vm8, %v1354_v6, -inf }
 0x496   : > { %4717 = vrot.lane.b32.xlu1 %v5287_v9, %s4956_s23 }
 0x4a7   : > { %4712 = vrot.lane.b32.xlu0 %v5270_v1, %s4956_s23 }
 0x4ba   : > { %1372 = vmax.xlane.f32.xlu1 %v1371_v11 }
 0x4cb   : > { %1618 = vrot.lane.b32.xlu1 %v5266_v63, %s4957_s26 }
 0x50e   : > { %v1358_v12 = vpop.xlane.xlu0 %1357 }
 0x50f   : > { %v1374_v13 = vsub.f32 %v1349_v39, %v1358_v12 }
 0x511   : > { %v1380_v15 = vmul.f32 1.442695, %v1374_v13 }
 0x512   : > { %v1361_v16 = vpop.xlane.xlu1 %1360 }
 0x513   : > { %4783 = vpow2.f32 %v1380_v15  ;;  %v1375_v17 = vsub.f32 %v1350_v44, %v1361_v16 }
 0x515   : > { %v1382_v18 = vmul.f32 1.442695, %v1375_v17 }
 0x516   : > { %v1364_v19 = vpop.xlane.xlu0 %1363  ;;  %v5367_v33 = vpop.permute.xlu1 %4717 }
 0x517   : > { %4785 = vpow2.f32 %v1382_v18  ;;  %v1376_v20 = vsub.f32 %v1351_v50, %v1364_v19  ;;  %v4720_v11 = vunpack.i.h.bf16 %v5367_v33  ;;  %v4719_v12 = vunpack.i.l.bf16 %v5367_v33 }
 0x519   : > { %v1384_v21 = vmul.f32 1.442695, %v1376_v20  ;;  %v4564_v18 = vpack.c.bf16 %v4720_v11, %v4719_v12 }
 0x51a   : > { %v1367_v28 = vpop.xlane.xlu0 %1366 }
 0x51b   : > { %4787 = vpow2.f32 %v1384_v21  ;;  %v1377_v29 = vsub.f32 %v1352_v54, %v1367_v28 }
 0x51d   : > { %v4784_v22 = vpop.eup %4783  ;;  %v1386_v31 = vmul.f32 1.442695, %v1377_v29 }
 0x51e   : > { %v1392_v23 = vsel %vm1355_vm8, %v4784_v22, 0.0  ;;  %v1370_v30 = vpop.xlane.xlu0 %1369 }
 0x51f   : > { %1393 = vadd.xlane.f32.xlu0 %v1392_v23  ;;  %v1378_v32 = vsub.f32 %v1353_v60, %v1370_v30  ;;  %4789 = vpow2.f32 %v1386_v31 }
 0x521   : > { %v4786_v24 = vpop.eup %4785  ;;  %v1388_v34 = vmul.f32 1.442695, %v1378_v32 }
 0x522   : > { %v1395_v25 = vsel %vm1355_vm8, %v4786_v24, 0.0  ;;  %v4713_v45 = vpop.permute.xlu0 %4712 }
 0x523   : > { %1396 = vadd.xlane.f32.xlu1 %v1395_v25  ;;  %4791 = vpow2.f32 %v1388_v34  ;;  %v4715_v51 = vunpack.i.h.bf16 %v4713_v45  ;;  %v4714_v52 = vunpack.i.l.bf16 %v4713_v45 }
 0x525   : > { %v4788_v26 = vpop.eup %4787  ;;  %v4560_v54 = vpack.c.bf16 %v4715_v51, %v4714_v52 }
 0x526   : > { %v1398_v27 = vsel %vm1355_vm8, %v4788_v26, 0.0 }
 0x527   : > { %1399 = vadd.xlane.f32.xlu1 %v1398_v27 }
 0x529   : > { %v4790_v39 = vpop.eup %4789 }
 0x52a   : > { %v1401_v40 = vsel %vm1355_vm8, %v4790_v39, 0.0 }
 0x52d   : > { %v5370_v41 = vpop.eup %4791 }
 0x52e   : > { %v1404_v42 = vsel %vm1355_vm8, %v5370_v41, 0.0 }
 0x535   : > { %1628 = vrot.lane.b32.xlu0 %v5272_v3, %s4956_s23 }
 0x538   : > { %1620 = vrot.lane.b32.xlu1 %v5264_v61, %s4957_s26 }
 0x547   : > { %v1373_v35 = vpop.xlane.xlu1 %1372 }
 0x548   : > { %v1379_v37 = vsub.f32 %v1354_v6, %v1373_v35 }
 0x54a   : > { %v1390_v38 = vmul.f32 1.442695, %v1379_v37 }
 0x54b   : > { %v1619_v46 = vpop.permute.xlu1 %1618 }
 0x54c   : > { %4793 = vpow2.f32 %v1390_v38 }
 0x554   : > { %1402 = vadd.xlane.f32.xlu0 %v1401_v40 }
 0x556   : > { %v5374_v43 = vpop.eup %4793 }
 0x557   : > { %v1407_v44 = vsel %vm1355_vm8, %v5374_v43, 0.0 }
 0x558   : > { %1405 = vadd.xlane.f32.xlu0 %v1404_v42 }
 0x55c   : > { %1408 = vadd.xlane.f32.xlu1 %v1407_v44 }
 0x56d   : > { %1622 = vrot.lane.b32.xlu1 %v5272_v3, %s4957_s26 }
 0x56e   : > { %1732 = vrot.lane.b32.xlu0 %v5290_v10, %s4956_s23  ;;  %s4966_s23 = smov 16  }
 0x571   : > { %1726 = vrot.lane.b32.xlu1 %v5290_v10, %s4957_s26 }
 0x572   : > { %1722 = vrot.lane.b32.xlu0 %v5280_v7, %s4957_s26 }
 0x575   : > { %4727 = vrot.lane.b32.xlu1 %v5287_v9, %s4958_s25 }
 0x576   : > { %1724 = vrot.lane.b32.xlu0 %v5282_v8, %s4957_s26  ;;  %s6039_s26 = sld [smem:[#allocation7_spill]] }
 0x579   : > { %1908 = vrot.lane.b32.xlu1 %v5272_v3, %s4958_s25 }
 0x57a   : > { %4722 = vrot.lane.b32.xlu0 %v5270_v1, %s4958_s25 }
 0x57d   : > { %2006 = vrot.lane.b32.xlu1 %v5290_v10, %s4958_s25  ;;  %s4967_s25 = smov 24  }
 0x5ac   : > { %v1394_v48 = vpop.xlane.xlu0 %1393 }
 0x5ad   : > { %4795 = vrcp.f32 %v1394_v48 }
 0x5b0   : > { %v1397_v49 = vpop.xlane.xlu1 %1396  ;;  %v1629_v60 = vpop.permute.xlu0 %1628 }
 0x5b1   : > { %4797 = vrcp.f32 %v1397_v49 }
 0x5b4   : > { %v1400_v50 = vpop.xlane.xlu1 %1399 }
 0x5b5   : > { %4799 = vrcp.f32 %v1400_v50 }
 0x5b7   : > { %v4796_v47 = vpop.eup %4795 }
 0x5b8   : > { %v1416_v53 = vmul.f32 %v4796_v47, %v4784_v22  ;;  %v1621_v62 = vpop.permute.xlu1 %1620 }
 0x5ba   : > { %4247 = vmatmul.mubr.msk.f32.vlgmr.msra.gmra.mrb[0].mxu1 %vm1355_vm8, %v1416_v53 }
 0x5bb   : > { %v4798_v56 = vpop.eup %4797  ;;  %4562 = vmatpush3.bf16.xpose.msk.msra.mxu1 %vm5298_vm6, %v4560_v54  ;;  %4249 = vmatprep.mubr.msk.f32.mxu1 %vm4952_vm4, %v4953_v4 }
 0x5bc   : > { %v1417_v57 = vmul.f32 %v4798_v56, %v4786_v24  ;;  %4274 = vmatprep.subr.mxu1 %v4953_v4 }
 0x5be   : > { %4250 = vmatmul.mubr.msk.f32.gmra.mrb[2].mxu1 %vm1355_vm8, %v1417_v57 }
 0x5bf   : > { %v4800_v55 = vpop.eup %4799  ;;  %4252 = vmatprep.mubr.msk.f32.mxu1 %vm4952_vm4, %v4953_v4 }
 0x5c0   : > { %v1418_v59 = vmul.f32 %v4800_v55, %v4788_v26 }
 0x5c2   : > { %4253 = vmatmul.mubr.msk.f32.gmra.mrb[4].mxu1 %vm1355_vm8, %v1418_v59 }
 0x5c3   : > { %4275 = vmatpush3.xpose.msk.msra.mxu1 %vm1149_vm5, %v1629_v60  ;;  %4276 = vmatprep.mubr.msk.f32.mxu1 %vm4952_vm4, %v4953_v4 }
 0x5c4   : > { %4567 = vmatprep.subr.bf16.mxu1 %v4950_v58 }
 0x5c6   : > { %4277 = vmatmul.mubr.msk.f32.vlgmr.msra.gmra.mrb[6].mxu1 %vm1149_vm5, %v1619_v46 }
 0x5c7   : > { %4279 = vmatprep.mubr.msk.f32.mxu1 %vm4952_vm4, %v4953_v4 }
 0x5ca   : > { %4280 = vmatmul.mubr.msk.f32.gmra.mrb[8].mxu1 %vm1149_vm5, %v1621_v62 }
 0x5cb   : > { %4282 = vmatprep.mubr.msk.f32.mxu1 %vm4952_vm4, %v4953_v4 }
 0x5e1   : > { %v1403_v0 = vpop.xlane.xlu0 %1402 }
 0x5e2   : > { %4801 = vrcp.f32 %v1403_v0 }
 0x5e5   : > { %v1406_v2 = vpop.xlane.xlu0 %1405 }
 0x5e6   : > { %4803 = vrcp.f32 %v1406_v2 }
 0x5e9   : > { %v1733_v5 = vpop.permute.xlu0 %1732  ;;  %v1409_v6 = vpop.xlane.xlu1 %1408 }
 0x5ea   : > { %4805 = vrcp.f32 %v1409_v6 }
 0x5ec   : > { %v4802_v13 = vpop.eup %4801 }
 0x5ed   : > { %v1419_v15 = vmul.f32 %v4802_v13, %v4790_v39  ;;  %v1723_v16 = vpop.permute.xlu0 %1722  ;;  %v1623_v17 = vpop.permute.xlu1 %1622 }
 0x5ee   : > { %4283 = vmatmul.mubr.msk.f32.gmra.mrb[10].mxu1 %vm1149_vm5, %v1623_v17 }
 0x5ef   : > { %4262 = vmatmul.mubr.msk.f32.vlgmr.msra.gmra.mrb[18].mxu0 %vm1355_vm8, %v1419_v15  ;;  %4306 = vmatprep.mubr.msk.f32.mxu1 %vm4952_vm4, %v4953_v4 }
 0x5f0   : > { %v4804_v19 = vpop.eup %4803  ;;  %4566 = vmatpush3.bf16.xpose.msk.msra.mxu0 %vm5298_vm6, %v4564_v18  ;;  %4264 = vmatprep.mubr.msk.f32.mxu0 %vm4952_vm4, %v4953_v4 }
 0x5f1   : > { %v1725_v20 = vpop.permute.xlu0 %1724  ;;  %v1727_v21 = vpop.permute.xlu1 %1726  ;;  %v1420_v22 = vmul.f32 %v4804_v19, %v5370_v41  ;;  %4289 = vmatprep.subr.mxu0 %v4953_v4 }
 0x5f3   : > { %4265 = vmatmul.mubr.msk.f32.gmra.mrb[20].mxu0 %vm1355_vm8, %v1420_v22 }
 0x5f4   : > { %v4806_v23 = vpop.eup %4805  ;;  %4267 = vmatprep.mubr.msk.f32.mxu0 %vm4952_vm4, %v4953_v4 }
 0x5f5   : > { %v4723_v24 = vpop.permute.xlu0 %4722  ;;  %v4728_v25 = vpop.permute.xlu1 %4727  ;;  %v1421_v26 = vmul.f32 %v4806_v23, %v5374_v43 }
 0x5f6   : > { %v4725_v27 = vunpack.i.h.bf16 %v4723_v24  ;;  %v4724_v28 = vunpack.i.l.bf16 %v4723_v24  ;;  %v4730_v29 = vunpack.i.h.bf16 %v4728_v25  ;;  %v4729_v30 = vunpack.i.l.bf16 %v4728_v25 }
 0x5f7   : > { %4268 = vmatmul.mubr.msk.f32.gmra.mrb[22].mxu0 %vm1355_vm8, %v1421_v26 }
 0x5f8   : > { %v4568_v31 = vpack.c.bf16 %v4725_v27, %v4724_v28  ;;  %v4571_v32 = vpack.c.bf16 %v4730_v29, %v4729_v30  ;;  %4290 = vmatpush3.xpose.msk.msra.mxu0 %vm1149_vm5, %v1733_v5  ;;  %4291 = vmatprep.mubr.msk.f32.mxu0 %vm4952_vm4, %v4953_v4 }
 0x5f9   : > { %v1909_v33 = vpop.permute.xlu1 %1908  ;;  %4570 = vmatprep.subr.bf16.mxu0 %v4950_v58 }
 0x5fa   : > { %4569 = vmatpush3.bf16.msra.mxu1 %v4568_v31 }
 0x5fb   : > { %4292 = vmatmul.mubr.msk.f32.vlgmr.msra.gmra.mrb[24].mxu0 %vm1149_vm5, %v1723_v16  ;;  %4304 = vmatprep.subr.mxu1 %v4953_v4 }
 0x5fc   : > { %4572 = vmatpush3.bf16.msra.mxu0 %v4571_v32  ;;  %4294 = vmatprep.mubr.msk.f32.mxu0 %vm4952_vm4, %v4953_v4 }
 0x5fd   : > { %v2007_v34 = vpop.permute.xlu1 %2006  ;;  %4319 = vmatprep.subr.mxu0 %v4953_v4 }
 0x5fe   : > { %4305 = vmatpush3.msra.mxu1 %v1909_v33 }
 0x5ff   : > { %4295 = vmatmul.mubr.msk.f32.gmra.mrb[26].mxu0 %vm1149_vm5, %v1725_v20  ;;  %4573 = vmatprep.subr.bf16.mxu1 %v4950_v58 }
 0x600   : > { %4320 = vmatpush3.msra.mxu0 %v2007_v34  ;;  %4297 = vmatprep.mubr.msk.f32.mxu0 %vm4952_vm4, %v4953_v4 }
 0x601   : > { %4577 = vmatprep.subr.bf16.mxu0 %v4950_v58 }
 0x603   : > { %4298 = vmatmul.mubr.msk.f32.gmra.mrb[28].mxu0 %vm1149_vm5, %v1727_v21 }
 0x604   : > { %4321 = vmatprep.mubr.msk.f32.mxu0 %vm4952_vm4, %v4953_v4 }
 0x68d   : > { %v5446_v35 = vpop.f32.mrb[0].mxu1 }
 0x68e   : > { %v4248_v37 = vpop.f32.mrb[1].mxu1 }
 0x691   : > { %v5448_v38 = vpop.f32.mrb[2].mxu1 }
 0x692   : > { %v4251_v39 = vpop.f32.mrb[3].mxu1 }
 0x695   : > { %v5450_v40 = vpop.f32.mrb[4].mxu1 }
 0x696   : > { %v4254_v41 = vpop.f32.mrb[5].mxu1 }
 0x699   : > { %v1708_v42 = vpop.f32.mrb[6].mxu1 }
 0x69a   : > { %v1826_v43 = vmul.f32 0.35355338, %v1708_v42  ;;  %v4278_v44 = vpop.f32.mrb[7].mxu1 }
 0x69c   : > { %v1832_v45 = vadd.f32 %v1826_v43, %v5340_v36 }
 0x69d   : > { %v1713_v46 = vpop.f32.mrb[8].mxu1 }
 0x69e   : > { %v1827_v48 = vmul.f32 0.35355338, %v1713_v46  ;;  %v4281_v49 = vpop.f32.mrb[9].mxu1  ;;  %v1838_v50 = vsel %vm1355_vm8, %v1832_v45, -inf }
 0x69f   : > { %1839 = vmax.xlane.f32.xlu0 %v1838_v50 }
 0x6a0   : > { %v1833_v51 = vadd.f32 %v1827_v48, %v5340_v36 }
 0x6a2   : > { %v1841_v52 = vsel %vm1355_vm8, %v1833_v51, -inf }
 0x6a3   : > { %1842 = vmax.xlane.f32.xlu1 %v1841_v52 }
 0x6b4   : > { %4737 = vrot.lane.b32.xlu1 %v5287_v9, %s4959_s29 }
 0x6c1   : > { %v1718_v47 = vpop.f32.mrb[10].mxu1 }
 0x6c2   : > { %v1828_v53 = vmul.f32 0.35355338, %v1718_v47  ;;  %v5458_v54 = vpop.f32.mrb[18].mxu0  ;;  %v4284_v56 = vpop.f32.mrb[11].mxu1 }
 0x6c3   : > { %v4263_v57 = vpop.f32.mrb[19].mxu0 }
 0x6c4   : > { %v1834_v55 = vadd.f32 %v1828_v53, %v5340_v36 }
 0x6c6   : > { %v5461_v59 = vpop.f32.mrb[20].mxu0  ;;  %v1844_v60 = vsel %vm1355_vm8, %v1834_v55, -inf }
 0x6c7   : > { %1845 = vmax.xlane.f32.xlu0 %v1844_v60  ;;  %v4266_v62 = vpop.f32.mrb[21].mxu0 }
 0x6ca   : > { %v5464_v0 = vpop.f32.mrb[22].mxu0 }
 0x6cb   : > { %v4269_v2 = vpop.f32.mrb[23].mxu0 }
 0x6ce   : > { %v1812_v5 = vpop.f32.mrb[24].mxu0 }
 0x6cf   : > { %v1829_v6 = vmul.f32 0.35355338, %v1812_v5  ;;  %v4293_v11 = vpop.f32.mrb[25].mxu0 }
 0x6d1   : > { %v1835_v12 = vadd.f32 %v1829_v6, %v5340_v36 }
 0x6d2   : > { %v1817_v13 = vpop.f32.mrb[26].mxu0 }
 0x6d3   : > { %v1830_v15 = vmul.f32 0.35355338, %v1817_v13  ;;  %v4296_v16 = vpop.f32.mrb[27].mxu0  ;;  %v1847_v17 = vsel %vm1355_vm8, %v1835_v12, -inf }
 0x6d4   : > { %1848 = vmax.xlane.f32.xlu0 %v1847_v17 }
 0x6d5   : > { %v1836_v18 = vadd.f32 %v1830_v15, %v5340_v36 }
 0x6d6   : > { %v1822_v19 = vpop.f32.mrb[28].mxu0 }
 0x6d7   : > { %v1831_v20 = vmul.f32 0.35355338, %v1822_v19  ;;  %v4299_v21 = vpop.f32.mrb[29].mxu0  ;;  %v1850_v22 = vsel %vm1355_vm8, %v1836_v18, -inf }
 0x6d8   : > { %1851 = vmax.xlane.f32.xlu0 %v1850_v22 }
 0x6d9   : > { %v1837_v23 = vadd.f32 %v1831_v20, %v5340_v36 }
 0x6db   : > { %v1853_v24 = vsel %vm1355_vm8, %v1837_v23, -inf }
 0x6dc   : > { %1854 = vmax.xlane.f32.xlu1 %v1853_v24 }
 0x6ed   : > { %2100 = vrot.lane.b32.xlu1 %v5266_v63, %s4960_s0 }
 0x6ee   : > { %4732 = vrot.lane.b32.xlu0 %v5270_v1, %s4959_s29 }
 0x72c   : > { %v1840_v25 = vpop.xlane.xlu0 %1839 }
 0x72d   : > { %v1856_v26 = vsub.f32 %v1832_v45, %v1840_v25 }
 0x72f   : > { %v1862_v27 = vmul.f32 1.442695, %v1856_v26 }
 0x730   : > { %v1843_v28 = vpop.xlane.xlu1 %1842 }
 0x731   : > { %4807 = vpow2.f32 %v1862_v27  ;;  %v1857_v29 = vsub.f32 %v1833_v51, %v1843_v28 }
 0x733   : > { %v1864_v30 = vmul.f32 1.442695, %v1857_v29 }
 0x734   : > { %v4738_v56 = vpop.permute.xlu1 %4737 }
 0x735   : > { %4809 = vpow2.f32 %v1864_v30  ;;  %v4740_v29 = vunpack.i.h.bf16 %v4738_v56  ;;  %v4739_v30 = vunpack.i.l.bf16 %v4738_v56 }
 0x73b   : > { %v4808_v31 = vpop.eup %4807 }
 0x73c   : > { %v1874_v32 = vsel %vm1355_vm8, %v4808_v31, 0.0 }
 0x73d   : > { %1875 = vadd.xlane.f32.xlu0 %v1874_v32 }
 0x73f   : > { %v4810_v33 = vpop.eup %4809 }
 0x740   : > { %v1877_v34 = vsel %vm1355_vm8, %v4810_v33, 0.0 }
 0x741   : > { %1878 = vadd.xlane.f32.xlu1 %v1877_v34  ;;  %v4578_v34 = vpack.c.bf16 %v4740_v29, %v4739_v30 }
 0x753   : > { %2110 = vrot.lane.b32.xlu0 %v5272_v3, %s4959_s29 }
 0x754   : > { %v1846_v37 = vpop.xlane.xlu0 %1845 }
 0x755   : > { %v1858_v39 = vsub.f32 %v1834_v55, %v1846_v37 }
 0x757   : > { %v1866_v41 = vmul.f32 1.442695, %v1858_v39 }
 0x759   : > { %4811 = vpow2.f32 %v1866_v41 }
 0x761   : > { %v1849_v42 = vpop.xlane.xlu0 %1848 }
 0x762   : > { %v1859_v43 = vsub.f32 %v1835_v12, %v1849_v42 }
 0x763   : > { %v4812_v44 = vpop.eup %4811 }
 0x764   : > { %v1868_v45 = vmul.f32 1.442695, %v1859_v43  ;;  %v1880_v46 = vsel %vm1355_vm8, %v4812_v44, 0.0 }
 0x765   : > { %v1852_v48 = vpop.xlane.xlu0 %1851  ;;  %1881 = vadd.xlane.f32.xlu1 %v1880_v46 }
 0x766   : > { %4813 = vpow2.f32 %v1868_v45  ;;  %v1860_v49 = vsub.f32 %v1836_v18, %v1852_v48 }
 0x768   : > { %v1870_v50 = vmul.f32 1.442695, %v1860_v49 }
 0x769   : > { %v1855_v57 = vpop.xlane.xlu1 %1854  ;;  %v4733_v5 = vpop.permute.xlu0 %4732 }
 0x76a   : > { %4815 = vpow2.f32 %v1870_v50  ;;  %v1861_v55 = vsub.f32 %v1837_v23, %v1855_v57  ;;  %v4735_v13 = vunpack.i.h.bf16 %v4733_v5  ;;  %v4734_v15 = vunpack.i.l.bf16 %v4733_v5 }
 0x76c   : > { %v1872_v60 = vmul.f32 1.442695, %v1861_v55  ;;  %v4574_v18 = vpack.c.bf16 %v4735_v13, %v4734_v15 }
 0x76d   : > { %v2101_v6 = vpop.permute.xlu1 %2100 }
 0x76e   : > { %4817 = vpow2.f32 %v1872_v60 }
 0x770   : > { %v5481_v51 = vpop.eup %4813 }
 0x771   : > { %v1883_v52 = vsel %vm1355_vm8, %v5481_v51, 0.0 }
 0x772   : > { %1884 = vadd.xlane.f32.xlu0 %v1883_v52 }
 0x774   : > { %v5485_v47 = vpop.eup %4815 }
 0x775   : > { %v1886_v53 = vsel %vm1355_vm8, %v5485_v47, 0.0 }
 0x776   : > { %1887 = vadd.xlane.f32.xlu0 %v1886_v53  ;;  %2102 = vrot.lane.b32.xlu1 %v5264_v61, %s4960_s0 }
 0x778   : > { %v5497_v62 = vpop.eup %4817 }
 0x779   : > { %v1889_v2 = vsel %vm1355_vm8, %v5497_v62, 0.0 }
 0x78c   : > { %2214 = vrot.lane.b32.xlu0 %v5290_v10, %s4959_s29 }
 0x790   : > { %2204 = vrot.lane.b32.xlu0 %v5280_v7, %s4960_s0 }
 0x794   : > { %2206 = vrot.lane.b32.xlu0 %v5282_v8, %s4960_s0 }
 0x798   : > { %4742 = vrot.lane.b32.xlu0 %v5270_v1, %s4961_s1 }
 0x79a   : > { %1890 = vadd.xlane.f32.xlu1 %v1889_v2 }
 0x7ab   : > { %2104 = vrot.lane.b32.xlu1 %v5272_v3, %s4960_s0 }
 0x7af   : > { %2208 = vrot.lane.b32.xlu1 %v5290_v10, %s4960_s0 }
 0x7b3   : > { %4747 = vrot.lane.b32.xlu1 %v5287_v9, %s4961_s1 }
 0x7b7   : > { %2390 = vrot.lane.b32.xlu1 %v5272_v3, %s4961_s1 }
 0x7bb   : > { %2488 = vrot.lane.b32.xlu1 %v5290_v10, %s4961_s1  ;;  %s6040_s1 = scalar_lea.vmem %s5999_s10, %s5082_s20 }
 0x7ca   : > { %v1876_v11 = vpop.xlane.xlu0 %1875 }
 0x7cb   : > { %4819 = vrcp.f32 %v1876_v11 }
 0x7ce   : > { %v1879_v12 = vpop.xlane.xlu1 %1878  ;;  %v2111_v21 = vpop.permute.xlu0 %2110 }
 0x7cf   : > { %4821 = vrcp.f32 %v1879_v12 }
 0x7d5   : > { %v4820_v16 = vpop.eup %4819 }
 0x7d6   : > { %v1898_v17 = vmul.f32 %v4820_v16, %v4808_v31 }
 0x7d8   : > { %4307 = vmatmul.mubr.msk.f32.vlgmr.msra.gmra.mrb[12].mxu1 %vm1355_vm8, %v1898_v17 }
 0x7d9   : > { %v4822_v19 = vpop.eup %4821  ;;  %4576 = vmatpush3.bf16.xpose.msk.msra.mxu1 %vm5298_vm6, %v4574_v18  ;;  %4309 = vmatprep.mubr.msk.f32.mxu1 %vm4952_vm4, %v4953_v4 }
 0x7da   : > { %v1899_v20 = vmul.f32 %v4822_v19, %v4810_v33  ;;  %4334 = vmatprep.subr.mxu1 %v4953_v4 }
 0x7dc   : > { %4310 = vmatmul.mubr.msk.f32.gmra.mrb[14].mxu1 %vm1355_vm8, %v1899_v20 }
 0x7dd   : > { %4312 = vmatprep.mubr.msk.f32.mxu1 %vm4952_vm4, %v4953_v4 }
 0x7e1   : > { %4335 = vmatpush3.xpose.msk.msra.mxu1 %vm1149_vm5, %v2111_v21 }
 0x7e2   : > { %4581 = vmatprep.subr.bf16.mxu1 %v4950_v58 }
 0x7f2   : > { %v1882_v22 = vpop.xlane.xlu1 %1881 }
 0x7f3   : > { %4823 = vrcp.f32 %v1882_v22 }
 0x7f6   : > { %v2103_v27 = vpop.permute.xlu1 %2102 }
 0x7fd   : > { %v4824_v23 = vpop.eup %4823 }
 0x7fe   : > { %v1900_v24 = vmul.f32 %v4824_v23, %v4812_v44 }
 0x7ff   : > { %v1885_v25 = vpop.xlane.xlu0 %1884 }
 0x800   : > { %4825 = vrcp.f32 %v1885_v25  ;;  %4313 = vmatmul.mubr.msk.f32.gmra.mrb[16].mxu1 %vm1355_vm8, %v1900_v24 }
 0x801   : > { %4336 = vmatprep.mubr.msk.f32.mxu1 %vm4952_vm4, %v4953_v4 }
 0x803   : > { %v1888_v26 = vpop.xlane.xlu0 %1887 }
 0x804   : > { %4827 = vrcp.f32 %v1888_v26  ;;  %4337 = vmatmul.mubr.msk.f32.vlgmr.msra.gmra.mrb[18].mxu1 %vm1149_vm5, %v2101_v6 }
 0x805   : > { %4339 = vmatprep.mubr.msk.f32.mxu1 %vm4952_vm4, %v4953_v4 }
 0x807   : > { %v2215_v28 = vpop.permute.xlu0 %2214 }
 0x808   : > { %4340 = vmatmul.mubr.msk.f32.gmra.mrb[20].mxu1 %vm1149_vm5, %v2103_v27 }
 0x809   : > { %4342 = vmatprep.mubr.msk.f32.mxu1 %vm4952_vm4, %v4953_v4 }
 0x80a   : > { %v4826_v31 = vpop.eup %4825 }
 0x80b   : > { %v1901_v32 = vmul.f32 %v4826_v31, %v5481_v51  ;;  %v2205_v33 = vpop.permute.xlu0 %2204 }
 0x80d   : > { %4322 = vmatmul.mubr.msk.f32.vlgmr.msra.gmra.mrb[30].mxu0 %vm1355_vm8, %v1901_v32 }
 0x80e   : > { %v4828_v37 = vpop.eup %4827  ;;  %4580 = vmatpush3.bf16.xpose.msk.msra.mxu0 %vm5298_vm6, %v4578_v34  ;;  %4324 = vmatprep.mubr.msk.f32.mxu0 %vm4952_vm4, %v4953_v4 }
 0x80f   : > { %v2207_v39 = vpop.permute.xlu0 %2206  ;;  %v1902_v41 = vmul.f32 %v4828_v37, %v5485_v47  ;;  %4349 = vmatprep.subr.mxu0 %v4953_v4 }
 0x811   : > { %4325 = vmatmul.mubr.msk.f32.gmra.mrb[32].mxu0 %vm1355_vm8, %v1902_v41 }
 0x812   : > { %4327 = vmatprep.mubr.msk.f32.mxu0 %vm4952_vm4, %v4953_v4 }
 0x813   : > { %v4743_v42 = vpop.permute.xlu0 %4742 }
 0x814   : > { %v4745_v43 = vunpack.i.h.bf16 %v4743_v42  ;;  %v4744_v44 = vunpack.i.l.bf16 %v4743_v42 }
 0x816   : > { %v4582_v45 = vpack.c.bf16 %v4745_v43, %v4744_v44  ;;  %4350 = vmatpush3.xpose.msk.msra.mxu0 %vm1149_vm5, %v2215_v28 }
 0x817   : > { %4584 = vmatprep.subr.bf16.mxu0 %v4950_v58 }
 0x818   : > { %4583 = vmatpush3.bf16.msra.mxu1 %v4582_v45 }
 0x819   : > { %4364 = vmatprep.subr.mxu1 %v4953_v4 }
 0x827   : > { %v1891_v46 = vpop.xlane.xlu1 %1890 }
 0x828   : > { %4829 = vrcp.f32 %v1891_v46 }
 0x82b   : > { %v2105_v48 = vpop.permute.xlu1 %2104 }
 0x82c   : > { %4343 = vmatmul.mubr.msk.f32.gmra.mrb[22].mxu1 %vm1149_vm5, %v2105_v48 }
 0x82d   : > { %4366 = vmatprep.mubr.msk.f32.mxu1 %vm4952_vm4, %v4953_v4 }
 0x82f   : > { %v2209_v49 = vpop.permute.xlu1 %2208 }
 0x832   : > { %v4830_v50 = vpop.eup %4829 }
 0x833   : > { %v4748_v51 = vpop.permute.xlu1 %4747  ;;  %v1903_v52 = vmul.f32 %v4830_v50, %v5497_v62 }
 0x834   : > { %v4750_v47 = vunpack.i.h.bf16 %v4748_v51  ;;  %v4749_v53 = vunpack.i.l.bf16 %v4748_v51 }
 0x835   : > { %4328 = vmatmul.mubr.msk.f32.gmra.mrb[34].mxu0 %vm1355_vm8, %v1903_v52 }
 0x836   : > { %v4585_v56 = vpack.c.bf16 %v4750_v47, %v4749_v53  ;;  %4351 = vmatprep.mubr.msk.f32.mxu0 %vm4952_vm4, %v4953_v4 }
 0x837   : > { %v2391_v57 = vpop.permute.xlu1 %2390 }
 0x838   : > { %4365 = vmatpush3.msra.mxu1 %v2391_v57 }
 0x839   : > { %4352 = vmatmul.mubr.msk.f32.vlgmr.msra.gmra.mrb[36].mxu0 %vm1149_vm5, %v2205_v33  ;;  %4587 = vmatprep.subr.bf16.mxu1 %v4950_v58 }
 0x83a   : > { %4586 = vmatpush3.bf16.msra.mxu0 %v4585_v56  ;;  %4354 = vmatprep.mubr.msk.f32.mxu0 %vm4952_vm4, %v4953_v4 }
 0x83b   : > { %v2489_v55 = vpop.permute.xlu1 %2488  ;;  %4379 = vmatprep.subr.mxu0 %v4953_v4 }
 0x83d   : > { %4355 = vmatmul.mubr.msk.f32.gmra.mrb[38].mxu0 %vm1149_vm5, %v2207_v39 }
 0x83e   : > { %4380 = vmatpush3.msra.mxu0 %v2489_v55  ;;  %4357 = vmatprep.mubr.msk.f32.mxu0 %vm4952_vm4, %v4953_v4 }
 0x83f   : > { %4591 = vmatprep.subr.bf16.mxu0 %v4950_v58 }
 0x841   : > { %4358 = vmatmul.mubr.msk.f32.gmra.mrb[40].mxu0 %vm1149_vm5, %v2209_v49 }
 0x842   : > { %4381 = vmatprep.mubr.msk.f32.mxu0 %vm4952_vm4, %v4953_v4 }
 0x8ab   : > { %v5562_v60 = vpop.f32.mrb[12].mxu1 }
 0x8ac   : > { %v4308_v62 = vpop.f32.mrb[13].mxu1 }
 0x8af   : > { %v5564_v2 = vpop.f32.mrb[14].mxu1 }
 0x8b0   : > { %v4311_v5 = vpop.f32.mrb[15].mxu1 }
 0x8d3   : > { %v5566_v6 = vpop.f32.mrb[16].mxu1 }
 0x8d4   : > { %v4314_v11 = vpop.f32.mrb[17].mxu1 }
 0x8d7   : > { %v2190_v12 = vpop.f32.mrb[18].mxu1 }
 0x8d8   : > { %v2308_v13 = vmul.f32 0.35355338, %v2190_v12  ;;  %v4338_v15 = vpop.f32.mrb[19].mxu1 }
 0x8da   : > { %v2314_v16 = vadd.f32 %v2308_v13, %v5340_v36 }
 0x8db   : > { %v2195_v17 = vpop.f32.mrb[20].mxu1 }
 0x8dc   : > { %v2309_v18 = vmul.f32 0.35355338, %v2195_v17  ;;  %v4341_v19 = vpop.f32.mrb[21].mxu1  ;;  %v2320_v20 = vsel %vm1355_vm8, %v2314_v16, -inf }
 0x8dd   : > { %2321 = vmax.xlane.f32.xlu0 %v2320_v20 }
 0x8de   : > { %v2315_v21 = vadd.f32 %v2309_v18, %v5340_v36 }
 0x8e0   : > { %v5571_v22 = vpop.f32.mrb[30].mxu0  ;;  %v2323_v23 = vsel %vm1355_vm8, %v2315_v21, -inf }
 0x8e1   : > { %2324 = vmax.xlane.f32.xlu1 %v2323_v23  ;;  %v4323_v24 = vpop.f32.mrb[31].mxu0 }
 0x8e4   : > { %v5574_v25 = vpop.f32.mrb[32].mxu0 }
 0x8e5   : > { %v4326_v26 = vpop.f32.mrb[33].mxu0 }
 0x8f2   : > { %4757 = vrot.lane.b32.xlu1 %v5287_v9, %s4962_s18 }
 0x8ff   : > { %v2200_v27 = vpop.f32.mrb[22].mxu1 }
 0x900   : > { %v2310_v28 = vmul.f32 0.35355338, %v2200_v27  ;;  %v4344_v29 = vpop.f32.mrb[23].mxu1 }
 0x902   : > { %v2316_v30 = vadd.f32 %v2310_v28, %v5340_v36 }
 0x904   : > { %v2326_v31 = vsel %vm1355_vm8, %v2316_v30, -inf }
 0x905   : > { %2327 = vmax.xlane.f32.xlu0 %v2326_v31 }
 0x908   : > { %v5580_v32 = vpop.f32.mrb[34].mxu0 }
 0x909   : > { %v4329_v33 = vpop.f32.mrb[35].mxu0 }
 0x90c   : > { %v2294_v34 = vpop.f32.mrb[36].mxu0 }
 0x90d   : > { %v2311_v37 = vmul.f32 0.35355338, %v2294_v34  ;;  %v4353_v39 = vpop.f32.mrb[37].mxu0 }
 0x90f   : > { %v2317_v41 = vadd.f32 %v2311_v37, %v5340_v36 }
 0x910   : > { %v2299_v42 = vpop.f32.mrb[38].mxu0 }
 0x911   : > { %v2312_v43 = vmul.f32 0.35355338, %v2299_v42  ;;  %v4356_v44 = vpop.f32.mrb[39].mxu0  ;;  %v2329_v45 = vsel %vm1355_vm8, %v2317_v41, -inf }
 0x912   : > { %2330 = vmax.xlane.f32.xlu0 %v2329_v45 }
 0x913   : > { %v2318_v46 = vadd.f32 %v2312_v43, %v5340_v36 }
 0x914   : > { %v2304_v48 = vpop.f32.mrb[40].mxu0 }
 0x915   : > { %v2313_v49 = vmul.f32 0.35355338, %v2304_v48  ;;  %v4359_v50 = vpop.f32.mrb[41].mxu0  ;;  %v2332_v51 = vsel %vm1355_vm8, %v2318_v46, -inf }
 0x916   : > { %2333 = vmax.xlane.f32.xlu0 %v2332_v51 }
 0x917   : > { %v2319_v52 = vadd.f32 %v2313_v49, %v5340_v36 }
 0x919   : > { %v2335_v47 = vsel %vm1355_vm8, %v2319_v52, -inf }
 0x91a   : > { %2336 = vmax.xlane.f32.xlu1 %v2335_v47 }
 0x92b   : > { %2582 = vrot.lane.b32.xlu1 %v5266_v63, %s4963_s22 }
 0x92c   : > { %4752 = vrot.lane.b32.xlu0 %v5270_v1, %s4962_s18 }
 0x96a   : > { %v2322_v53 = vpop.xlane.xlu0 %2321 }
 0x96b   : > { %v2338_v56 = vsub.f32 %v2314_v16, %v2322_v53 }
 0x96d   : > { %v2344_v57 = vmul.f32 1.442695, %v2338_v56 }
 0x96e   : > { %v2325_v55 = vpop.xlane.xlu1 %2324 }
 0x96f   : > { %4831 = vpow2.f32 %v2344_v57  ;;  %v2339_v62 = vsub.f32 %v2315_v21, %v2325_v55 }
 0x971   : > { %v2346_v5 = vmul.f32 1.442695, %v2339_v62 }
 0x972   : > { %v4758_v33 = vpop.permute.xlu1 %4757 }
 0x973   : > { %4833 = vpow2.f32 %v2346_v5  ;;  %v4760_v5 = vunpack.i.h.bf16 %v4758_v33 }
 0x979   : > { %v4832_v11 = vpop.eup %4831 }
 0x97a   : > { %v2356_v12 = vsel %vm1355_vm8, %v4832_v11, 0.0 }
 0x97b   : > { %2357 = vadd.xlane.f32.xlu0 %v2356_v12 }
 0x97d   : > { %v4834_v13 = vpop.eup %4833 }
 0x97e   : > { %v2359_v15 = vsel %vm1355_vm8, %v4834_v13, 0.0 }
 0x97f   : > { %2360 = vadd.xlane.f32.xlu1 %v2359_v15 }
 0x991   : > { %2592 = vrot.lane.b32.xlu0 %v5272_v3, %s4962_s18 }
 0x992   : > { %v2328_v63 = vpop.xlane.xlu0 %2327 }
 0x993   : > { %v2340_v17 = vsub.f32 %v2316_v30, %v2328_v63 }
 0x995   : > { %v2348_v16 = vmul.f32 1.442695, %v2340_v17 }
 0x997   : > { %4835 = vpow2.f32 %v2348_v16 }
 0x99f   : > { %v2331_v18 = vpop.xlane.xlu0 %2330 }
 0x9a0   : > { %v2341_v19 = vsub.f32 %v2317_v41, %v2331_v18 }
 0x9a1   : > { %v4836_v20 = vpop.eup %4835 }
 0x9a2   : > { %v2350_v21 = vmul.f32 1.442695, %v2341_v19  ;;  %v2362_v23 = vsel %vm1355_vm8, %v4836_v20, 0.0 }
 0x9a3   : > { %v2334_v24 = vpop.xlane.xlu0 %2333  ;;  %2363 = vadd.xlane.f32.xlu1 %v2362_v23 }
 0x9a4   : > { %4837 = vpow2.f32 %v2350_v21  ;;  %v2342_v26 = vsub.f32 %v2318_v46, %v2334_v24 }
 0x9a6   : > { %v2352_v27 = vmul.f32 1.442695, %v2342_v26 }
 0x9a7   : > { %v2337_v34 = vpop.xlane.xlu1 %2336 }
 0x9a8   : > { %4839 = vpow2.f32 %v2352_v27  ;;  %v2343_v37 = vsub.f32 %v2319_v52, %v2337_v34 }
 0x9aa   : > { %v2354_v39 = vmul.f32 1.442695, %v2343_v37 }
 0x9ab   : > { %v2583_v43 = vpop.permute.xlu1 %2582 }
 0x9ac   : > { %4841 = vpow2.f32 %v2354_v39 }
 0x9ae   : > { %v4838_v28 = vpop.eup %4837 }
 0x9af   : > { %v2365_v29 = vsel %vm1355_vm8, %v4838_v28, 0.0 }
 0x9b0   : > { %2366 = vadd.xlane.f32.xlu0 %v2365_v29 }
 0x9b2   : > { %v5598_v31 = vpop.eup %4839 }
 0x9b3   : > { %v2368_v30 = vsel %vm1355_vm8, %v5598_v31, 0.0 }
 0x9b4   : > { %2369 = vadd.xlane.f32.xlu0 %v2368_v30  ;;  %2584 = vrot.lane.b32.xlu1 %v5264_v61, %s4963_s22  ;;  %v4753_v61 = vpop.permute.xlu0 %4752 }
 0x9b5   : > { %v4755_v45 = vunpack.i.h.bf16 %v4753_v61 }
 0x9b6   : > { %v5610_v41 = vpop.eup %4841 }
 0x9b7   : > { %v2371_v42 = vsel %vm1355_vm8, %v5610_v41, 0.0 }
 0x9ca   : > { %2696 = vrot.lane.b32.xlu0 %v5290_v10, %s4962_s18 }
 0x9ce   : > { %2686 = vrot.lane.b32.xlu0 %v5280_v7, %s4963_s22 }
 0x9d2   : > { %2688 = vrot.lane.b32.xlu0 %v5282_v8, %s4963_s22  ;;  %v4754_v8 = vunpack.i.l.bf16 %v4753_v61 }
 0x9d4   : > { %v4588_v49 = vpack.c.bf16 %v4755_v45, %v4754_v8 }
 0x9d8   : > { %2372 = vadd.xlane.f32.xlu1 %v2371_v42 }
 0x9e9   : > { %2586 = vrot.lane.b32.xlu1 %v5272_v3, %s4963_s22 }
 0x9ed   : > { %2690 = vrot.lane.b32.xlu1 %v5290_v10, %s4963_s22 }
 0xa08   : > { %v2358_v44 = vpop.xlane.xlu0 %2357 }
 0xa09   : > { %4843 = vrcp.f32 %v2358_v44 }
 0xa0c   : > { %v2361_v7 = vpop.xlane.xlu1 %2360  ;;  %v2593_v52 = vpop.permute.xlu0 %2592 }
 0xa0d   : > { %4845 = vrcp.f32 %v2361_v7 }
 0xa13   : > { %v4844_v46 = vpop.eup %4843 }
 0xa14   : > { %v2380_v48 = vmul.f32 %v4844_v46, %v4832_v11  ;;  %v4759_v11 = vunpack.i.l.bf16 %v4758_v33 }
 0xa16   : > { %4367 = vmatmul.mubr.msk.f32.vlgmr.msra.gmra.mrb[24].mxu1 %vm1355_vm8, %v2380_v48  ;;  %v4592_v15 = vpack.c.bf16 %v4760_v5, %v4759_v11 }
 0xa17   : > { %v4846_v50 = vpop.eup %4845  ;;  %4590 = vmatpush3.bf16.xpose.msk.msra.mxu1 %vm5298_vm6, %v4588_v49  ;;  %4369 = vmatprep.mubr.msk.f32.mxu1 %vm4952_vm4, %v4953_v4 }
 0xa18   : > { %v2381_v51 = vmul.f32 %v4846_v50, %v4834_v13  ;;  %4394 = vmatprep.subr.mxu1 %v4953_v4 }
 0xa1a   : > { %4370 = vmatmul.mubr.msk.f32.gmra.mrb[26].mxu1 %vm1355_vm8, %v2381_v51 }
 0xa1b   : > { %4372 = vmatprep.mubr.msk.f32.mxu1 %vm4952_vm4, %v4953_v4 }
 0xa1f   : > { %4395 = vmatpush3.xpose.msk.msra.mxu1 %vm1149_vm5, %v2593_v52 }
 0xa20   : > { %4595 = vmatprep.subr.bf16.mxu1 %v4950_v58 }
 0xa30   : > { %v2364_v47 = vpop.xlane.xlu1 %2363 }
 0xa31   : > { %4847 = vrcp.f32 %v2364_v47 }
 0xa34   : > { %v2585_v62 = vpop.permute.xlu1 %2584 }
 0xa3b   : > { %v4848_v53 = vpop.eup %4847 }
 0xa3c   : > { %v2382_v56 = vmul.f32 %v4848_v53, %v4836_v20 }
 0xa3d   : > { %v2367_v57 = vpop.xlane.xlu0 %2366 }
 0xa3e   : > { %4849 = vrcp.f32 %v2367_v57  ;;  %4373 = vmatmul.mubr.msk.f32.gmra.mrb[28].mxu1 %vm1355_vm8, %v2382_v56 }
 0xa3f   : > { %4396 = vmatprep.mubr.msk.f32.mxu1 %vm4952_vm4, %v4953_v4 }
 0xa41   : > { %v2370_v55 = vpop.xlane.xlu0 %2369 }
 0xa42   : > { %4851 = vrcp.f32 %v2370_v55  ;;  %4397 = vmatmul.mubr.msk.f32.vlgmr.msra.gmra.mrb[30].mxu1 %vm1149_vm5, %v2583_v43 }
 0xa43   : > { %4399 = vmatprep.mubr.msk.f32.mxu1 %vm4952_vm4, %v4953_v4 }
 0xa45   : > { %v2697_v16 = vpop.permute.xlu0 %2696 }
 0xa46   : > { %4400 = vmatmul.mubr.msk.f32.gmra.mrb[32].mxu1 %vm1149_vm5, %v2585_v62 }
 0xa47   : > { %4402 = vmatprep.mubr.msk.f32.mxu1 %vm4952_vm4, %v4953_v4 }
 0xa48   : > { %v4850_v12 = vpop.eup %4849 }
 0xa49   : > { %v2383_v13 = vmul.f32 %v4850_v12, %v4838_v28  ;;  %v2687_v21 = vpop.permute.xlu0 %2686 }
 0xa4b   : > { %4382 = vmatmul.mubr.msk.f32.vlgmr.msra.gmra.mrb[42].mxu0 %vm1355_vm8, %v2383_v13 }
 0xa4c   : > { %v4852_v63 = vpop.eup %4851  ;;  %4594 = vmatpush3.bf16.xpose.msk.msra.mxu0 %vm5298_vm6, %v4592_v15  ;;  %4384 = vmatprep.mubr.msk.f32.mxu0 %vm4952_vm4, %v4953_v4 }
 0xa4d   : > { %v2384_v17 = vmul.f32 %v4852_v63, %v5598_v31  ;;  %4409 = vmatprep.subr.mxu0 %v4953_v4 }
 0xa4f   : > { %4385 = vmatmul.mubr.msk.f32.gmra.mrb[44].mxu0 %vm1355_vm8, %v2384_v17 }
 0xa50   : > { %4387 = vmatprep.mubr.msk.f32.mxu0 %vm4952_vm4, %v4953_v4 }
 0xa54   : > { %4410 = vmatpush3.xpose.msk.msra.mxu0 %vm1149_vm5, %v2697_v16 }
 0xa55   : > { %4598 = vmatprep.subr.bf16.mxu0 %v4950_v58  ;;  %v2689_v58 = vpop.permute.xlu0 %2688 }
 0xa65   : > { %v2373_v18 = vpop.xlane.xlu1 %2372 }
 0xa66   : > { %4853 = vrcp.f32 %v2373_v18 }
 0xa69   : > { %v2587_v14 = vpop.permute.xlu1 %2586 }
 0xa6a   : > { %4403 = vmatmul.mubr.msk.f32.gmra.mrb[34].mxu1 %vm1149_vm5, %v2587_v14 }
 0xa6b   : > { %4426 = vmatprep.mubr.msk.f32.mxu1 %vm4952_vm4, %v4953_v4 }
 0xa6d   : > { %v2691_v23 = vpop.permute.xlu1 %2690 }
 0xa70   : > { %v4854_v19 = vpop.eup %4853 }
 0xa71   : > { %v2385_v20 = vmul.f32 %v4854_v19, %v5610_v41 }
 0xa73   : > { %4388 = vmatmul.mubr.msk.f32.gmra.mrb[46].mxu0 %vm1355_vm8, %v2385_v20 }
 0xa74   : > { %4411 = vmatprep.mubr.msk.f32.mxu0 %vm4952_vm4, %v4953_v4 }
 0xa77   : > { %4412 = vmatmul.mubr.msk.f32.vlgmr.msra.gmra.mrb[48].mxu0 %vm1149_vm5, %v2687_v21 }
 0xa78   : > { %4414 = vmatprep.mubr.msk.f32.mxu0 %vm4952_vm4, %v4953_v4 }
 0xa7b   : > { %4415 = vmatmul.mubr.msk.f32.gmra.mrb[50].mxu0 %vm1149_vm5, %v2689_v58 }
 0xa7c   : > { %4417 = vmatprep.mubr.msk.f32.mxu0 %vm4952_vm4, %v4953_v4 }
 0xa7f   : > { %4418 = vmatmul.mubr.msk.f32.gmra.mrb[52].mxu0 %vm1149_vm5, %v2691_v23 }
 0xa80   : > { %4441 = vmatprep.mubr.msk.f32.mxu0 %vm4952_vm4, %v4953_v4 }
 0xae9   : > { %v5666_v24 = vpop.f32.mrb[24].mxu1 }
 0xaea   : > { %v4368_v26 = vpop.f32.mrb[25].mxu1 }
 0xaed   : > { %v5668_v27 = vpop.f32.mrb[26].mxu1 }
 0xaee   : > { %v4371_v28 = vpop.f32.mrb[27].mxu1 }
 0xb11   : > { %v5670_v29 = vpop.f32.mrb[28].mxu1 }
 0xb12   : > { %v4374_v31 = vpop.f32.mrb[29].mxu1 }
 0xb15   : > { %v2672_v30 = vpop.f32.mrb[30].mxu1 }
 0xb16   : > { %v2790_v33 = vmul.f32 0.35355338, %v2672_v30  ;;  %v4398_v34 = vpop.f32.mrb[31].mxu1 }
 0xb18   : > { %v2796_v37 = vadd.f32 %v2790_v33, %v5340_v36 }
 0xb19   : > { %v2677_v39 = vpop.f32.mrb[32].mxu1 }
 0xb1a   : > { %v2791_v41 = vmul.f32 0.35355338, %v2677_v39  ;;  %v4401_v42 = vpop.f32.mrb[33].mxu1  ;;  %v2802_v61 = vsel %vm1355_vm8, %v2796_v37, -inf }
 0xb1b   : > { %2803 = vmax.xlane.f32.xlu0 %v2802_v61 }
 0xb1c   : > { %v2797_v43 = vadd.f32 %v2791_v41, %v5340_v36 }
 0xb1e   : > { %v5675_v44 = vpop.f32.mrb[42].mxu0  ;;  %v2805_v7 = vsel %vm1355_vm8, %v2797_v43, -inf }
 0xb1f   : > { %2806 = vmax.xlane.f32.xlu1 %v2805_v7  ;;  %v4383_v45 = vpop.f32.mrb[43].mxu0 }
 0xb22   : > { %v5678_v8 = vpop.f32.mrb[44].mxu0 }
 0xb23   : > { %v4386_v46 = vpop.f32.mrb[45].mxu0 }
 0xb3d   : > { %v2682_v48 = vpop.f32.mrb[34].mxu1 }
 0xb3e   : > { %v2792_v49 = vmul.f32 0.35355338, %v2682_v48  ;;  %v4404_v50 = vpop.f32.mrb[35].mxu1 }
 0xb40   : > { %v2798_v51 = vadd.f32 %v2792_v49, %v5340_v36 }
 0xb42   : > { %v2808_v52 = vsel %vm1355_vm8, %v2798_v51, -inf }
 0xb43   : > { %2809 = vmax.xlane.f32.xlu0 %v2808_v52 }
 0xb46   : > { %v5682_v47 = vpop.f32.mrb[46].mxu0 }
 0xb47   : > { %v4389_v53 = vpop.f32.mrb[47].mxu0 }
 0xb4a   : > { %v2776_v56 = vpop.f32.mrb[48].mxu0 }
 0xb4b   : > { %v2793_v57 = vmul.f32 0.35355338, %v2776_v56  ;;  %v4413_v55 = vpop.f32.mrb[49].mxu0 }
 0xb4d   : > { %v2799_v62 = vadd.f32 %v2793_v57, %v5340_v36 }
 0xb4e   : > { %v2781_v5 = vpop.f32.mrb[50].mxu0 }
 0xb4f   : > { %v2794_v11 = vmul.f32 0.35355338, %v2781_v5  ;;  %v4416_v12 = vpop.f32.mrb[51].mxu0  ;;  %v2811_v13 = vsel %vm1355_vm8, %v2799_v62, -inf }
 0xb50   : > { %2812 = vmax.xlane.f32.xlu0 %v2811_v13 }
 0xb51   : > { %v2800_v15 = vadd.f32 %v2794_v11, %v5340_v36 }
 0xb52   : > { %v2786_v63 = vpop.f32.mrb[52].mxu0 }
 0xb53   : > { %v2795_v17 = vmul.f32 0.35355338, %v2786_v63  ;;  %v4419_v16 = vpop.f32.mrb[53].mxu0  ;;  %v2814_v18 = vsel %vm1355_vm8, %v2800_v15, -inf }
 0xb54   : > { %2815 = vmax.xlane.f32.xlu0 %v2814_v18 }
 0xb55   : > { %v2801_v14 = vadd.f32 %v2795_v17, %v5340_v36 }
 0xb57   : > { %v2817_v19 = vsel %vm1355_vm8, %v2801_v14, -inf }
 0xb58   : > { %2818 = vmax.xlane.f32.xlu1 %v2817_v19 }
 0xba8   : > { %v2804_v20 = vpop.xlane.xlu0 %2803 }
 0xba9   : > { %v2820_v21 = vsub.f32 %v2796_v37, %v2804_v20 }
 0xbab   : > { %v2826_v58 = vmul.f32 1.442695, %v2820_v21  ;;  %v3155_v21 = vld [vmem:[%s6039_s26] sm:$0xff] }
 0xbac   : > { %v2807_v23 = vpop.xlane.xlu1 %2806 }
 0xbad   : > { %4855 = vpow2.f32 %v2826_v58  ;;  %v2821_v26 = vsub.f32 %v2797_v43, %v2807_v23  ;;  %v3156_v58 = vld [vmem:[%s6039_s26 + $0x8] sm:$0xff] }
 0xbae   : > { %v4601_v23 = vpack.c.bf16 %v3156_v58, %v3155_v21 }
 0xbaf   : > { %v2828_v28 = vmul.f32 1.442695, %v2821_v26  ;;  %v3157_v26 = vld [vmem:[%s6039_s26 + $0x10] sm:$0xff] }
 0xbb1   : > { %4857 = vpow2.f32 %v2828_v28  ;;  %v3158_v28 = vld [vmem:[%s6039_s26 + $0x18] sm:$0xff] }
 0xbb7   : > { %v5690_v31 = vpop.eup %4855 }
 0xbb8   : > { %v2838_v30 = vsel %vm1355_vm8, %v5690_v31, 0.0 }
 0xbb9   : > { %2839 = vadd.xlane.f32.xlu0 %v2838_v30 }
 0xbbb   : > { %v5694_v33 = vpop.eup %4857 }
 0xbbc   : > { %v2841_v36 = vsel %vm1355_vm8, %v5694_v33, 0.0 }
 0xbbd   : > { %2842 = vadd.xlane.f32.xlu1 %v2841_v36 }
 0xbd0   : > { %v2810_v34 = vpop.xlane.xlu0 %2809 }
 0xbd1   : > { %v2822_v37 = vsub.f32 %v2798_v51, %v2810_v34 }
 0xbd3   : > { %v2830_v39 = vmul.f32 1.442695, %v2822_v37 }
 0xbd5   : > { %4859 = vpow2.f32 %v2830_v39 }
 0xbdd   : > { %v2813_v41 = vpop.xlane.xlu0 %2812 }
 0xbde   : > { %v2823_v42 = vsub.f32 %v2799_v62, %v2813_v41 }
 0xbdf   : > { %v5698_v61 = vpop.eup %4859 }
 0xbe0   : > { %v2832_v43 = vmul.f32 1.442695, %v2823_v42  ;;  %v2844_v7 = vsel %vm1355_vm8, %v5698_v61, 0.0 }
 0xbe1   : > { %v2816_v45 = vpop.xlane.xlu0 %2815  ;;  %2845 = vadd.xlane.f32.xlu1 %v2844_v7 }
 0xbe2   : > { %4861 = vpow2.f32 %v2832_v43  ;;  %v2824_v46 = vsub.f32 %v2800_v15, %v2816_v45 }
 0xbe4   : > { %v2834_v48 = vmul.f32 1.442695, %v2824_v46 }
 0xbe5   : > { %v2819_v53 = vpop.xlane.xlu1 %2818 }
 0xbe6   : > { %4863 = vpow2.f32 %v2834_v48  ;;  %v2825_v56 = vsub.f32 %v2801_v14, %v2819_v53 }
 0xbe8   : > { %v2836_v57 = vmul.f32 1.442695, %v2825_v56 }
 0xbea   : > { %4865 = vpow2.f32 %v2836_v57 }
 0xbec   : > { %v5702_v49 = vpop.eup %4861 }
 0xbed   : > { %v2847_v50 = vsel %vm1355_vm8, %v5702_v49, 0.0 }
 0xbee   : > { %2848 = vadd.xlane.f32.xlu0 %v2847_v50 }
 0xbf0   : > { %v5706_v51 = vpop.eup %4863 }
 0xbf1   : > { %v2850_v52 = vsel %vm1355_vm8, %v5706_v51, 0.0 }
 0xbf2   : > { %2851 = vadd.xlane.f32.xlu0 %v2850_v52  ;;  %4767 = vrot.lane.b32.xlu1 %v5287_v9, %s4964_s24 }
 0xbf4   : > { %v4866_v55 = vpop.eup %4865 }
 0xbf6   : > { %2872 = vrot.lane.b32.xlu1 %v5272_v3, %s4964_s24  ;;  %v2853_v3 = vsel %vm1355_vm8, %v4866_v55, 0.0 }
 0xc08   : > { %4762 = vrot.lane.b32.xlu0 %v5270_v1, %s4964_s24 }
 0xc0c   : > { %3070 = vrot.lane.b32.xlu0 %v5562_v60, %s4965_s21 }
 0xc10   : > { %3094 = vrot.lane.b32.xlu0 %v5666_v24, %s4966_s23 }
 0xc14   : > { %3074 = vrot.lane.b32.xlu0 %v5566_v6, %s4965_s21 }
 0xc18   : > { %3098 = vrot.lane.b32.xlu0 %v5670_v29, %s4966_s23 }
 0xc1a   : > { %2854 = vadd.xlane.f32.xlu1 %v2853_v3 }
 0xc1c   : > { %3078 = vrot.lane.b32.xlu0 %v5574_v25, %s4965_s21 }
 0xc20   : > { %3102 = vrot.lane.b32.xlu0 %v5678_v8, %s4966_s23 }
 0xc2b   : > { %2970 = vrot.lane.b32.xlu1 %v5290_v10, %s4964_s24 }
 0xc2f   : > { %3072 = vrot.lane.b32.xlu1 %v5564_v2, %s4965_s21 }
 0xc33   : > { %3096 = vrot.lane.b32.xlu1 %v5668_v27, %s4966_s23 }
 0xc37   : > { %3076 = vrot.lane.b32.xlu1 %v5571_v22, %s4965_s21 }
 0xc3b   : > { %3100 = vrot.lane.b32.xlu1 %v5675_v44, %s4966_s23 }
 0xc3f   : > { %3080 = vrot.lane.b32.xlu1 %v5580_v32, %s4965_s21 }
 0xc43   : > { %3104 = vrot.lane.b32.xlu1 %v5682_v47, %s4966_s23  ;;  %s6041_s23 = scalar_lea.vmem %s6003_s14, %s5082_s20 }
 0xc46   : > { %v2840_v24 = vpop.xlane.xlu0 %2839 }
 0xc47   : > { %4867 = vrcp.f32 %v2840_v24 }
 0xc4a   : > { %v2843_v1 = vpop.xlane.xlu1 %2842 }
 0xc4b   : > { %4869 = vrcp.f32 %v2843_v1 }
 0xc51   : > { %v4868_v8 = vpop.eup %4867 }
 0xc52   : > { %v2862_v47 = vmul.f32 %v4868_v8, %v5690_v31  ;;  %v4605_v31 = vpack.c.bf16 %v3158_v28, %v3157_v26 }
 0xc55   : > { %v4870_v5 = vpop.eup %4869 }
 0xc56   : > { %v2863_v11 = vmul.f32 %v4870_v5, %v5694_v33 }
 0xc6e   : > { %v2846_v9 = vpop.xlane.xlu1 %2845 }
 0xc6f   : > { %4871 = vrcp.f32 %v2846_v9 }
 0xc72   : > { %v4768_v60 = vpop.permute.xlu1 %4767 }
 0xc73   : > { %v4770_v6 = vunpack.i.h.bf16 %v4768_v60  ;;  %v4769_v10 = vunpack.i.l.bf16 %v4768_v60 }
 0xc75   : > { %v4599_v25 = vpack.c.bf16 %v4770_v6, %v4769_v10 }
 0xc76   : > { %v2873_v62 = vpop.permute.xlu1 %2872 }
 0xc77   : > { %4600 = vmatpush3.bf16.msra.mxu0 %v4599_v25 }
 0xc78   : > { %4439 = vmatprep.subr.mxu0 %v4953_v4 }
 0xc79   : > { %v4872_v12 = vpop.eup %4871 }
 0xc7a   : > { %v2864_v13 = vmul.f32 %v4872_v12, %v5698_v61 }
 0xc7b   : > { %v2849_v2 = vpop.xlane.xlu0 %2848 }
 0xc7c   : > { %4873 = vrcp.f32 %v2849_v2 }
 0xc7f   : > { %v2852_v22 = vpop.xlane.xlu0 %2851 }
 0xc80   : > { %4875 = vrcp.f32 %v2852_v22 }
 0xc83   : > { %v4763_v27 = vpop.permute.xlu0 %4762 }
 0xc84   : > { %v4765_v29 = vunpack.i.h.bf16 %v4763_v27  ;;  %v4764_v44 = vunpack.i.l.bf16 %v4763_v27 }
 0xc86   : > { %v4596_v32 = vpack.c.bf16 %v4765_v29, %v4764_v44  ;;  %v4874_v63 = vpop.eup %4873 }
 0xc87   : > { %v2865_v17 = vmul.f32 %v4874_v63, %v5702_v49  ;;  %v3071_v45 = vpop.permute.xlu0 %3070 }
 0xc88   : > { %4597 = vmatpush3.bf16.msra.mxu1 %v4596_v32  ;;  %v3136_v3 = vsel %vm1149_vm5, %v5446_v35, %v3071_v45 }
 0xc89   : > { %4424 = vmatprep.subr.mxu1 %v4953_v4 }
 0xc8a   : > { %v4876_v18 = vpop.eup %4875 }
 0xc8b   : > { %v2866_v14 = vmul.f32 %v4876_v18, %v5706_v51  ;;  %v3095_v48 = vpop.permute.xlu0 %3094  ;;  %v4903_v18 = vld [vmem:[#allocation2 + $0x8] sm:$0xff] }
 0xc8c   : > { %4425 = vmatpush3.msra.mxu1 %v2873_v62  ;;  %v3143_v1 = vsel %vm3142_vm9, %v3136_v3, %v3095_v48 }
 0xc8d   : > { %4427 = vmatmul.mubr.msk.f32.vlgmr.msra.gmra.mrb[36].mxu1 %vm1355_vm8, %v2862_v47  ;;  %4602 = vmatprep.subr.bf16.mxu1 %v4601_v23 }
 0xc8e   : > { %4429 = vmatprep.mubr.msk.f32.mxu1 %vm4952_vm4, %v4953_v4  ;;  %4604 = vmatpush3.bf16.msra.mxu1 %v4601_v23 }
 0xc8f   : > { %4606 = vmatprep.subr.bf16.mxu1 %v4605_v31  ;;  %v3075_v50 = vpop.permute.xlu0 %3074 }
 0xc90   : > { %v3138_v35 = vsel %vm1149_vm5, %v5450_v40, %v3075_v50 }
 0xc91   : > { %4430 = vmatmul.mubr.msk.f32.gmra.mrb[38].mxu1 %vm1355_vm8, %v2863_v11 }
 0xc92   : > { %4432 = vmatprep.mubr.msk.f32.mxu1 %vm4952_vm4, %v4953_v4  ;;  %4608 = vmatpush3.bf16.msra.mxu1 %v4605_v31  ;;  %v4905_v31 = vld [vmem:[#allocation2 + $0x18] sm:$0xff] }
 0xc93   : > { %v3099_v52 = vpop.permute.xlu0 %3098 }
 0xc94   : > { %v3145_v22 = vsel %vm3142_vm9, %v3138_v35, %v3099_v52 }
 0xc95   : > { %4433 = vmatmul.mubr.msk.f32.gmra.mrb[40].mxu1 %vm1355_vm8, %v2864_v13 }
 0xc97   : > { %v3079_v56 = vpop.permute.xlu0 %3078 }
 0xc98   : > { %v3140_v40 = vsel %vm1149_vm5, %v5461_v59, %v3079_v56  ;;  %v3985_v59 = vld [vmem:[%s6040_s1] ss:$0 sm:$0xff] }
 0xca7   : > { %v2855_v15 = vpop.xlane.xlu1 %2854 }
 0xca8   : > { %4877 = vrcp.f32 %v2855_v15 }
 0xcab   : > { %v2971_v16 = vpop.permute.xlu1 %2970 }
 0xcac   : > { %4440 = vmatpush3.msra.mxu0 %v2971_v16 }
 0xcad   : > { %4442 = vmatmul.mubr.msk.f32.vlgmr.msra.gmra.mrb[54].mxu0 %vm1355_vm8, %v2865_v17 }
 0xcae   : > { %4444 = vmatprep.mubr.msk.f32.mxu0 %vm4952_vm4, %v4953_v4 }
 0xcaf   : > { %v3073_v46 = vpop.permute.xlu1 %3072 }
 0xcb0   : > { %v3137_v10 = vsel %vm1149_vm5, %v5448_v38, %v3073_v46 }
 0xcb1   : > { %4445 = vmatmul.mubr.msk.f32.gmra.mrb[56].mxu0 %vm1355_vm8, %v2866_v14 }
 0xcb2   : > { %v4878_v19 = vpop.eup %4877  ;;  %4447 = vmatprep.mubr.msk.f32.mxu0 %vm4952_vm4, %v4953_v4 }
 0xcb3   : > { %v2867_v20 = vmul.f32 %v4878_v19, %v4866_v55  ;;  %v3097_v49 = vpop.permute.xlu1 %3096  ;;  %v3103_v55 = vpop.permute.xlu0 %3102 }
 0xcb4   : > { %v3144_v25 = vsel %vm3142_vm9, %v3137_v10, %v3097_v49  ;;  %v3147_v47 = vsel %vm3142_vm9, %v3140_v40, %v3103_v55 }
 0xcb5   : > { %4448 = vmatmul.mubr.msk.f32.gmra.mrb[58].mxu0 %vm1355_vm8, %v2867_v20 }
 0xcb7   : > { %v3077_v51 = vpop.permute.xlu1 %3076 }
 0xcb8   : > { %v3139_v38 = vsel %vm1149_vm5, %v5458_v54, %v3077_v51 }
 0xcbb   : > { %v3101_v53 = vpop.permute.xlu1 %3100 }
 0xcbc   : > { %v3146_v44 = vsel %vm3142_vm9, %v3139_v38, %v3101_v53 }
 0xcbf   : > { %v3081_v57 = vpop.permute.xlu1 %3080 }
 0xcc0   : > { %v3141_v54 = vsel %vm1149_vm5, %v5464_v0, %v3081_v57  ;;  %v4904_v0 = vld [vmem:[#allocation2] sm:$0xff] }
 0xcc3   : > { %v3105_v9 = vpop.permute.xlu1 %3104 }
 0xcc4   : > { %v3148_v11 = vsel %vm3142_vm9, %v3141_v54, %v3105_v9 }
 0xd60   : > { %v2952_v30 = vpop.f32.mrb[36].mxu1 }
 0xd61   : > { %3118 = vrot.lane.b32.xlu0 %v2952_v30, %s4967_s25  ;;  %v4428_v33 = vpop.f32.mrb[37].mxu1 }
 0xd62   : > { %v4906_v33 = vld [vmem:[#allocation2 + $0x10] sm:$0xff] }
 0xd64   : > { %v2957_v36 = vpop.f32.mrb[38].mxu1 }
 0xd65   : > { %3120 = vrot.lane.b32.xlu1 %v2957_v36, %s4967_s25  ;;  %v4431_v4 = vpop.f32.mrb[39].mxu1 }
 0xd68   : > { %v2962_v34 = vpop.f32.mrb[40].mxu1 }
 0xd69   : > { %3122 = vrot.lane.b32.xlu0 %v2962_v34, %s4967_s25  ;;  %v4434_v37 = vpop.f32.mrb[41].mxu1 }
 0xd80   : > { %v3050_v39 = vpop.f32.mrb[54].mxu0 }
 0xd81   : > { %3124 = vrot.lane.b32.xlu1 %v3050_v39, %s4967_s25  ;;  %v4443_v41 = vpop.f32.mrb[55].mxu0 }
 0xd84   : > { %v3055_v42 = vpop.f32.mrb[56].mxu0 }
 0xd85   : > { %3126 = vrot.lane.b32.xlu0 %v3055_v42, %s4967_s25  ;;  %v4446_v61 = vpop.f32.mrb[57].mxu0 }
 0xd86   : > { %v4907_v61 = vld [vmem:[#allocation2 + $0x28] sm:$0xff] }
 0xd88   : > { %v3060_v43 = vpop.f32.mrb[58].mxu0 }
 0xd89   : > { %3128 = vrot.lane.b32.xlu1 %v3060_v43, %s4967_s25  ;;  %v4449_v7 = vpop.f32.mrb[59].mxu0  ;;  %s6042_s25 = sld [smem:[#allocation14_spill]] (!%p4002_p5) }
 0xd8a   : > { %v4908_v7 = vld [vmem:[#allocation2 + $0x20] sm:$0xff] }
 0xdd3   : > { %v3119_v60 = vpop.permute.xlu0 %3118 }
 0xdd4   : > { %v3149_v6 = vsel %vm1355_vm8, %v3143_v1, %v3119_v60 }
 0xdd5   : > { %4458 = vmatprep.mubr.msk.f32.mxu1 %vm906_vm3, %v3149_v6 }
 0xdd7   : > { %v3121_v24 = vpop.permute.xlu1 %3120 }
 0xdd8   : > { %v3150_v2 = vsel %vm1355_vm8, %v3144_v25, %v3121_v24 }
 0xdd9   : > { %4459 = vmatmul.mubr.msk.f32.vlgmr.msra.gmra.mrb[42].mxu1 %vm906_vm3, %v3150_v2 }
 0xddb   : > { %v3123_v27 = vpop.permute.xlu0 %3122 }
 0xddc   : > { %v3151_v29 = vsel %vm1355_vm8, %v3145_v22, %v3123_v27 }
 0xddd   : > { %4461 = vmatprep.mubr.msk.f32.mxu1 %vm906_vm3, %v3151_v29 }
 0xdf3   : > { %v3125_v32 = vpop.permute.xlu1 %3124 }
 0xdf4   : > { %v3152_v8 = vsel %vm1355_vm8, %v3146_v44, %v3125_v32  ;;  %v3389_v44 = vld [vmem:[%s5122_s7] sm:$0xff]  ;;  %v3390_v32 = vld [vmem:[%s5122_s7 + $0x8] sm:$0xff] }
 0xdf5   : > { %4462 = vmatmul.mubr.msk.f32.gmra.mrb[44].mxu1 %vm906_vm3, %v3152_v8  ;;  %v4609_v40 = vpack.c.bf16 %v3390_v32, %v3389_v44 }
 0xdf7   : > { %v3127_v62 = vpop.permute.xlu0 %3126  ;;  %4610 = vmatprep.subr.bf16.mxu0 %v4609_v40 }
 0xdf8   : > { %v3153_v5 = vsel %vm1355_vm8, %v3147_v47, %v3127_v62  ;;  %4612 = vmatpush3.bf16.msra.mxu0 %v4609_v40 }
 0xdf9   : > { %4464 = vmatprep.mubr.msk.f32.mxu1 %vm906_vm3, %v3153_v5 }
 0xdfb   : > { %v3129_v12 = vpop.permute.xlu1 %3128 }
 0xdfc   : > { %v3154_v13 = vsel %vm1355_vm8, %v3148_v11, %v3129_v12  ;;  %v3391_v11 = vld [vmem:[%s5122_s7 + $0x10] sm:$0xff]  ;;  %v3392_v12 = vld [vmem:[%s5122_s7 + $0x18] sm:$0xff] }
 0xdfd   : > { %4465 = vmatmul.mubr.msk.f32.gmra.mrb[46].mxu1 %vm906_vm3, %v3154_v13 }
 0xeac   : > { %v4460_v15 = vpop.f32.mrb[42].mxu1 }
 0xead   : > { %v3256_v63 = vadd.f32 %v4460_v15, %v3985_v59  ;;  %v3250_v17 = vpop.f32.mrb[43].mxu1 }
 0xeae   : > { %v3251_v16 = vadd.f32 %v3985_v59, %v3250_v17  ;;  %v3543_v17 = vld [vmem:[%s5132_s2] sm:$0xff] }
 0xeaf   : > { %v5793_v14 = vadd.f32 %v4903_v18, %v3256_v63  ;;  %v3545_v18 = vld [vmem:[%s5132_s2 + $0x10] sm:$0xff] }
 0xeb0   : > { %v5795_v19 = vadd.f32 %v4904_v0, %v3251_v16  ;;  %v3544_v16 = vld [vmem:[%s5132_s2 + $0x8] sm:$0xff] }
 0xeb1   : > { %v3288_v20 = vsel %vm906_vm3, %v5793_v14, 0.0  ;;  %v4617_v0 = vpack.c.bf16 %v3544_v16, %v3543_v17  ;;  %v3553_v16 = vld [vmem:[%s5132_s2 + $0x50] sm:$0xff] }
 0xeb2   : > { %3289 = vadd.xlane.f32.xlu1 %v3288_v20  ;;  %v3285_v21 = vsel %vm906_vm3, %v5795_v19, 0.0  ;;  %v3546_v20 = vld [vmem:[%s5132_s2 + $0x18] sm:$0xff] }
 0xeb3   : > { %3286 = vadd.xlane.f32.xlu0 %v3285_v21  ;;  %v4621_v21 = vpack.c.bf16 %v3546_v20, %v3545_v18  ;;  %4618 = vmatprep.subr.bf16.mxu1 %v4617_v0  ;;  %v3554_v18 = vld [vmem:[%s5132_s2 + $0x58] sm:$0xff]  ;;  %v3555_v20 = vld [vmem:[%s5132_s2 + $0x60] sm:$0xff] }
 0xeb4   : > { %4620 = vmatpush3.bf16.msra.mxu1 %v4617_v0  ;;  %v4637_v0 = vpack.c.bf16 %v3554_v18, %v3553_v16 }
 0xeb5   : > { %4622 = vmatprep.subr.bf16.mxu1 %v4621_v21 }
 0xeb8   : > { %4624 = vmatpush3.bf16.msra.mxu1 %v4621_v21  ;;  %v3556_v21 = vld [vmem:[%s5132_s2 + $0x68] sm:$0xff] }
 0xec8   : > { %v4463_v58 = vpop.f32.mrb[44].mxu1 }
 0xec9   : > { %v3266_v23 = vadd.f32 %v4463_v58, %v3985_v59  ;;  %v3260_v26 = vpop.f32.mrb[45].mxu1  ;;  %v3547_v58 = vld [vmem:[%s5132_s2 + $0x20] sm:$0xff] }
 0xeca   : > { %v3261_v28 = vadd.f32 %v3985_v59, %v3260_v26 }
 0xecb   : > { %v5801_v30 = vadd.f32 %v4905_v31, %v3266_v23  ;;  %v3548_v23 = vld [vmem:[%s5132_s2 + $0x28] sm:$0xff] }
 0xecc   : > { %v5803_v36 = vadd.f32 %v4906_v33, %v3261_v28  ;;  %v4625_v26 = vpack.c.bf16 %v3548_v23, %v3547_v58  ;;  %v4641_v58 = vpack.c.bf16 %v3556_v21, %v3555_v20  ;;  %v3557_v23 = vld [vmem:[%s5132_s2 + $0x70] sm:$0xff] }
 0xecd   : > { %v3294_v4 = vsel %vm906_vm3, %v5801_v30, 0.0 }
 0xece   : > { %3295 = vadd.xlane.f32.xlu0 %v3294_v4  ;;  %v3291_v41 = vsel %vm906_vm3, %v5803_v36, 0.0  ;;  %4626 = vmatprep.subr.bf16.mxu1 %v4625_v26 }
 0xecf   : > { %4628 = vmatpush3.bf16.msra.mxu1 %v4625_v26  ;;  %v3558_v26 = vld [vmem:[%s5132_s2 + $0x78] sm:$0xff] }
 0xed0   : > { %v4466_v34 = vpop.f32.mrb[46].mxu1 }
 0xed1   : > { %v3276_v37 = vadd.f32 %v4466_v34, %v3985_v59  ;;  %v3270_v39 = vpop.f32.mrb[47].mxu1 }
 0xed2   : > { %v3271_v42 = vadd.f32 %v3985_v59, %v3270_v39  ;;  %3292 = vadd.xlane.f32.xlu0 %v3291_v41  ;;  %v4613_v59 = vpack.c.bf16 %v3392_v12, %v3391_v11  ;;  %v3992_v41 = vld [vmem:[%s736_s17] ss:$0 sm:$0xff] }
 0xed3   : > { %v5809_v43 = vadd.f32 %v4907_v61, %v3276_v37 }
 0xed4   : > { %v5811_v45 = vadd.f32 %v4908_v7, %v3271_v42  ;;  %4614 = vmatprep.subr.bf16.mxu0 %v4613_v59 }
 0xed5   : > { %v3300_v46 = vsel %vm906_vm3, %v5809_v43, 0.0  ;;  %4616 = vmatpush3.bf16.msra.mxu0 %v4613_v59  ;;  %v3550_v59 = vld [vmem:[%s5132_s2 + $0x38] sm:$0xff] }
 0xed6   : > { %3301 = vadd.xlane.f32.xlu1 %v3300_v46  ;;  %v3297_v48 = vsel %vm906_vm3, %v5811_v45, 0.0  ;;  %v3993_v46 = vld [vmem:[%s739_s27] ss:$0 sm:$0xff] }
 0xed7   : > { %3298 = vadd.xlane.f32.xlu0 %v3297_v48 }
 0xf3f   : > { %v3290_v49 = vpop.xlane.xlu1 %3289 }
 0xf40   : > { %v3304_v50 = vmul.f32 0.03125, %v3290_v49  ;;  %v3287_v51 = vpop.xlane.xlu0 %3286 }
 0xf41   : > { %v3303_v52 = vmul.f32 0.03125, %v3287_v51 }
 0xf42   : > { %v5818_v53 = vsub.f32 %v5793_v14, %v3304_v50 }
 0xf43   : > { %v5821_v56 = vsub.f32 %v5795_v19, %v3303_v52 }
 0xf44   : > { %v3316_v57 = vmul.f32 %v5818_v53, %v5818_v53 }
 0xf45   : > { %v3315_v55 = vmul.f32 %v5821_v56, %v5821_v56 }
 0xf46   : > { %v3324_v3 = vsel %vm906_vm3, %v3316_v57, 0.0 }
 0xf47   : > { %3325 = vadd.xlane.f32.xlu1 %v3324_v3  ;;  %v3321_v1 = vsel %vm906_vm3, %v3315_v55, 0.0 }
 0xf48   : > { %3322 = vadd.xlane.f32.xlu0 %v3321_v1 }
 0xf5b   : > { %v3296_v9 = vpop.xlane.xlu0 %3295 }
 0xf5c   : > { %v3306_v60 = vmul.f32 0.03125, %v3296_v9 }
 0xf5e   : > { %v5830_v6 = vsub.f32 %v5801_v30, %v3306_v60 }
 0xf5f   : > { %v3293_v10 = vpop.xlane.xlu0 %3292 }
 0xf60   : > { %v3305_v25 = vmul.f32 0.03125, %v3293_v10  ;;  %v3318_v24 = vmul.f32 %v5830_v6, %v5830_v6 }
 0xf62   : > { %v5835_v2 = vsub.f32 %v5803_v36, %v3305_v25  ;;  %v3330_v35 = vsel %vm906_vm3, %v3318_v24, 0.0 }
 0xf63   : > { %3331 = vadd.xlane.f32.xlu1 %v3330_v35  ;;  %v3302_v22 = vpop.xlane.xlu1 %3301 }
 0xf64   : > { %v3308_v27 = vmul.f32 0.03125, %v3302_v22  ;;  %v3299_v29 = vpop.xlane.xlu0 %3298  ;;  %v3317_v38 = vmul.f32 %v5835_v2, %v5835_v2 }
 0xf65   : > { %v3307_v8 = vmul.f32 0.03125, %v3299_v29 }
 0xf66   : > { %v5843_v47 = vsub.f32 %v5809_v43, %v3308_v27  ;;  %v3327_v62 = vsel %vm906_vm3, %v3317_v38, 0.0 }
 0xf67   : > { %v5847_v5 = vsub.f32 %v5811_v45, %v3307_v8  ;;  %3328 = vadd.xlane.f32.xlu0 %v3327_v62 }
 0xf68   : > { %v3320_v54 = vmul.f32 %v5843_v47, %v5843_v47 }
 0xf69   : > { %v3319_v13 = vmul.f32 %v5847_v5, %v5847_v5 }
 0xf6a   : > { %v3336_v15 = vsel %vm906_vm3, %v3320_v54, 0.0 }
 0xf6b   : > { %3337 = vadd.xlane.f32.xlu1 %v3336_v15  ;;  %v3333_v63 = vsel %vm906_vm3, %v3319_v13, 0.0 }
 0xf6c   : > { %3334 = vadd.xlane.f32.xlu0 %v3333_v63  ;;  %v3552_v63 = vld [vmem:[%s5132_s2 + $0x48] sm:$0xff] }
 0xfd4   : > { %v3326_v28 = vpop.xlane.xlu1 %3325 }
 0xfd5   : > { %v3340_v31 = vmul.f32 0.03125, %v3326_v28  ;;  %v3323_v33 = vpop.xlane.xlu0 %3322  ;;  %v4645_v28 = vpack.c.bf16 %v3558_v26, %v3557_v23 }
 0xfd6   : > { %v3339_v4 = vmul.f32 0.03125, %v3323_v33 }
 0xfd7   : > { %v3346_v34 = vadd.f32 1e-05, %v3340_v31  ;;  %v3994_v31 = vld [vmem:[%s6041_s23] ss:$0 sm:$0xff] }
 0xfd8   : > { %v3345_v37 = vadd.f32 1e-05, %v3339_v4 }
 0xfd9   : > { %4879 = vrsqrt.f32 %v3346_v34 }
 0xfda   : > { %4881 = vrsqrt.f32 %v3345_v37 }
 0xfe3   : > { %v4880_v39 = vpop.eup %4879 }
 0xfe4   : > { %v4882_v42 = vpop.eup %4881  ;;  %v3358_v61 = vmul.f32 %v4880_v39, %v5818_v53 }
 0xfe5   : > { %v3357_v7 = vmul.f32 %v4882_v42, %v5821_v56 }
 0xfe6   : > { %v3371_v48 = vmul.f32 %v3992_v41, %v3358_v61 }
 0xfe7   : > { %v3370_v49 = vmul.f32 %v3992_v41, %v3357_v7 }
 0xfe8   : > { %v3384_v51 = vadd.f32 %v3993_v46, %v3371_v48 }
 0xfe9   : > { %v3383_v50 = vadd.f32 %v3993_v46, %v3370_v49 }
 0xfeb   : > { %4475 = vmatprep.mubr.msk.f32.mxu0 %vm906_vm3, %v3383_v50 }
 0xfec   : > { %4476 = vmatmul.mubr.msk.f32.vlgmr.msra.gmra.mrb[60].mxu0 %vm906_vm3, %v3384_v51 }
 0xff0   : > { %v3332_v52 = vpop.xlane.xlu1 %3331 }
 0xff1   : > { %v3342_v57 = vmul.f32 0.03125, %v3332_v52 }
 0xff3   : > { %v3348_v55 = vadd.f32 1e-05, %v3342_v57 }
 0xff4   : > { %v3329_v3 = vpop.xlane.xlu0 %3328 }
 0xff5   : > { %4883 = vrsqrt.f32 %v3348_v55  ;;  %v3341_v53 = vmul.f32 0.03125, %v3329_v3 }
 0xff7   : > { %v3347_v56 = vadd.f32 1e-05, %v3341_v53 }
 0xff8   : > { %v3338_v1 = vpop.xlane.xlu1 %3337 }
 0xff9   : > { %4885 = vrsqrt.f32 %v3347_v56  ;;  %v3344_v9 = vmul.f32 0.03125, %v3338_v1  ;;  %v3335_v60 = vpop.xlane.xlu0 %3334 }
 0xffa   : > { %v3343_v10 = vmul.f32 0.03125, %v3335_v60 }
 0xffb   : > { %v3350_v25 = vadd.f32 1e-05, %v3344_v9 }
 0xffc   : > { %v3349_v24 = vadd.f32 1e-05, %v3343_v10 }
 0xffd   : > { %4887 = vrsqrt.f32 %v3350_v25 }
 0xffe   : > { %4889 = vrsqrt.f32 %v3349_v24 }
 0xfff   : > { %v4884_v35 = vpop.eup %4883 }
0x1000   : > { %v3360_v22 = vmul.f32 %v4884_v35, %v5830_v6 }
0x1002   : > { %v3373_v38 = vmul.f32 %v3992_v41, %v3360_v22 }
0x1003   : > { %v4886_v27 = vpop.eup %4885 }
0x1004   : > { %v3359_v29 = vmul.f32 %v4886_v27, %v5835_v2  ;;  %v3386_v54 = vadd.f32 %v3993_v46, %v3373_v38 }
0x1006   : > { %v3372_v44 = vmul.f32 %v3992_v41, %v3359_v29 }
0x1007   : > { %v4888_v32 = vpop.eup %4887 }
0x1008   : > { %v4890_v8 = vpop.eup %4889  ;;  %v3385_v40 = vadd.f32 %v3993_v46, %v3372_v44  ;;  %v3362_v62 = vmul.f32 %v4888_v32, %v5843_v47  ;;  %v3549_v47 = vld [vmem:[%s5132_s2 + $0x30] sm:$0xff] }
0x1009   : > { %v3361_v11 = vmul.f32 %v4890_v8, %v5847_v5  ;;  %v4629_v15 = vpack.c.bf16 %v3550_v59, %v3549_v47  ;;  %v3551_v5 = vld [vmem:[%s5132_s2 + $0x40] sm:$0xff] }
0x100a   : > { %4478 = vmatprep.mubr.msk.f32.mxu0 %vm906_vm3, %v3385_v40  ;;  %v3375_v6 = vmul.f32 %v3992_v41, %v3362_v62  ;;  %v4633_v17 = vpack.c.bf16 %v3552_v63, %v3551_v5  ;;  %v4001_v47 = vld [vmem:[%s755_s3] ss:$0 sm:$0xff] }
0x100b   : > { %4479 = vmatmul.mubr.msk.f32.gmra.mrb[62].mxu0 %vm906_vm3, %v3386_v54  ;;  %v3374_v2 = vmul.f32 %v3992_v41, %v3361_v11  ;;  %4630 = vmatprep.subr.bf16.mxu1 %v4629_v15 }
0x100c   : > { %v3388_v13 = vadd.f32 %v3993_v46, %v3375_v6  ;;  %4632 = vmatpush3.bf16.msra.mxu1 %v4629_v15 }
0x100d   : > { %v3387_v12 = vadd.f32 %v3993_v46, %v3374_v2  ;;  %4634 = vmatprep.subr.bf16.mxu1 %v4633_v17 }
0x100f   : > { %4481 = vmatprep.mubr.msk.f32.mxu0 %vm906_vm3, %v3387_v12 }
0x1010   : > { %4482 = vmatmul.mubr.msk.f32.gmra.mrb[64].mxu0 %vm906_vm3, %v3388_v13  ;;  %4636 = vmatpush3.bf16.msra.mxu1 %v4633_v17 }
0x1011   : > { %4638 = vmatprep.subr.bf16.mxu1 %v4637_v0 }
0x1014   : > { %4640 = vmatpush3.bf16.msra.mxu1 %v4637_v0 }
0x1015   : > { %4642 = vmatprep.subr.bf16.mxu1 %v4641_v58 }
0x1018   : > { %4644 = vmatpush3.bf16.msra.mxu1 %v4641_v58 }
0x1019   : > { %4646 = vmatprep.subr.bf16.mxu1 %v4645_v28 }
0x101c   : > { %4648 = vmatpush3.bf16.msra.mxu1 %v4645_v28 }
0x10bf   : > { %v4477_v33 = vpop.f32.mrb[60].mxu0 }
0x10c0   : > { %v3490_v4 = vadd.f32 %v4477_v33, %v3994_v31  ;;  %v3484_v34 = vpop.f32.mrb[61].mxu0 }
0x10c1   : > { %v3485_v37 = vadd.f32 %v3994_v31, %v3484_v34 }
0x10c2   : > { %v3520_v39 = vmul.f32 0.70710677, %v3490_v4  ;;  %v3514_v49 = vmul.f32 0.5, %v3490_v4 }
0x10c3   : > { %v3519_v41 = vmul.f32 0.70710677, %v3485_v37  ;;  %v3513_v46 = vmul.f32 0.5, %v3485_v37 }
0x10c4   : > { %4891 = verf.f32 %v3520_v39 }
0x10c5   : > { %4893 = verf.f32 %v3519_v41 }
0x10ce   : > { %v4892_v42 = vpop.eup %4891 }
0x10cf   : > { %v4894_v61 = vpop.eup %4893  ;;  %v3532_v7 = vadd.f32 1.0, %v4892_v42 }
0x10d0   : > { %v3531_v48 = vadd.f32 1.0, %v4894_v61 }
0x10d1   : > { %v3538_v51 = vmul.f32 %v3532_v7, %v3514_v49 }
0x10d2   : > { %v3537_v50 = vmul.f32 %v3531_v48, %v3513_v46 }
0x10d4   : > { %4516 = vmatprep.mubr.f32.mxu1 %v3537_v50 }
0x10d5   : > { %4517 = vmatmul.mubr.f32.vlgmr.msra.gmra.mrb[48].mxu1 %v3538_v51 }
0x10de   : > { %v4480_v52 = vpop.f32.mrb[62].mxu0 }
0x10df   : > { %v3500_v57 = vadd.f32 %v4480_v52, %v3994_v31  ;;  %v3494_v55 = vpop.f32.mrb[63].mxu0 }
0x10e0   : > { %v3495_v3 = vadd.f32 %v3994_v31, %v3494_v55 }
0x10e1   : > { %v3522_v53 = vmul.f32 0.70710677, %v3500_v57  ;;  %v3516_v44 = vmul.f32 0.5, %v3500_v57 }
0x10e2   : > { %v3521_v56 = vmul.f32 0.70710677, %v3495_v3  ;;  %v3515_v29 = vmul.f32 0.5, %v3495_v3 }
0x10e3   : > { %4895 = verf.f32 %v3522_v53  ;;  %v4483_v1 = vpop.f32.mrb[64].mxu0 }
0x10e4   : > { %4897 = verf.f32 %v3521_v56  ;;  %v3510_v9 = vadd.f32 %v4483_v1, %v3994_v31  ;;  %v3504_v60 = vpop.f32.mrb[65].mxu0 }
0x10e5   : > { %v3505_v10 = vadd.f32 %v3994_v31, %v3504_v60 }
0x10e6   : > { %v3524_v25 = vmul.f32 0.70710677, %v3510_v9  ;;  %v3518_v2 = vmul.f32 0.5, %v3510_v9 }
0x10e7   : > { %v3523_v24 = vmul.f32 0.70710677, %v3505_v10  ;;  %v3517_v11 = vmul.f32 0.5, %v3505_v10 }
0x10e8   : > { %4899 = verf.f32 %v3524_v25 }
0x10e9   : > { %4901 = verf.f32 %v3523_v24 }
0x10ed   : > { %v4896_v35 = vpop.eup %4895 }
0x10ee   : > { %v4898_v22 = vpop.eup %4897  ;;  %v3534_v27 = vadd.f32 1.0, %v4896_v35 }
0x10ef   : > { %v3533_v38 = vadd.f32 1.0, %v4898_v22 }
0x10f0   : > { %v3540_v40 = vmul.f32 %v3534_v27, %v3516_v44 }
0x10f1   : > { %v3539_v32 = vmul.f32 %v3533_v38, %v3515_v29 }
0x10f2   : > { %v4900_v8 = vpop.eup %4899 }
0x10f3   : > { %v4902_v62 = vpop.eup %4901  ;;  %v3536_v54 = vadd.f32 1.0, %v4900_v8  ;;  %4519 = vmatprep.mubr.f32.mxu1 %v3539_v32 }
0x10f4   : > { %v3535_v6 = vadd.f32 1.0, %v4902_v62  ;;  %4520 = vmatmul.mubr.f32.gmra.mrb[50].mxu1 %v3540_v40 }
0x10f5   : > { %v3542_v13 = vmul.f32 %v3536_v54, %v3518_v2 }
0x10f6   : > { %v3541_v12 = vmul.f32 %v3535_v6, %v3517_v11 }
0x10f8   : > { %4522 = vmatprep.mubr.f32.mxu1 %v3541_v12 }
0x10f9   : > { %4523 = vmatmul.mubr.f32.gmra.mrb[52].mxu1 %v3542_v13 }
0x11a8   : > { %v4518_v59 = vpop.f32.mrb[48].mxu1 }
0x11a9   : > { %v3638_v15 = vadd.f32 %v4518_v59, %v4001_v47  ;;  %v3632_v5 = vpop.f32.mrb[49].mxu1 }
0x11aa   : > { %v3633_v63 = vadd.f32 %v4001_v47, %v3632_v5 }
0x11ab   : > { %v3662_v17 = vadd.f32 %v3638_v15, %v5793_v14 }
0x11ac   : > { %v3661_v16 = vadd.f32 %v3633_v63, %v5795_v19 }
0x11ad   : > { %3668 = vst.msk [vmem:[#allocation2 + $0x8] sm:$0xff] %vm906_vm3, %v3662_v17  ;;  %3678 = vst.msk [vmem:[%s6042_s25 + $0x8] sm:$0xff] (!%p4002_p5), %vm906_vm3, %v3662_v17 }
0x11ae   : > { %3667 = vst.msk [vmem:[#allocation2] sm:$0xff] %vm906_vm3, %v3661_v16  ;;  %3677 = vst.msk [vmem:[%s6042_s25] sm:$0xff] (!%p4002_p5), %vm906_vm3, %v3661_v16 }
0x11c7   : > { %v4521_v18 = vpop.f32.mrb[50].mxu1 }
0x11c8   : > { %v3648_v0 = vadd.f32 %v4521_v18, %v4001_v47  ;;  %v3642_v20 = vpop.f32.mrb[51].mxu1 }
0x11c9   : > { %v3643_v21 = vadd.f32 %v4001_v47, %v3642_v20 }
0x11ca   : > { %v3664_v58 = vadd.f32 %v3648_v0, %v5801_v30 }
0x11cb   : > { %v3663_v23 = vadd.f32 %v3643_v21, %v5803_v36 }
0x11cc   : > { %3670 = vst.msk [vmem:[#allocation2 + $0x18] sm:$0xff] %vm906_vm3, %v3664_v58  ;;  %v4524_v26 = vpop.f32.mrb[52].mxu1  ;;  %3676 = sbr.rel (%p4002_p5) target bundleno = 4563 (0x11d3), region = 96  ;;  %3679 = vst.msk [vmem:[%s6042_s25 + $0x10] sm:$0xff] (!%p4002_p5), %vm906_vm3, %v3664_v58 }
0x11cd   : > { %3669 = vst.msk [vmem:[#allocation2 + $0x10] sm:$0xff] %vm906_vm3, %v3663_v23  ;;  %v3658_v14 = vadd.f32 %v4524_v26, %v4001_v47  ;;  %v3652_v28 = vpop.f32.mrb[53].mxu1 }
0x11ce   : > { %v3653_v19 = vadd.f32 %v4001_v47, %v3652_v28 }
0x11cf   : > { %v3666_v31 = vadd.f32 %v3658_v14, %v5809_v43 }
0x11d0   : > { %v3665_v33 = vadd.f32 %v3653_v19, %v5811_v45 }
0x11d1   : > { %3672 = vst.msk [vmem:[#allocation2 + $0x28] sm:$0xff] %vm906_vm3, %v3666_v31 }
0x11d2   : > { %3671 = vst.msk [vmem:[#allocation2 + $0x20] sm:$0xff] %vm906_vm3, %v3665_v33  ;;  %3680 = vst.msk [vmem:[%s6042_s25 + $0x18] sm:$0xff] (!%p4002_p5), %vm906_vm3, %v3665_v33 }
0x11d3 PF: > { %p4003_p6 = scmp.ne.s32.totalorder %s5076_s30, 8 }
0x11d4   : > { %3685 = vst.msk [vmem:[#allocation3] sm:$0xff] (!%p4003_p6), %vm906_vm3, %v3661_v16  ;;  %3686 = vst.msk [vmem:[#allocation3 + $0x8] sm:$0xff] (!%p4003_p6), %vm906_vm3, %v3662_v17 }
0x11d5   : > { %3684 = sbr.rel (%p4003_p6) target bundleno = 4572 (0x11dc), region = 100  ;;  %3687 = vst.msk [vmem:[#allocation3 + $0x10] sm:$0xff] (!%p4003_p6), %vm906_vm3, %v3664_v58  ;;  %3688 = vst.msk [vmem:[#allocation3 + $0x18] sm:$0xff] (!%p4003_p6), %vm906_vm3, %v3665_v33 }
0x11dc PF: > { %p4004_p7 = scmp.ne.s32.totalorder %s5076_s30, 11 }
0x11dd   : > { %s6043_s27 = sld [smem:[#allocation16_spill]] (!%p4004_p7) }
0x11de   : > { %3692 = sbr.rel (%p4004_p7) target bundleno = 4581 (0x11e5), region = 104 }
0x11e3   : > { %3693 = vst.msk [vmem:[%s6043_s27] sm:$0xff] (!%p4004_p7), %vm906_vm3, %v3661_v16  ;;  %3694 = vst.msk [vmem:[%s6043_s27 + $0x8] sm:$0xff] (!%p4004_p7), %vm906_vm3, %v3662_v17 }
0x11e4   : > { %3695 = vst.msk [vmem:[%s6043_s27 + $0x10] sm:$0xff] (!%p4004_p7), %vm906_vm3, %v3664_v58  ;;  %3696 = vst.msk [vmem:[%s6043_s27 + $0x18] sm:$0xff] (!%p4004_p7), %vm906_vm3, %v3665_v33 }
0x11e5 PF: > { %s3698_s0 = ssub.s32 0, %s5076_s30  ;;  %p3697_p8 = scmp.lt.s32.totalorder %s5076_s30, 0 }
0x11e6   : > { %s4005_s1 = smin.u32 %s5076_s30, %s3698_s0 }
0x11e7   : > { %4909 = sdivrem.u32 %s4005_s1, 3 }
0x11f0   : > { %s4910_s7 = spop.drf %4909 }
0x11f1   : > { %s3702_s18 = ssub.s32 0, %s4910_s7 }
0x11f2   : > { %s6047_s18 = smov (!%p3697_p8, %s3702_s18), %s4910_s7 }
0x11f3   : > { %p4007_p9 = scmp.lt.s32.totalorder %s6047_s18, 0  ;;  %s3708_s22 = sadd.s32 3, %s6047_s18 }
0x11f5   : > { %s6049_s22 = smov (!%p4007_p9, %s3708_s22), %s6047_s18 }
0x11f6   : > { %p4008_p10 = scmp.ne.s32.totalorder %s6049_s22, 2 }
0x11f7   : > { %v3714_v30 = vld [vmem:[%s5993_s4] sm:$0x1] (!%p4008_p10)  ;;  %vm3715_vm10 = vcmask (!%p4008_p10), 253952  }
0x11f8   : > { %3713 = sbr.rel (%p4008_p10) target bundleno = 4607 (0x11ff), region = 108  ;;  %3716 = vst.msk [vmem:[#allocation2 + $0x10] sm:$0x1] (!%p4008_p10), %vm3715_vm10, %v3714_v30  ;;  %3717 = vst.msk [vmem:[#allocation2 + $0x28] sm:$0x1] (!%p4008_p10), %vm3715_vm10, %v3714_v30 }
0x11ff PF: > { %p4659_p11 = scmp.eq.s32.totalorder %s5076_s30, 11  ;;  %s4968_s23 = smov [#allocation3]  }
0x1200   : > { %s3727_s2 = sshll.u32 %s4968_s23, 4  ;;  %s3728_s2 = int_to_ptr.vmem [resolvable:$true] %s3727_s2 }
0x1201   : > { %s4911_s26 = scalar_lea.vmem %s3728_s2, 512  ;;  %p4918_p1 = scmp.lt.s32.totalorder %s3728_s2, %s3728_s2 }
0x1202   : > { %p4912_p12 = scmp.ne.s32.totalorder %s3728_s2, %s4911_s26  ;;  %p4919_p2 = scmp.lt.s32.totalorder %s4911_s26, %s4911_s26 }
0x1204   : > { %p4913_p13 = pnand %p4912_p12, %p4659_p11  ;;  %p4920_p3 = por %p4919_p2, %p4918_p1 }
0x1206   : > { %p4914_p0 = pneg %p4913_p13 }
0x1208   : > { %p4921_p4 = pnand %p4920_p3, %p4914_p0 }
0x120a   : > { %4924 = shalt.err (!%p4921_p4)
}
0x120b   : > { %s6044_s29 = sld [smem:[#allocation15_spill]] }
0x1211   : > { %s4925_s0 = scalar_lea.hbm %s6044_s29, 512 }
0x1212   : > { %p4926_p5 = scmp.ne.s32.totalorder %s6044_s29, %s4925_s0  ;;  %p4931_p8 = scmp.lt.u32.totalorder %s4925_s0, %s6044_s29 }
0x1214   : > { %p4927_p6 = pnand %p4926_p5, %p4659_p11 }
0x1216   : > { %p4928_p7 = pneg %p4927_p6 }
0x1218   : > { %p4933_p9 = pnand %p4931_p8, %p4928_p7 }
0x121a   : > { %4936 = shalt.err (!%p4933_p9)
}
0x121b   : > { %s4969_s24 = smov 128  }
0x121c   : > { %4656 = dma.vmem_to_hbm [thread:$0]  (%p4659_p11), %s3728_s2, 512, %s6044_s29, [#allocation4], %s4969_s24, %s4969_s24, %s4965_s21  }
0x121d   : > { %4942 = dma.done.wait (%p4659_p11), [#allocation4], 512  }
0x121e   : > { %4944 = vsyncadd (%p4659_p11), [#allocation4], 4294966784 }
0x121f PF: > { %s6045_s26 = sld [smem:[#allocation6_spill]] }
0x1225   : > { %s31_s0 = sadd.s32 1, %s6045_s26  }
0x1226   : > { %p28_p10 = scmp.ge.s32.totalorder %s31_s0, 14  }
0x1228   :  { %30 = sbr.rel (!%p28_p10) target bundleno = 11 (0xb), region = 184 }
0x122f   :  { %3752 = vsyncpa [#allocation4], 1 }
0x1230   :  { %3754 = vsyncpa [#allocation4 + $0x1], 1 }

</bundles_post_ra>
